<compile_context>
chip_gen: v7x
topology: tpu7x:2x2x1
jax: 0.10.0
libtpu: 0.0.40
codegen_flags: <defaults>
</compile_context>

<pallas_src>
import functools
import math

import jax
import jax.numpy as jnp
from jax import lax
from jax.experimental import pallas as pl
from jax.experimental.pallas import tpu as pltpu

_HALF_LOG_2PI = 0.9189385332046727  # 0.5 * ln(2*pi)
_EPS = 1e-7


# ----------------------------------------------------------------------------
# Shared digamma / lgamma core:  shift by 4, Stirling / asymptotic series.
#   2 logs + 2 divides + ~20 VALU ops per call, valid for 0 < x < ~1e9.
# ----------------------------------------------------------------------------
def _psi_lgamma(x):
    t = x * (x + 3.0)                       # x^2 + 3x
    d = t * (t + 2.0)                       # x(x+1)(x+2)(x+3)
    dp = (2.0 * t + 2.0) * (2.0 * x + 3.0)  # d/dx of d
    rec = dp / d                            # sum_{k=0}^{3} 1/(x+k)
    y = x + 4.0
    logy = jnp.log(y)
    inv = 1.0 / y
    inv2 = inv * inv
    psi = (logy - 0.5 * inv
           - inv2 * (1.0 / 12.0 - inv2 * (1.0 / 120.0)) - rec)
    lg = ((y - 0.5) * logy - y + _HALF_LOG_2PI
          + inv * (1.0 / 12.0 - inv2 * (1.0 / 360.0 - inv2 * (1.0 / 1260.0)))
          - jnp.log(d))
    return psi, lg


# ----------------------------------------------------------------------------
# Kernel
# ----------------------------------------------------------------------------
def _edl_kernel(m_ref, cls_ref, a_ref, lab_ref, out_ref, *, num_classes, n_valid):
    c = num_classes
    cf = float(c)
    blk = pl.program_id(0)

    a_raw = a_ref[...]        # [RB, 128*C] f32   (flat alpha, 128 samples / row)
    lab_raw = lab_ref[...]    # [RB, 128]   f32   (per-sample labels)
    m_mat = m_ref[...]        # [128*C, 128] f32  (constant group-sum matrix)
    cls = cls_ref[...]        # [1, 128*C]  f32   (constant class id per lane)

    rb, w = a_raw.shape
    g = 128

    # ---- validity masks (ragged last block + wrapper batch padding) ----
    r_e = lax.broadcasted_iota(jnp.int32, (rb, w), 0)
    p_e = lax.broadcasted_iota(jnp.int32, (rb, w), 1)
    flat_e = (blk * rb + r_e) * w + p_e
    valid_e = flat_e < (n_valid * c)

    r_s = lax.broadcasted_iota(jnp.int32, (rb, g), 0)
    j_s = lax.broadcasted_iota(jnp.int32, (rb, g), 1)
    samp = (blk * rb + r_s) * g + j_s
    valid_s = samp < n_valid
    valid_s_f = valid_s.astype(jnp.float32)

    # Select BEFORE any log/lgamma/digamma/matmul so garbage lanes never
    # produce NaN/Inf that could leak through 0*NaN.
    a = jnp.where(valid_e, a_raw, 1.0)
    lab = jnp.where(valid_s, lab_raw, 0.0)

    # ---- heavy per-element part (fully dense): G(alpha) ----
    psi_e, lg_e = _psi_lgamma(a + _EPS)
    g_elem = (a - 1.0) * psi_e - lg_e
    g_elem = jnp.where(valid_e, g_elem, 0.0)
    g_sum = jnp.sum(g_elem)

    # ---- per-sample part via the (idle) MXU ----
    hp = jax.lax.Precision.HIGHEST
    total = jnp.dot(a, m_mat, precision=hp,
                    preferred_element_type=jnp.float32)                 # [RB, 128]
    lab_exp = lax.dot_general(lab, m_mat, (((1,), (1,)), ((), ())),
                              precision=hp,
                              preferred_element_type=jnp.float32)       # [RB, 128*C]
    onehot = (lab_exp == cls).astype(jnp.float32)                       # [RB, 128*C]
    a_lab = jnp.dot(a * onehot, m_mat, precision=hp,
                    preferred_element_type=jnp.float32)                 # [RB, 128]

    nll = (jnp.log(total) - jnp.log(a_lab)) * valid_s_f

    nt = total - a_lab + 1.0                                            # new total
    psi_nt, lg_nt = _psi_lgamma(nt)
    psi_l, lg_l = _psi_lgamma(a_lab + _EPS)
    g_lab = (a_lab - 1.0) * psi_l - lg_l
    kl_s = (lg_nt - psi_nt * (nt - cf) - g_lab) * valid_s_f

    p_nll = jnp.sum(nll)
    p_kl = g_sum + jnp.sum(kl_s)

    row_nll = jnp.broadcast_to(p_nll, (1, 128))
    row_kl = jnp.broadcast_to(p_kl, (1, 128))
    out_ref[...] = jnp.concatenate([row_nll, row_kl], axis=0)[None, :, :]


# ----------------------------------------------------------------------------
# Wrapper
# ----------------------------------------------------------------------------
def edl_loss(alpha, label, *, block_rows=None):
    """JAX/Pallas equivalent of EDL_Loss.forward(alpha, label) -> (loss_nll, loss_KL)."""
    if label.ndim == 2:
        label = label[:, 0]                      # torch: label.squeeze(1)
    alpha = alpha.astype(jnp.float32)
    label = label.astype(jnp.float32)            # small ints, exact in f32
    n, c = alpha.shape

    g = 128                                      # samples per flat row
    w = g * c                                    # lanes per flat row (multiple of 128)

    # Pad batch only when N % 128 != 0 (this is the only case with a wrapper copy).
    n_pad = -(-n // g) * g
    if n_pad != n:
        alpha = jnp.pad(alpha, ((0, n_pad - n), (0, 0)), constant_values=1.0)
        label = jnp.pad(label, (0, n_pad - n), constant_values=0.0)
    nr = n_pad // g
    a2d = alpha.reshape(nr, w)                   # free reshape (contiguous)
    lab2d = label.reshape(nr, g)

    # Block sizing: ~1.5 MiB of alpha per block; with ~6x live temporaries plus
    # double-buffered inputs this stays well under the 32 MiB VMEM limit set
    # below (and under v5e/v7x budgets).  grid axis is "parallel" for megacore.
    if block_rows is None:
        target_bytes = (3 * 1024 * 1024) // 2
        block_rows = max(8, min(2048, ((target_bytes // (w * 4)) // 8) * 8))
    if nr <= block_rows:
        rb = nr                                  # single block: full (possibly ragged) extent
        grid_n = 1
    else:
        rb = max(8, (block_rows // 8) * 8)
        grid_n = -(-nr // rb)

    # Constant matrices (tiny; fine for the small class counts EDL uses).
    # TODO(synk): for very large C (>~128) m_mat grows as 64KiB*C; switch the
    # per-sample reduction to a tiled scheme if that regime ever matters.
    p = jnp.arange(w, dtype=jnp.int32)
    j = jnp.arange(g, dtype=jnp.int32)
    m_mat = (p[:, None] // c == j[None, :]).astype(jnp.float32)    # [128*C, 128]
    cls_row = (p % c).astype(jnp.float32)[None, :]                 # [1, 128*C]

    kernel = functools.partial(_edl_kernel, num_classes=c, n_valid=n)

    cost = pl.CostEstimate(
        flops=int(60 * n_pad * c + 768 * n_pad * c),
        transcendentals=int(4 * n_pad * c + 12 * n_pad),
        bytes_accessed=int(4 * n_pad * c + 4 * n_pad + 4 * (w * g + w)
                           + 4 * grid_n * 2 * 128),
    )

    parts = pl.pallas_call(
        kernel,
        grid_spec=pltpu.PrefetchScalarGridSpec(
            num_scalar_prefetch=0,
            grid=(grid_n,),
            in_specs=[
                pl.BlockSpec((w, g), lambda i: (0, 0)),     # m_mat (resident)
                pl.BlockSpec((1, w), lambda i: (0, 0)),     # cls_row (resident)
                pl.BlockSpec((rb, w), lambda i: (i, 0)),    # alpha flat blocks
                pl.BlockSpec((rb, g), lambda i: (i, 0)),    # label blocks
            ],
            out_specs=pl.BlockSpec((1, 2, g), lambda i: (i, 0, 0)),
        ),
        out_shape=jax.ShapeDtypeStruct((grid_n, 2, g), jnp.float32),
        compiler_params=pltpu.CompilerParams(
            dimension_semantics=("parallel",),
            vmem_limit_bytes=32 * 1024 * 1024),
        cost_estimate=cost,
    )(m_mat, cls_row, a2d, lab2d)

    inv_n = 1.0 / float(n)
    g1 = -math.lgamma(1.0 + _EPS)                # G(1) term (== -lgamma(1+eps))
    loss_nll = jnp.sum(parts[:, 0, 0]) * inv_n
    loss_kl = jnp.sum(parts[:, 1, 0]) * inv_n + (g1 - math.lgamma(float(c)))
    return loss_nll, loss_kl


# ----------------------------------------------------------------------------
# Pure-JAX reference (mirrors the PyTorch module) and self-test.
# ----------------------------------------------------------------------------
def _edl_loss_ref(alpha, label):
    from jax.scipy.special import gammaln, digamma

    label = label[:, 0]
    n, c = alpha.shape
    total_alpha = jnp.sum(alpha, axis=1, keepdims=True)
    one_hot = jax.nn.one_hot(label, c, dtype=alpha.dtype)
    temp = jnp.log(total_alpha) - jnp.log(alpha)
    gathered = jnp.take_along_axis(temp, label[:, None], axis=1)
    loss_nll = jnp.sum(gathered) / n
    eps = 1e-7
    new_alpha = one_hot + (1.0 - one_hot) * alpha
    new_total = jnp.sum(new_alpha, axis=1)
    loss_kl = jnp.sum(
        gammaln(new_total)
        - gammaln(jnp.float32(c))
        - jnp.sum(gammaln(new_alpha + eps), axis=1)
        + jnp.sum((new_alpha - 1.0)
                  * (digamma(new_alpha + eps) - digamma(new_total)[:, None]), axis=1)
    ) / n
    return loss_nll, loss_kl


if __name__ == "__main__":
    key = jax.random.PRNGKey(0)
    k1, k2 = jax.random.split(key)

    # Small case matching the module contract: alpha [N, C], label [N, 1].
    N, C = 8, 4
    alpha = jnp.exp(jax.random.normal(k1, (N, C), dtype=jnp.float32)) + 1.0
    label = jax.random.randint(k2, (N, 1), 0, C, dtype=jnp.int32)

    nll, kl = edl_loss(alpha, label)
    jax.block_until_ready((nll, kl))

    nll_ref, kl_ref = _edl_loss_ref(alpha, label)
    assert jnp.allclose(nll, nll_ref, rtol=1e-3, atol=1e-3), (nll, nll_ref)
    assert jnp.allclose(kl, kl_ref, rtol=1e-2, atol=1e-2), (kl, kl_ref)

    # Second check: multi-block grid, ragged last block and batch-pad masking.
    k3, k4 = jax.random.split(k2)
    N2, C2 = 2600, 6
    alpha2 = jnp.exp(jax.random.normal(k3, (N2, C2), dtype=jnp.float32)) + 1.0
    label2 = jax.random.randint(k4, (N2, 1), 0, C2, dtype=jnp.int32)
    nll2, kl2 = edl_loss(alpha2, label2, block_rows=8)   # force grid_n > 1
    jax.block_until_ready((nll2, kl2))
    nll2_ref, kl2_ref = _edl_loss_ref(alpha2, label2)
    assert jnp.allclose(nll2, nll2_ref, rtol=1e-3, atol=1e-3), (nll2, nll2_ref)
    assert jnp.allclose(kl2, kl2_ref, rtol=1e-2, atol=1e-2), (kl2, kl2_ref)

    print("KERNEL_OK")
</pallas_src>

<mosaic_0001>
module attributes {stable_mosaic.version = 11 : i64} {
  func.func @_edl_kernel(%arg0: i32, %arg1: memref<512x128xf32, #tpu.memory_space<vmem>>, %arg2: memref<1x512xf32, #tpu.memory_space<vmem>>, %arg3: memref<1x512xf32, #tpu.memory_space<vmem>>, %arg4: memref<1x128xf32, #tpu.memory_space<vmem>>, %arg5: memref<1x2x128xf32, #tpu.memory_space<vmem>>) attributes {dimension_semantics = [#tpu.dimension_semantics<parallel>], iteration_bounds = array<i64: 1>, scalar_prefetch = 0 : i64, scratch_operands = 0 : i64, tpu.core_type = #tpu.core_type<tc>, window_params = [{pipeline_mode = #tpu.pipeline_mode<synchronous>, transform_indices = @transform_0, window_bounds = array<i64: 512, 128>}, {pipeline_mode = #tpu.pipeline_mode<synchronous>, transform_indices = @transform_1, window_bounds = array<i64: 1, 512>}, {transform_indices = @transform_2, window_bounds = array<i64: 1, 512>}, {transform_indices = @transform_3, window_bounds = array<i64: 1, 128>}, {transform_indices = @transform_4, window_bounds = array<i64: 1, 2, 128>}]} {
    %c0 = arith.constant 0 : index
    %c0_0 = arith.constant 0 : index
    %0 = vector.load %arg3[%c0, %c0_0] : memref<1x512xf32, #tpu.memory_space<vmem>>, vector<1x512xf32>
    %c0_1 = arith.constant 0 : index
    %c0_2 = arith.constant 0 : index
    %1 = vector.load %arg4[%c0_1, %c0_2] : memref<1x128xf32, #tpu.memory_space<vmem>>, vector<1x128xf32>
    %c0_3 = arith.constant 0 : index
    %c0_4 = arith.constant 0 : index
    %2 = vector.load %arg1[%c0_3, %c0_4] : memref<512x128xf32, #tpu.memory_space<vmem>>, vector<512x128xf32>
    %c0_5 = arith.constant 0 : index
    %c0_6 = arith.constant 0 : index
    %3 = vector.load %arg2[%c0_5, %c0_6] : memref<1x512xf32, #tpu.memory_space<vmem>>, vector<1x512xf32>
    %4 = tpu.iota {dimensions = array<i32: 0>} : vector<1x512xi32>
    %5 = tpu.iota {dimensions = array<i32: 1>} : vector<1x512xi32>
    %c1_i32 = arith.constant 1 : i32
    %6 = arith.muli %arg0, %c1_i32 : i32
    %7 = vector.broadcast %6 : i32 to vector<1x512xi32>
    %8 = arith.addi %7, %4 : vector<1x512xi32>
    %c512_i32 = arith.constant 512 : i32
    %9 = vector.broadcast %c512_i32 : i32 to vector<1x512xi32>
    %10 = arith.muli %8, %9 : vector<1x512xi32>
    %11 = arith.addi %10, %5 : vector<1x512xi32>
    %c32_i32 = arith.constant 32 : i32
    %12 = vector.broadcast %c32_i32 : i32 to vector<1x512xi32>
    %13 = arith.cmpi slt, %11, %12 : vector<1x512xi32>
    %14 = tpu.iota {dimensions = array<i32: 0>} : vector<1x128xi32>
    %15 = tpu.iota {dimensions = array<i32: 1>} : vector<1x128xi32>
    %c1_i32_7 = arith.constant 1 : i32
    %16 = arith.muli %arg0, %c1_i32_7 : i32
    %17 = vector.broadcast %16 : i32 to vector<1x128xi32>
    %18 = arith.addi %17, %14 : vector<1x128xi32>
    %c128_i32 = arith.constant 128 : i32
    %19 = vector.broadcast %c128_i32 : i32 to vector<1x128xi32>
    %20 = arith.muli %18, %19 : vector<1x128xi32>
    %21 = arith.addi %20, %15 : vector<1x128xi32>
    %c8_i32 = arith.constant 8 : i32
    %22 = vector.broadcast %c8_i32 : i32 to vector<1x128xi32>
    %23 = arith.cmpi slt, %21, %22 : vector<1x128xi32>
    %24 = arith.extui %23 : vector<1x128xi1> to vector<1x128xi32>
    %25 = arith.sitofp %24 : vector<1x128xi32> to vector<1x128xf32>
    %cst = arith.constant 1.000000e+00 : f32
    %26 = vector.broadcast %cst : f32 to vector<1x512xf32>
    %27 = arith.select %13, %0, %26 : vector<1x512xi1>, vector<1x512xf32>
    %cst_8 = arith.constant 0.000000e+00 : f32
    %28 = vector.broadcast %cst_8 : f32 to vector<1x128xf32>
    %29 = arith.select %23, %1, %28 : vector<1x128xi1>, vector<1x128xf32>
    %cst_9 = arith.constant 1.000000e-07 : f32
    %30 = vector.broadcast %cst_9 : f32 to vector<1x512xf32>
    %31 = arith.addf %27, %30 : vector<1x512xf32>
    %cst_10 = arith.constant 3.000000e+00 : f32
    %32 = vector.broadcast %cst_10 : f32 to vector<1x512xf32>
    %33 = arith.addf %31, %32 : vector<1x512xf32>
    %34 = arith.mulf %31, %33 : vector<1x512xf32>
    %cst_11 = arith.constant 2.000000e+00 : f32
    %35 = vector.broadcast %cst_11 : f32 to vector<1x512xf32>
    %36 = arith.addf %34, %35 : vector<1x512xf32>
    %37 = arith.mulf %34, %36 : vector<1x512xf32>
    %cst_12 = arith.constant 2.000000e+00 : f32
    %38 = vector.broadcast %cst_12 : f32 to vector<1x512xf32>
    %39 = arith.mulf %38, %34 : vector<1x512xf32>
    %cst_13 = arith.constant 2.000000e+00 : f32
    %40 = vector.broadcast %cst_13 : f32 to vector<1x512xf32>
    %41 = arith.addf %39, %40 : vector<1x512xf32>
    %cst_14 = arith.constant 2.000000e+00 : f32
    %42 = vector.broadcast %cst_14 : f32 to vector<1x512xf32>
    %43 = arith.mulf %42, %31 : vector<1x512xf32>
    %cst_15 = arith.constant 3.000000e+00 : f32
    %44 = vector.broadcast %cst_15 : f32 to vector<1x512xf32>
    %45 = arith.addf %43, %44 : vector<1x512xf32>
    %46 = arith.mulf %41, %45 : vector<1x512xf32>
    %47 = arith.divf %46, %37 : vector<1x512xf32>
    %cst_16 = arith.constant 4.000000e+00 : f32
    %48 = vector.broadcast %cst_16 : f32 to vector<1x512xf32>
    %49 = arith.addf %31, %48 : vector<1x512xf32>
    %50 = math.log %49 : vector<1x512xf32>
    %cst_17 = arith.constant 1.000000e+00 : f32
    %51 = vector.broadcast %cst_17 : f32 to vector<1x512xf32>
    %52 = arith.divf %51, %49 : vector<1x512xf32>
    %53 = arith.mulf %52, %52 : vector<1x512xf32>
    %cst_18 = arith.constant 5.000000e-01 : f32
    %54 = vector.broadcast %cst_18 : f32 to vector<1x512xf32>
    %55 = arith.mulf %54, %52 : vector<1x512xf32>
    %56 = arith.subf %50, %55 : vector<1x512xf32>
    %cst_19 = arith.constant 0.00833333377 : f32
    %57 = vector.broadcast %cst_19 : f32 to vector<1x512xf32>
    %58 = arith.mulf %53, %57 : vector<1x512xf32>
    %cst_20 = arith.constant 0.0833333358 : f32
    %59 = vector.broadcast %cst_20 : f32 to vector<1x512xf32>
    %60 = arith.subf %59, %58 : vector<1x512xf32>
    %61 = arith.mulf %53, %60 : vector<1x512xf32>
    %62 = arith.subf %56, %61 : vector<1x512xf32>
    %63 = arith.subf %62, %47 : vector<1x512xf32>
    %cst_21 = arith.constant 5.000000e-01 : f32
    %64 = vector.broadcast %cst_21 : f32 to vector<1x512xf32>
    %65 = arith.subf %49, %64 : vector<1x512xf32>
    %66 = arith.mulf %65, %50 : vector<1x512xf32>
    %67 = arith.subf %66, %49 : vector<1x512xf32>
    %cst_22 = arith.constant 0.918938517 : f32
    %68 = vector.broadcast %cst_22 : f32 to vector<1x512xf32>
    %69 = arith.addf %67, %68 : vector<1x512xf32>
    %cst_23 = arith.constant 7.93650805E-4 : f32
    %70 = vector.broadcast %cst_23 : f32 to vector<1x512xf32>
    %71 = arith.mulf %53, %70 : vector<1x512xf32>
    %cst_24 = arith.constant 0.00277777785 : f32
    %72 = vector.broadcast %cst_24 : f32 to vector<1x512xf32>
    %73 = arith.subf %72, %71 : vector<1x512xf32>
    %74 = arith.mulf %53, %73 : vector<1x512xf32>
    %cst_25 = arith.constant 0.0833333358 : f32
    %75 = vector.broadcast %cst_25 : f32 to vector<1x512xf32>
    %76 = arith.subf %75, %74 : vector<1x512xf32>
    %77 = arith.mulf %52, %76 : vector<1x512xf32>
    %78 = arith.addf %69, %77 : vector<1x512xf32>
    %79 = math.log %37 : vector<1x512xf32>
    %80 = arith.subf %78, %79 : vector<1x512xf32>
    %cst_26 = arith.constant 1.000000e+00 : f32
    %81 = vector.broadcast %cst_26 : f32 to vector<1x512xf32>
    %82 = arith.subf %27, %81 : vector<1x512xf32>
    %83 = arith.mulf %82, %63 : vector<1x512xf32>
    %84 = arith.subf %83, %80 : vector<1x512xf32>
    %cst_27 = arith.constant 0.000000e+00 : f32
    %85 = vector.broadcast %cst_27 : f32 to vector<1x512xf32>
    %86 = arith.select %13, %84, %85 : vector<1x512xi1>, vector<1x512xf32>
    %87 = vector.shape_cast %86 : vector<1x512xf32> to vector<1x1x512xf32>
    %cst_28 = arith.constant dense<0.000000e+00> : vector<1xf32>
    %88 = vector.multi_reduction <add>, %87, %cst_28 [1, 2] : vector<1x1x512xf32> to vector<1xf32>
    %89 = vector.shape_cast %88 : vector<1xf32> to vector<1x1x1xf32>
    %90 = vector.extract %89[0, 0, 0] : f32 from vector<1x1x1xf32>
    %cst_29 = arith.constant dense<0.000000e+00> : vector<1x128xf32>
    %91 = tpu.matmul %27, %2, %cst_29 {dimension_numbers = #tpu.dot_dimension_numbers<[1], [0], [0], [1], [0, 0, 1, 1], [], []>, precision = #tpu.contract_precision<fp32>} : vector<1x512xf32>, vector<512x128xf32>, vector<1x128xf32> -> vector<1x128xf32>
    %cst_30 = arith.constant dense<0.000000e+00> : vector<1x512xf32>
    %92 = tpu.matmul %29, %2, %cst_30 {dimension_numbers = #tpu.dot_dimension_numbers<[1], [1], [0], [0], [0, 0, 1, 0], [], []>, precision = #tpu.contract_precision<fp32>} : vector<1x128xf32>, vector<512x128xf32>, vector<1x512xf32> -> vector<1x512xf32>
    %93 = arith.cmpf oeq, %92, %3 : vector<1x512xf32>
    %94 = arith.extui %93 : vector<1x512xi1> to vector<1x512xi32>
    %95 = arith.sitofp %94 : vector<1x512xi32> to vector<1x512xf32>
    %96 = arith.mulf %27, %95 : vector<1x512xf32>
    %cst_31 = arith.constant dense<0.000000e+00> : vector<1x128xf32>
    %97 = tpu.matmul %96, %2, %cst_31 {dimension_numbers = #tpu.dot_dimension_numbers<[1], [0], [0], [1], [0, 0, 1, 1], [], []>, precision = #tpu.contract_precision<fp32>} : vector<1x512xf32>, vector<512x128xf32>, vector<1x128xf32> -> vector<1x128xf32>
    %98 = math.log %91 : vector<1x128xf32>
    %99 = math.log %97 : vector<1x128xf32>
    %100 = arith.subf %98, %99 : vector<1x128xf32>
    %101 = arith.mulf %100, %25 : vector<1x128xf32>
    %102 = arith.subf %91, %97 : vector<1x128xf32>
    %cst_32 = arith.constant 1.000000e+00 : f32
    %103 = vector.broadcast %cst_32 : f32 to vector<1x128xf32>
    %104 = arith.addf %102, %103 : vector<1x128xf32>
    %cst_33 = arith.constant 3.000000e+00 : f32
    %105 = vector.broadcast %cst_33 : f32 to vector<1x128xf32>
    %106 = arith.addf %104, %105 : vector<1x128xf32>
    %107 = arith.mulf %104, %106 : vector<1x128xf32>
    %cst_34 = arith.constant 2.000000e+00 : f32
    %108 = vector.broadcast %cst_34 : f32 to vector<1x128xf32>
    %109 = arith.addf %107, %108 : vector<1x128xf32>
    %110 = arith.mulf %107, %109 : vector<1x128xf32>
    %cst_35 = arith.constant 2.000000e+00 : f32
    %111 = vector.broadcast %cst_35 : f32 to vector<1x128xf32>
    %112 = arith.mulf %111, %107 : vector<1x128xf32>
    %cst_36 = arith.constant 2.000000e+00 : f32
    %113 = vector.broadcast %cst_36 : f32 to vector<1x128xf32>
    %114 = arith.addf %112, %113 : vector<1x128xf32>
    %cst_37 = arith.constant 2.000000e+00 : f32
    %115 = vector.broadcast %cst_37 : f32 to vector<1x128xf32>
    %116 = arith.mulf %115, %104 : vector<1x128xf32>
    %cst_38 = arith.constant 3.000000e+00 : f32
    %117 = vector.broadcast %cst_38 : f32 to vector<1x128xf32>
    %118 = arith.addf %116, %117 : vector<1x128xf32>
    %119 = arith.mulf %114, %118 : vector<1x128xf32>
    %120 = arith.divf %119, %110 : vector<1x128xf32>
    %cst_39 = arith.constant 4.000000e+00 : f32
    %121 = vector.broadcast %cst_39 : f32 to vector<1x128xf32>
    %122 = arith.addf %104, %121 : vector<1x128xf32>
    %123 = math.log %122 : vector<1x128xf32>
    %cst_40 = arith.constant 1.000000e+00 : f32
    %124 = vector.broadcast %cst_40 : f32 to vector<1x128xf32>
    %125 = arith.divf %124, %122 : vector<1x128xf32>
    %126 = arith.mulf %125, %125 : vector<1x128xf32>
    %cst_41 = arith.constant 5.000000e-01 : f32
    %127 = vector.broadcast %cst_41 : f32 to vector<1x128xf32>
    %128 = arith.mulf %127, %125 : vector<1x128xf32>
    %129 = arith.subf %123, %128 : vector<1x128xf32>
    %cst_42 = arith.constant 0.00833333377 : f32
    %130 = vector.broadcast %cst_42 : f32 to vector<1x128xf32>
    %131 = arith.mulf %126, %130 : vector<1x128xf32>
    %cst_43 = arith.constant 0.0833333358 : f32
    %132 = vector.broadcast %cst_43 : f32 to vector<1x128xf32>
    %133 = arith.subf %132, %131 : vector<1x128xf32>
    %134 = arith.mulf %126, %133 : vector<1x128xf32>
    %135 = arith.subf %129, %134 : vector<1x128xf32>
    %136 = arith.subf %135, %120 : vector<1x128xf32>
    %cst_44 = arith.constant 5.000000e-01 : f32
    %137 = vector.broadcast %cst_44 : f32 to vector<1x128xf32>
    %138 = arith.subf %122, %137 : vector<1x128xf32>
    %139 = arith.mulf %138, %123 : vector<1x128xf32>
    %140 = arith.subf %139, %122 : vector<1x128xf32>
    %cst_45 = arith.constant 0.918938517 : f32
    %141 = vector.broadcast %cst_45 : f32 to vector<1x128xf32>
    %142 = arith.addf %140, %141 : vector<1x128xf32>
    %cst_46 = arith.constant 7.93650805E-4 : f32
    %143 = vector.broadcast %cst_46 : f32 to vector<1x128xf32>
    %144 = arith.mulf %126, %143 : vector<1x128xf32>
    %cst_47 = arith.constant 0.00277777785 : f32
    %145 = vector.broadcast %cst_47 : f32 to vector<1x128xf32>
    %146 = arith.subf %145, %144 : vector<1x128xf32>
    %147 = arith.mulf %126, %146 : vector<1x128xf32>
    %cst_48 = arith.constant 0.0833333358 : f32
    %148 = vector.broadcast %cst_48 : f32 to vector<1x128xf32>
    %149 = arith.subf %148, %147 : vector<1x128xf32>
    %150 = arith.mulf %125, %149 : vector<1x128xf32>
    %151 = arith.addf %142, %150 : vector<1x128xf32>
    %152 = math.log %110 : vector<1x128xf32>
    %153 = arith.subf %151, %152 : vector<1x128xf32>
    %cst_49 = arith.constant 1.000000e-07 : f32
    %154 = vector.broadcast %cst_49 : f32 to vector<1x128xf32>
    %155 = arith.addf %97, %154 : vector<1x128xf32>
    %cst_50 = arith.constant 3.000000e+00 : f32
    %156 = vector.broadcast %cst_50 : f32 to vector<1x128xf32>
    %157 = arith.addf %155, %156 : vector<1x128xf32>
    %158 = arith.mulf %155, %157 : vector<1x128xf32>
    %cst_51 = arith.constant 2.000000e+00 : f32
    %159 = vector.broadcast %cst_51 : f32 to vector<1x128xf32>
    %160 = arith.addf %158, %159 : vector<1x128xf32>
    %161 = arith.mulf %158, %160 : vector<1x128xf32>
    %cst_52 = arith.constant 2.000000e+00 : f32
    %162 = vector.broadcast %cst_52 : f32 to vector<1x128xf32>
    %163 = arith.mulf %162, %158 : vector<1x128xf32>
    %cst_53 = arith.constant 2.000000e+00 : f32
    %164 = vector.broadcast %cst_53 : f32 to vector<1x128xf32>
    %165 = arith.addf %163, %164 : vector<1x128xf32>
    %cst_54 = arith.constant 2.000000e+00 : f32
    %166 = vector.broadcast %cst_54 : f32 to vector<1x128xf32>
    %167 = arith.mulf %166, %155 : vector<1x128xf32>
    %cst_55 = arith.constant 3.000000e+00 : f32
    %168 = vector.broadcast %cst_55 : f32 to vector<1x128xf32>
    %169 = arith.addf %167, %168 : vector<1x128xf32>
    %170 = arith.mulf %165, %169 : vector<1x128xf32>
    %171 = arith.divf %170, %161 : vector<1x128xf32>
    %cst_56 = arith.constant 4.000000e+00 : f32
    %172 = vector.broadcast %cst_56 : f32 to vector<1x128xf32>
    %173 = arith.addf %155, %172 : vector<1x128xf32>
    %174 = math.log %173 : vector<1x128xf32>
    %cst_57 = arith.constant 1.000000e+00 : f32
    %175 = vector.broadcast %cst_57 : f32 to vector<1x128xf32>
    %176 = arith.divf %175, %173 : vector<1x128xf32>
    %177 = arith.mulf %176, %176 : vector<1x128xf32>
    %cst_58 = arith.constant 5.000000e-01 : f32
    %178 = vector.broadcast %cst_58 : f32 to vector<1x128xf32>
    %179 = arith.mulf %178, %176 : vector<1x128xf32>
    %180 = arith.subf %174, %179 : vector<1x128xf32>
    %cst_59 = arith.constant 0.00833333377 : f32
    %181 = vector.broadcast %cst_59 : f32 to vector<1x128xf32>
    %182 = arith.mulf %177, %181 : vector<1x128xf32>
    %cst_60 = arith.constant 0.0833333358 : f32
    %183 = vector.broadcast %cst_60 : f32 to vector<1x128xf32>
    %184 = arith.subf %183, %182 : vector<1x128xf32>
    %185 = arith.mulf %177, %184 : vector<1x128xf32>
    %186 = arith.subf %180, %185 : vector<1x128xf32>
    %187 = arith.subf %186, %171 : vector<1x128xf32>
    %cst_61 = arith.constant 5.000000e-01 : f32
    %188 = vector.broadcast %cst_61 : f32 to vector<1x128xf32>
    %189 = arith.subf %173, %188 : vector<1x128xf32>
    %190 = arith.mulf %189, %174 : vector<1x128xf32>
    %191 = arith.subf %190, %173 : vector<1x128xf32>
    %cst_62 = arith.constant 0.918938517 : f32
    %192 = vector.broadcast %cst_62 : f32 to vector<1x128xf32>
    %193 = arith.addf %191, %192 : vector<1x128xf32>
    %cst_63 = arith.constant 7.93650805E-4 : f32
    %194 = vector.broadcast %cst_63 : f32 to vector<1x128xf32>
    %195 = arith.mulf %177, %194 : vector<1x128xf32>
    %cst_64 = arith.constant 0.00277777785 : f32
    %196 = vector.broadcast %cst_64 : f32 to vector<1x128xf32>
    %197 = arith.subf %196, %195 : vector<1x128xf32>
    %198 = arith.mulf %177, %197 : vector<1x128xf32>
    %cst_65 = arith.constant 0.0833333358 : f32
    %199 = vector.broadcast %cst_65 : f32 to vector<1x128xf32>
    %200 = arith.subf %199, %198 : vector<1x128xf32>
    %201 = arith.mulf %176, %200 : vector<1x128xf32>
    %202 = arith.addf %193, %201 : vector<1x128xf32>
    %203 = math.log %161 : vector<1x128xf32>
    %204 = arith.subf %202, %203 : vector<1x128xf32>
    %cst_66 = arith.constant 1.000000e+00 : f32
    %205 = vector.broadcast %cst_66 : f32 to vector<1x128xf32>
    %206 = arith.subf %97, %205 : vector<1x128xf32>
    %207 = arith.mulf %206, %187 : vector<1x128xf32>
    %208 = arith.subf %207, %204 : vector<1x128xf32>
    %cst_67 = arith.constant 4.000000e+00 : f32
    %209 = vector.broadcast %cst_67 : f32 to vector<1x128xf32>
    %210 = arith.subf %104, %209 : vector<1x128xf32>
    %211 = arith.mulf %136, %210 : vector<1x128xf32>
    %212 = arith.subf %153, %211 : vector<1x128xf32>
    %213 = arith.subf %212, %208 : vector<1x128xf32>
    %214 = arith.mulf %213, %25 : vector<1x128xf32>
    %215 = vector.shape_cast %101 : vector<1x128xf32> to vector<1x1x128xf32>
    %cst_68 = arith.constant dense<0.000000e+00> : vector<1xf32>
    %216 = vector.multi_reduction <add>, %215, %cst_68 [1, 2] : vector<1x1x128xf32> to vector<1xf32>
    %217 = vector.shape_cast %216 : vector<1xf32> to vector<1x1x1xf32>
    %218 = vector.extract %217[0, 0, 0] : f32 from vector<1x1x1xf32>
    %219 = vector.shape_cast %214 : vector<1x128xf32> to vector<1x1x128xf32>
    %cst_69 = arith.constant dense<0.000000e+00> : vector<1xf32>
    %220 = vector.multi_reduction <add>, %219, %cst_69 [1, 2] : vector<1x1x128xf32> to vector<1xf32>
    %221 = vector.shape_cast %220 : vector<1xf32> to vector<1x1x1xf32>
    %222 = vector.extract %221[0, 0, 0] : f32 from vector<1x1x1xf32>
    %223 = arith.addf %90, %222 : f32
    %224 = vector.broadcast %218 : f32 to vector<1x128xf32>
    %225 = vector.broadcast %223 : f32 to vector<1x128xf32>
    %226 = tpu.concatenate %224, %225 in 0 : vector<1x128xf32>, vector<1x128xf32> -> vector<2x128xf32>
    %227 = vector.shape_cast %226 : vector<2x128xf32> to vector<1x2x128xf32>
    %c0_70 = arith.constant 0 : index
    %c0_71 = arith.constant 0 : index
    %c0_72 = arith.constant 0 : index
    %228 = vector.load %arg5[%c0_70, %c0_71, %c0_72] : memref<1x2x128xf32, #tpu.memory_space<vmem>>, vector<1x2x128xf32>
    tpu.vector_store %arg5[%c0_70, %c0_71, %c0_72], %227 {strides = array<i32>} : memref<1x2x128xf32, #tpu.memory_space<vmem>>, vector<1x2x128xf32>,
    return
  }
  func.func @transform_0(%arg0: i32) -> (i32, i32) {
    %c0_i32 = arith.constant 0 : i32
    %c0_i32_0 = arith.constant 0 : i32
    %c0_i32_1 = arith.constant 0 : i32
    return %c0_i32, %c0_i32_0 : i32, i32
  }
  func.func @transform_1(%arg0: i32) -> (i32, i32) {
    %c0_i32 = arith.constant 0 : i32
    %c0_i32_0 = arith.constant 0 : i32
    %c0_i32_1 = arith.constant 0 : i32
    return %c0_i32, %c0_i32_0 : i32, i32
  }
  func.func @transform_2(%arg0: i32) -> (i32, i32) {
    %c0_i32 = arith.constant 0 : i32
    %c0_i32_0 = arith.constant 0 : i32
    return %arg0, %c0_i32 : i32, i32
  }
  func.func @transform_3(%arg0: i32) -> (i32, i32) {
    %c0_i32 = arith.constant 0 : i32
    %c0_i32_0 = arith.constant 0 : i32
    return %arg0, %c0_i32 : i32, i32
  }
  func.func @transform_4(%arg0: i32) -> (i32, i32, i32) {
    %c0_i32 = arith.constant 0 : i32
    %c0_i32_0 = arith.constant 0 : i32
    %c0_i32_1 = arith.constant 0 : i32
    return %arg0, %c0_i32, %c0_i32_0 : i32, i32, i32
  }
}

</mosaic_0001>

<bundles_post_ra>
// kernel: tpu_custom_call.1
= control target key start
LH: loop header
LB: loop body
LE: loop exit
PB: predicated region body
PF: predicated region fallthrough
CT: control target
= control target key end

     0   :  { %9 = vsyncpa [#allocation3], 0  ;;  %s10396_s0 = inlined_call_operand.hbm [shape: f32[512,128], index: 0, kind: input, shape index: {}]   ;;  %s10397_s1 = inlined_call_operand.hbm [shape: f32[1,512], index: 1, kind: input, shape index: {}]   ;;  %s10398_s2 = inlined_call_operand.vmem [shape: f32[1,512], index: 2, kind: input, shape index: {}]   ;;  %s10399_s3 = inlined_call_operand.vmem [shape: f32[1,128], index: 3, kind: input, shape index: {}]   ;;  %s10400_s4 = inlined_call_operand.hbm [shape: f32[1,2,128], index: 4, kind: output, shape index: {}]  }
   0x1   :  { %10 = vsyncpa [#allocation6], 0 }
   0x2   :  { %11 = vsyncpa [#allocation4], 0  ;;  %s8245_s15 = smov [#allocation2]   ;;  %s8173_s19 = scalar_lea.hbm %s10396_s0, 8192 }
   0x3   :  { %s17_s16 = sshll.u32 %s8245_s15, 4  ;;  %p8174_p0 = scmp.ne.s32.totalorder %s10396_s0, %s8173_s19  ;;  %s18_s16 = int_to_ptr.vmem [resolvable:$true] %s17_s16 }
   0x4   :  { %p8177_p1 = scmp.lt.u32.totalorder %s8173_s19, %s10396_s0 }
   0x6   :  { %p8179_p2 = pnand %p8177_p1, %p8174_p0 }
   0x8   :  { %8182 = shalt.err (!%p8179_p2)
}
   0x9   :  { %s8183_s24 = scalar_lea.vmem %s18_s16, 8192  ;;  %p8188_p4 = scmp.lt.s32.totalorder %s18_s16, %s18_s16 }
   0xa   :  { %p8184_p3 = scmp.ne.s32.totalorder %s18_s16, %s8183_s24  ;;  %p8189_p5 = scmp.lt.s32.totalorder %s8183_s24, %s8183_s24 }
   0xc   :  { %p8190_p6 = por %p8189_p5, %p8188_p4 }
   0xe   :  { %p8191_p7 = pnand %p8190_p6, %p8184_p3 }
  0x10   :  { %8194 = shalt.err (!%p8191_p7)
}
  0x11   :  { %s8246_s25 = smov 128   ;;  %s8247_s26 = smov 8  }
  0x12   :  { %23 = dma.hbm_to_vmem [thread:$0]  %s10396_s0, 8192, %s18_s16, [#allocation3], %s8246_s25, %s8246_s25, %s8247_s26  }
  0x13   :  { %s8248_s29 = smov [#allocation5]   ;;  %s8195_s7 = scalar_lea.hbm %s10397_s1, 64 }
  0x14   :  { %s30_s30 = sshll.u32 %s8248_s29, 4  ;;  %p8196_p8 = scmp.ne.s32.totalorder %s10397_s1, %s8195_s7  ;;  %s31_s30 = int_to_ptr.vmem [resolvable:$true] %s30_s30 }
  0x15   :  { %p8199_p9 = scmp.lt.u32.totalorder %s8195_s7, %s10397_s1 }
  0x17   :  { %p8201_p10 = pnand %p8199_p9, %p8196_p8 }
  0x19   :  { %8204 = shalt.err (!%p8201_p10)
}
  0x1a   :  { %s8205_s12 = scalar_lea.vmem %s31_s30, 64  ;;  %p8210_p12 = scmp.lt.s32.totalorder %s31_s30, %s31_s30 }
  0x1b   :  { %p8206_p11 = scmp.ne.s32.totalorder %s31_s30, %s8205_s12  ;;  %p8211_p13 = scmp.lt.s32.totalorder %s8205_s12, %s8205_s12 }
  0x1d   :  { %p8212_p0 = por %p8211_p13, %p8210_p12 }
  0x1f   :  { %p8213_p1 = pnand %p8212_p0, %p8206_p11 }
  0x21   :  { %8216 = shalt.err (!%p8213_p1)
}
  0x22   :  { %33 = dma.hbm_to_vmem [thread:$0]  %s10397_s1, 64, %s31_s30, [#allocation6]  }
  0x23   :  { %8239 = dma.done.wait [#allocation3], 8192  }
  0x24   :  { %8240 = vsyncadd [#allocation3], 4294959104 }
  0x25   :  { %8241 = dma.done.wait [#allocation6], 64  }
  0x26   :  { %8242 = vsyncadd [#allocation6], 4294967232  ;;  %v111_v0 = vlaneseq  ;;  %v62_v5 = vld [vmem:[#allocation2 + $0x80] sm:$0xff]  ;;  %v63_v6 = vld [vmem:[#allocation2 + $0x88] sm:$0xff]  ;;  %vm328_vm9 = vcmask 1040384   ;;  %s8250_s18 = smov [#allocation7]  }
  0x27   :  { %v46_v7 = vld [vmem:[#allocation2] sm:$0xff]  ;;  %v394_v10 = vand.u32 4294901760, %v62_v5  ;;  %v397_v11 = vand.u32 4294901760, %v63_v6  ;;  %v47_v12 = vld [vmem:[#allocation2 + $0x8] sm:$0xff]  ;;  %v64_v14 = vld [vmem:[#allocation2 + $0x90] sm:$0xff]  ;;  %s5662_s19 = sshll.u32 %s8250_s18, 4  ;;  %s5663_s19 = int_to_ptr.vmem [resolvable:$true] %s5662_s19 }
  0x28   :  { %v8300_v1 = vshrl.u32 %v111_v0, 7  ;;  %v8302_v2 = vand.u32 127, %v111_v0  ;;  %v346_v13 = vand.u32 4294901760, %v46_v7  ;;  %v65_v15 = vld [vmem:[#allocation2 + $0x98] sm:$0xff]  ;;  %v349_v17 = vand.u32 4294901760, %v47_v12  ;;  %v48_v20 = vld [vmem:[#allocation2 + $0x10] sm:$0xff]  ;;  %p8222_p3 = scmp.lt.s32.totalorder %s5663_s19, %s5663_s19 }
  0x29   :  { %v400_v18 = vand.u32 4294901760, %v64_v14  ;;  %v403_v19 = vand.u32 4294901760, %v65_v15  ;;  %v49_v21 = vld [vmem:[#allocation2 + $0x18] sm:$0xff]  ;;  %v8313_v22 = vld [vmem:[#allocation2 + $0xa0] sm:$0xff]  ;;  %v8319_v24 = vpack.c.bf16 %v397_v11, %v394_v10  ;;  %v352_v25 = vand.u32 4294901760, %v48_v20  ;;  %v8321_v27 = vld [vmem:[#allocation2 + $0xa8] sm:$0xff] }
  0x2a   :  { %10720 = vst [vmem:[#allocation11_spill] sm:$0xff] %v8300_v1  ;;  %10721 = vst [vmem:[#allocation12_spill] sm:$0xff] %v8302_v2  ;;  %v115_v3 = vadd.s32 128, %v8302_v2  ;;  %v8306_v4 = vmul.u32 512, %v8300_v1  ;;  %v355_v26 = vand.u32 4294901760, %v49_v21  ;;  %v406_v28 = vand.u32 4294901760, %v8313_v22 }
  0x2b   :  { %10725 = vst [vmem:[#allocation16_spill] sm:$0xff] %v8319_v24  ;;  %v8324_v29 = vld [vmem:[#allocation2 + $0x20] sm:$0xff]  ;;  %v8326_v30 = vld [vmem:[#allocation2 + $0x28] sm:$0xff]  ;;  %v8328_v31 = vpack.c.bf16 %v349_v17, %v346_v13  ;;  %v8330_v32 = vpack.c.bf16 %v403_v19, %v400_v18  ;;  %v409_v33 = vand.u32 4294901760, %v8321_v27  ;;  %v8333_v34 = vsub.f32 %v62_v5, %v394_v10  ;;  %v8335_v35 = vld [vmem:[#allocation2 + $0xb0] sm:$0xff]  ;;  %6938 = vmatprep.subr.bf16.mxu0 %v8319_v24  ;;  %s8217_s21 = scalar_lea.vmem %s5663_s19, 32 }
  0x2c   :  { %10722 = vst [vmem:[#allocation13_spill] sm:$0xff] %v8306_v4  ;;  %v8311_v16 = vadd.s32 %v8306_v4, %v115_v3  ;;  %v8317_v23 = vadd.s32 %v8306_v4, %v8302_v2  ;;  %v8337_v36 = vld [vmem:[#allocation2 + $0xb8] sm:$0xff]  ;;  %v8340_v37 = vpack.c.bf16 %v355_v26, %v352_v25  ;;  %v8342_v38 = vsub.f32 %v63_v6, %v397_v11  ;;  %v8358_v45 = vld [vmem:[#allocation2 + $0x30] sm:$0xff]  ;;  %v8404_v6 = vld [vmem:[#allocation2 + $0xc0] sm:$0xff]  ;;  %p8218_p2 = scmp.ne.s32.totalorder %s5663_s19, %s8217_s21  ;;  %p8223_p4 = scmp.lt.s32.totalorder %s8217_s21, %s8217_s21 }
  0x2d   :  { %10726 = vst [vmem:[#allocation17_spill] sm:$0xff] %v8328_v31  ;;  %10727 = vst [vmem:[#allocation18_spill] sm:$0xff] %v8330_v32  ;;  %v358_v39 = vand.u32 4294901760, %v8324_v29  ;;  %v361_v40 = vand.u32 4294901760, %v8326_v30  ;;  %6940 = vmatpush3.bf16.msra.mxu0 %v8328_v31  ;;  %v8351_v41 = vpack.c.bf16 %v409_v33, %v406_v28  ;;  %v10409_v42 = vand.u32 4294901760, %v8333_v34  ;;  %v8377_v54 = vld [vmem:[#allocation2 + $0x38] sm:$0xff] }
  0x2e   :  { %10723 = vst [vmem:[#allocation14_spill] sm:$0xff] %v8311_v16  ;;  %10724 = vst [vmem:[#allocation15_spill] sm:$0xff] %v8317_v23  ;;  %v8354_v43 = vsub.f32 %v46_v7, %v346_v13  ;;  %v8356_v44 = vsub.f32 %v47_v12, %v349_v17  ;;  %6942 = vmatprep.subr.bf16.mxu0 %v8330_v32  ;;  %v10407_v46 = vand.u32 4294901760, %v8342_v38  ;;  %v412_v48 = vand.u32 4294901760, %v8335_v35  ;;  %v8411_v13 = vld [vmem:[#allocation2 + $0xc8] sm:$0xff]  ;;  %p8224_p5 = por %p8223_p4, %p8222_p3 }
  0x2f   :  { %10728 = vst [vmem:[#allocation19_spill] sm:$0xff] %v8340_v37  ;;  %10729 = vst [vmem:[#allocation20_spill] sm:$0xff] %v8351_v41  ;;  %v8366_v47 = vpack.c.bf16 %v361_v40, %v358_v39  ;;  %v415_v49 = vand.u32 4294901760, %v8337_v36  ;;  %v573_v50 = vsub.f32 %v8333_v34, %v10409_v42  ;;  %v8375_v53 = vsub.f32 %v64_v14, %v400_v18  ;;  %v8541_v8 = vld [vmem:[#allocation2 + $0xe8] sm:$0xff] }
  0x30   :  { %v10406_v51 = vand.u32 4294901760, %v8354_v43  ;;  %v10405_v52 = vand.u32 4294901760, %v8356_v44  ;;  %v580_v55 = vsub.f32 %v8342_v38, %v10407_v46  ;;  %v8388_v57 = vsub.f32 %v65_v15, %v403_v19  ;;  %v8425_v19 = vld [vmem:[#allocation2 + $0x40] sm:$0xff]  ;;  %p8225_p6 = pnand %p8224_p5, %p8218_p2 }
  0x31   :  { %10730 = vst [vmem:[#allocation21_spill] sm:$0xff] %v8366_v47  ;;  %v8386_v56 = vpack.c.bf16 %v415_v49, %v412_v48  ;;  %v364_v58 = vand.u32 4294901760, %v8358_v45  ;;  %6944 = vmatpush3.bf16.msra.mxu0 %v8340_v37  ;;  %v574_v59 = vand.u32 4294901760, %v573_v50  ;;  %v10404_v62 = vand.u32 4294901760, %v8375_v53 }
  0x32   :  { %v461_v60 = vsub.f32 %v8354_v43, %v10406_v51  ;;  %v468_v61 = vsub.f32 %v8356_v44, %v10405_v52  ;;  %6946 = vmatprep.subr.bf16.mxu0 %v8351_v41  ;;  %v581_v63 = vand.u32 4294901760, %v580_v55  ;;  %v10403_v0 = vand.u32 4294901760, %v8388_v57  ;;  %v8494_v51 = vld [vmem:[#allocation2 + $0x50] sm:$0xff] }
  0x33   :  { %10731 = vst [vmem:[#allocation22_spill] sm:$0xff] %v8386_v56  ;;  %v367_v3 = vand.u32 4294901760, %v8377_v54  ;;  %v8402_v5 = vsub.f32 %v48_v20, %v352_v25  ;;  %v587_v11 = vsub.f32 %v8375_v53, %v10404_v62  ;;  %v8409_v12 = vsub.f32 %v49_v21, %v355_v26  ;;  %v8427_v20 = vld [vmem:[#allocation2 + $0x48] sm:$0xff] }
  0x34   :  { %v462_v7 = vand.u32 4294901760, %v461_v60  ;;  %v469_v10 = vand.u32 4294901760, %v468_v61  ;;  %v8413_v14 = vpack.c.bf16 %v581_v63, %v574_v59  ;;  %v594_v15 = vsub.f32 %v8388_v57, %v10403_v0 }
  0x35   :  { %v8422_v17 = vpack.c.bf16 %v367_v3, %v364_v58  ;;  %v10401_v18 = vand.u32 4294901760, %v8402_v5  ;;  %6948 = vmatpush3.bf16.msra.mxu0 %v8366_v47  ;;  %v588_v25 = vand.u32 4294901760, %v587_v11  ;;  %v10402_v26 = vand.u32 4294901760, %v8409_v12 }
  0x36   :  { %10732 = vst [vmem:[#allocation23_spill] sm:$0xff] %v8413_v14  ;;  %v8430_v21 = vpack.c.bf16 %v469_v10, %v462_v7  ;;  %v418_v50 = vand.u32 4294901760, %v8404_v6  ;;  %6970 = vmatprep.subr.bf16.mxu1 %v8413_v14  ;;  %6950 = vmatprep.subr.bf16.mxu0 %v8386_v56  ;;  %v595_v55 = vand.u32 4294901760, %v594_v15  ;;  %v10419_v60 = vand.u32 4294901760, %v8411_v13  ;;  %v8456_v15 = vld [vmem:[#allocation2 + $0xd0] sm:$0xff] }
  0x37   :  { %10733 = vst [vmem:[#allocation24_spill] sm:$0xff] %v8422_v17  ;;  %v475_v59 = vsub.f32 %v8402_v5, %v10401_v18  ;;  %v8443_v61 = vsub.f32 %v8313_v22, %v406_v28  ;;  %v482_v63 = vsub.f32 %v8409_v12, %v10402_v26  ;;  %v8452_v7 = vsub.f32 %v8321_v27, %v409_v33  ;;  %v8458_v18 = vld [vmem:[#allocation2 + $0xd8] sm:$0xff] }
  0x38   :  { %10734 = vst [vmem:[#allocation25_spill] sm:$0xff] %v8430_v21  ;;  %6972 = vmatpush3.bf16.msra.mxu1 %v8430_v21  ;;  %v10416_v10 = vand.u32 4294901760, %v8425_v19  ;;  %v10415_v11 = vand.u32 4294901760, %v8427_v20  ;;  %v8460_v22 = vpack.c.bf16 %v595_v55, %v588_v25  ;;  %v8466_v26 = vpack.c.bf16 %v10419_v60, %v418_v50  ;;  %v8639_v21 = vld [vmem:[#allocation2 + $0x78] sm:$0xff] }
  0x39   :  { %v476_v28 = vand.u32 4294901760, %v475_v59  ;;  %v10408_v27 = vand.u32 4294901760, %v8443_v61  ;;  %6952 = vmatpush3.bf16.msra.mxu0 %v8422_v17  ;;  %v483_v33 = vand.u32 4294901760, %v482_v63  ;;  %v10410_v0 = vand.u32 4294901760, %v8452_v7 }
  0x3a   :  { %10735 = vst [vmem:[#allocation26_spill] sm:$0xff] %v8460_v22  ;;  %10736 = vst [vmem:[#allocation27_spill] sm:$0xff] %v8466_v26  ;;  %v8475_v25 = vpack.c.bf16 %v10415_v11, %v10416_v10  ;;  %v8480_v55 = vsub.f32 %v8324_v29, %v358_v39  ;;  %6974 = vmatprep.subr.bf16.mxu1 %v8460_v22  ;;  %6954 = vmatprep.subr.bf16.mxu0 %v8466_v26  ;;  %v10413_v62 = vand.u32 4294901760, %v8456_v15 }
  0x3b   :  { %v601_v59 = vsub.f32 %v8443_v61, %v10408_v27  ;;  %v8490_v63 = vsub.f32 %v8326_v30, %v361_v40  ;;  %v10412_v52 = vand.u32 4294901760, %v8458_v18  ;;  %v8496_v29 = vpack.c.bf16 %v483_v33, %v476_v28  ;;  %v8507_v30 = vld [vmem:[#allocation2 + $0x58] sm:$0xff] }
  0x3c   :  { %10737 = vst [vmem:[#allocation28_spill] sm:$0xff] %v8475_v25  ;;  %v608_v39 = vsub.f32 %v8452_v7, %v10410_v0  ;;  %v10411_v46 = vand.u32 4294901760, %v8480_v55  ;;  %v8505_v27 = vsub.f32 %v8335_v35, %v412_v48  ;;  %v8519_v33 = vsub.f32 %v8337_v36, %v415_v49 }
  0x3d   :  { %10738 = vst [vmem:[#allocation29_spill] sm:$0xff] %v8496_v29  ;;  %v602_v40 = vand.u32 4294901760, %v601_v59  ;;  %v10414_v42 = vand.u32 4294901760, %v8490_v63  ;;  %v8514_v28 = vpack.c.bf16 %v10412_v52, %v10413_v62  ;;  %6976 = vmatpush3.bf16.msra.mxu1 %v8496_v29  ;;  %6956 = vmatpush3.bf16.msra.mxu0 %v8475_v25  ;;  %v10421_v0 = vand.u32 4294901760, %v8494_v51 }
  0x3e   :  { %v609_v35 = vand.u32 4294901760, %v608_v39  ;;  %v489_v48 = vsub.f32 %v8480_v55, %v10411_v46  ;;  %v10418_v59 = vand.u32 4294901760, %v8505_v27  ;;  %v10417_v36 = vand.u32 4294901760, %v8519_v33  ;;  %v8539_v46 = vld [vmem:[#allocation2 + $0xe0] sm:$0xff] }
  0x3f   :  { %10739 = vst [vmem:[#allocation30_spill] sm:$0xff] %v8514_v28  ;;  %v496_v9 = vsub.f32 %v8490_v63, %v10414_v42  ;;  %6958 = vmatprep.subr.bf16.mxu0 %v8514_v28  ;;  %v10420_v49 = vand.u32 4294901760, %v8507_v30  ;;  %v8537_v39 = vsub.f32 %v8358_v45, %v364_v58  ;;  %v8551_v11 = vsub.f32 %v8377_v54, %v367_v3 }
  0x40   :  { %v8543_v52 = vpack.c.bf16 %v609_v35, %v602_v40  ;;  %v490_v62 = vand.u32 4294901760, %v489_v48  ;;  %v615_v42 = vsub.f32 %v8505_v27, %v10418_v59  ;;  %v622_v45 = vsub.f32 %v8519_v33, %v10417_v36  ;;  %v8563_v35 = vld [vmem:[#allocation2 + $0x60] sm:$0xff]  ;;  %v8569_v36 = vld [vmem:[#allocation2 + $0x68] sm:$0xff] }
  0x41   :  { %v497_v10 = vand.u32 4294901760, %v496_v9  ;;  %v8560_v58 = vpack.c.bf16 %v10420_v49, %v10421_v0  ;;  %v10422_v40 = vand.u32 4294901760, %v8537_v39  ;;  %v10425_v54 = vand.u32 4294901760, %v8551_v11 }
  0x42   :  { %10740 = vst [vmem:[#allocation31_spill] sm:$0xff] %v8543_v52  ;;  %6978 = vmatprep.subr.bf16.mxu1 %v8543_v52  ;;  %v616_v48 = vand.u32 4294901760, %v615_v42  ;;  %v10429_v9 = vand.u32 4294901760, %v8539_v46  ;;  %v10428_v3 = vand.u32 4294901760, %v8541_v8  ;;  %v623_v60 = vand.u32 4294901760, %v622_v45  ;;  %v8597_v52 = vld [vmem:[#allocation2 + $0xf0] sm:$0xff] }
  0x43   :  { %10741 = vst [vmem:[#allocation32_spill] sm:$0xff] %v8560_v58  ;;  %v8571_v59 = vpack.c.bf16 %v497_v10, %v490_v62  ;;  %6960 = vmatpush3.bf16.msra.mxu0 %v8560_v58  ;;  %v503_v49 = vsub.f32 %v8537_v39, %v10422_v40  ;;  %v8580_v42 = vsub.f32 %v8404_v6, %v418_v50  ;;  %v10744_v10 = vand.u32 4294901760, %v8411_v13  ;;  %v8599_v6 = vld [vmem:[#allocation2 + $0xf8] sm:$0xff] }
  0x44   :  { %v510_v0 = vsub.f32 %v8551_v11, %v10425_v54  ;;  %v8589_v62 = vpack.c.bf16 %v10428_v3, %v10429_v9  ;;  %v8602_v50 = vpack.c.bf16 %v623_v60, %v616_v48  ;;  %v10439_v3 = vand.u32 4294901760, %v8569_v36 }
  0x45   :  { %10742 = vst [vmem:[#allocation33_spill] sm:$0xff] %v8571_v59  ;;  %v8594_v45 = vsub.f32 %v8411_v13, %v10744_v10  ;;  %6980 = vmatpush3.bf16.msra.mxu1 %v8571_v59  ;;  %v504_v54 = vand.u32 4294901760, %v503_v49  ;;  %v10434_v29 = vand.u32 4294901760, %v8580_v42  ;;  %v10746_v10 = vand.u32 4294901760, %v8425_v19  ;;  %v8630_v13 = vld [vmem:[#allocation2 + $0x70] sm:$0xff] }
  0x46   :  { %10743 = vst [vmem:[#allocation34_spill] sm:$0xff] %v8589_v62  ;;  %10745 = vst [vmem:[#allocation35_spill] sm:$0xff] %v8602_v50  ;;  %v511_v9 = vand.u32 4294901760, %v510_v0  ;;  %6962 = vmatprep.subr.bf16.mxu0 %v8589_v62  ;;  %v10747_v22 = vand.u32 4294901760, %v8427_v20  ;;  %6982 = vmatprep.subr.bf16.mxu1 %v8602_v50  ;;  %v10748_v49 = vand.u32 4294901760, %v8563_v35  ;;  %vm126_vm0 = vcmp.lt.s32.totalorder %v8311_v16, 32 }
  0x47   :  { %v8611_v40 = vsub.f32 %v8425_v19, %v10746_v10  ;;  %v629_v0 = vsub.f32 %v8580_v42, %v10434_v29  ;;  %v10443_v19 = vand.u32 4294901760, %v8597_v52  ;;  %v10442_v10 = vand.u32 4294901760, %v8599_v6 }
  0x48   :  { %v8616_v60 = vsub.f32 %v8427_v20, %v10747_v22  ;;  %v8626_v48 = vpack.c.bf16 %v10439_v3, %v10748_v49  ;;  %v8632_v20 = vpack.c.bf16 %v511_v9, %v504_v54  ;;  %v10751_v22 = vand.u32 4294901760, %v8594_v45 }
  0x49   :  { %v10446_v29 = vand.u32 4294901760, %v8611_v40  ;;  %v630_v49 = vand.u32 4294901760, %v629_v0  ;;  %v8646_v3 = vpack.c.bf16 %v10442_v10, %v10443_v19  ;;  %v10753_v54 = vand.u32 4294901760, %v8456_v15 }
  0x4a   :  { %10749 = vst [vmem:[#allocation36_spill] sm:$0xff] %v8626_v48  ;;  %10750 = vst [vmem:[#allocation37_spill] sm:$0xff] %v8632_v20  ;;  %v636_v50 = vsub.f32 %v8594_v45, %v10751_v22  ;;  %6964 = vmatpush3.bf16.msra.mxu0 %v8626_v48  ;;  %v10754_v22 = vand.u32 4294901760, %v8458_v18  ;;  %6984 = vmatpush3.bf16.msra.mxu1 %v8632_v20  ;;  %v10755_v10 = vand.u32 4294901760, %v8616_v60  ;;  %vm125_vm1 = vcmp.lt.s32.totalorder %v8317_v23, 32 }
  0x4b   :  { %10752 = vst [vmem:[#allocation38_spill] sm:$0xff] %v8646_v3  ;;  %v8651_v9 = vsub.f32 %v8456_v15, %v10753_v54  ;;  %v517_v14 = vsub.f32 %v8611_v40, %v10446_v29  ;;  %6966 = vmatprep.subr.bf16.mxu0 %v8646_v3  ;;  %v8678_v29 = vld [vmem:[%s10398_s2] sm:$0xf]  ;;  %v10759_v15 = vand.u32 4294901760, %v8507_v30  ;;  %v10762_v3 = vand.u32 4294901760, %v8630_v13 }
  0x4c   :  { %v8656_v59 = vsub.f32 %v8458_v18, %v10754_v22  ;;  %v637_v0 = vand.u32 4294901760, %v636_v50  ;;  %v524_v19 = vsub.f32 %v8616_v60, %v10755_v10  ;;  %v10756_v50 = vand.u32 4294901760, %v8494_v51  ;;  %10757 = vst [vmem:[#allocation39_spill] sm:$0xff] %v8678_v29 }
  0x4d   :  { %v518_v4 = vand.u32 4294901760, %v517_v14  ;;  %v8685_v18 = vsub.f32 %v8507_v30, %v10759_v15  ;;  %v10760_v54 = vand.u32 4294901760, %v8651_v9  ;;  %v10766_v15 = vsub.s32 1, %v8300_v1 }
  0x4e   :  { %v8673_v22 = vsub.f32 %v8494_v51, %v10756_v50  ;;  %v8680_v10 = vpack.c.bf16 %v637_v0, %v630_v49  ;;  %v525_v20 = vand.u32 4294901760, %v524_v19  ;;  %v10761_v51 = vand.u32 4294901760, %v8656_v59 }
  0x4f   :  { %v643_v2 = vsub.f32 %v8651_v9, %v10760_v54  ;;  %v10763_v49 = vand.u32 4294901760, %v8639_v21  ;;  %v10460_v19 = vand.u32 4294901760, %v8685_v18  ;;  %v142_v54 = vrot.slane %v8678_v29, %v10766_v15 }
  0x50   :  { %10758 = vst [vmem:[#allocation40_spill] sm:$0xff] %v8680_v10  ;;  %v650_v50 = vsub.f32 %v8656_v59, %v10761_v51  ;;  %v10455_v14 = vand.u32 4294901760, %v8673_v22  ;;  %6986 = vmatprep.subr.bf16.mxu1 %v8680_v10  ;;  %v8701_v30 = vpack.c.bf16 %v525_v20, %v518_v4  ;;  %v10786_v62 = vand.u32 4294901760, %v8630_v13 }
  0x51   :  { %v8697_v0 = vpack.c.bf16 %v10763_v49, %v10762_v3  ;;  %v644_v51 = vand.u32 4294901760, %v643_v2  ;;  %v538_v4 = vsub.f32 %v8685_v18, %v10460_v19  ;;  %v8719_v20 = vsel %vm126_vm0, %v142_v54, 1.0 }
  0x52   :  { %10765 = vst [vmem:[#allocation42_spill] sm:$0xff] %v8701_v30  ;;  %v651_v48 = vand.u32 4294901760, %v650_v50  ;;  %v531_v3 = vsub.f32 %v8673_v22, %v10455_v14  ;;  %6988 = vmatpush3.bf16.msra.mxu1 %v8701_v30  ;;  %10767 = vst [vmem:[#allocation43_spill] sm:$0xff] %v8719_v20  ;;  %v10768_v2 = vsub.s32 0, %v8300_v1  ;;  %v10769_v49 = vand.u32 4294901760, %v8539_v46 }
  0x53   :  { %10764 = vst [vmem:[#allocation41_spill] sm:$0xff] %v8697_v0  ;;  %6968 = vmatpush3.bf16.msra.mxu0 %v8697_v0  ;;  %v8732_v10 = vand.u32 4294901760, %v8719_v20  ;;  %v539_v19 = vand.u32 4294901760, %v538_v4 }
  0x54   :  { %v138_v50 = vrot.slane %v8678_v29, %v10768_v2  ;;  %v8727_v15 = vsub.f32 %v8539_v46, %v10769_v49  ;;  %v8729_v14 = vpack.c.bf16 %v651_v48, %v644_v51  ;;  %v532_v30 = vand.u32 4294901760, %v531_v3 }
  0x55   :  { %10771 = vst [vmem:[#allocation45_spill] sm:$0xff] %v8732_v10  ;;  %v10773_v2 = vand.u32 4294901760, %v8541_v8  ;;  %v8747_v46 = vsub.f32 %v8719_v20, %v8732_v10  ;;  %v8754_v51 = vpack.c.bf16 %v8342_v38, %v8333_v34  ;;  %682 = vmatprep.mubr.f32.mxu1 %v8732_v10  ;;  %v10780_v20 = vand.u32 4294901760, %v8597_v52 }
  0x56   :  { %10770 = vst [vmem:[#allocation44_spill] sm:$0xff] %v8729_v14  ;;  %v8736_v54 = vsel %vm125_vm1, %v138_v50, 1.0  ;;  %v10465_v16 = vand.u32 4294901760, %v8727_v15  ;;  %6990 = vmatprep.subr.bf16.mxu1 %v8729_v14  ;;  %v8757_v3 = vpack.c.bf16 %v539_v19, %v532_v30  ;;  %v10776_v50 = vand.u32 4294901760, %v8563_v35 }
  0x57   :  { %10772 = vst [vmem:[#allocation46_spill] sm:$0xff] %v8736_v54  ;;  %v8742_v29 = vsub.f32 %v8541_v8, %v10773_v2  ;;  %v8750_v48 = vand.u32 4294901760, %v8736_v54  ;;  %10774 = vst [vmem:[#allocation47_spill] sm:$0xff] %v8754_v51  ;;  %7002 = vmatprep.subr.bf16.mxu0 %v8754_v51  ;;  %v10778_v30 = vand.u32 4294901760, %v8569_v36 }
  0x58   :  { %10775 = vst [vmem:[#allocation48_spill] sm:$0xff] %v8757_v3  ;;  %v657_v8 = vsub.f32 %v8727_v15, %v10465_v16  ;;  %v8766_v49 = vsub.f32 %v8563_v35, %v10776_v50  ;;  %v8781_v16 = vpack.c.bf16 %v8356_v44, %v8354_v43  ;;  %6992 = vmatpush3.bf16.msra.mxu1 %v8757_v3 }
  0x59   :  { %v10476_v4 = vand.u32 4294901760, %v8742_v29  ;;  %v8771_v23 = vsub.f32 %v8736_v54, %v8750_v48  ;;  %v8777_v19 = vsub.f32 %v8569_v36, %v10778_v30  ;;  %v8791_v54 = vsub.f32 %v8597_v52, %v10780_v20 }
  0x5a   :  { %10779 = vst [vmem:[#allocation50_spill] sm:$0xff] %v8781_v16  ;;  %v658_v35 = vand.u32 4294901760, %v657_v8  ;;  %v10481_v2 = vand.u32 4294901760, %v8766_v49  ;;  %v10781_v36 = vand.u32 4294901760, %v8747_v46  ;;  %v10782_v8 = vand.u32 4294901760, %v8599_v6 }
  0x5b   :  { %10777 = vst [vmem:[#allocation49_spill] sm:$0xff] %v8771_v23  ;;  %v664_v50 = vsub.f32 %v8742_v29, %v10476_v4  ;;  %v10486_v51 = vand.u32 4294901760, %v8771_v23  ;;  %v10489_v52 = vand.u32 4294901760, %v8791_v54  ;;  %v8809_v20 = vpack.c.bf16 %v8388_v57, %v8375_v53 }
  0x5c   :  { %v444_v30 = vsub.f32 %v8747_v46, %v10781_v36  ;;  %v8801_v14 = vsub.f32 %v8599_v6, %v10782_v8  ;;  %v545_v1 = vsub.f32 %v8766_v49, %v10481_v2  ;;  %v10784_v0 = vand.u32 4294901760, %v8777_v19 }
  0x5d   :  { %v665_v4 = vand.u32 4294901760, %v664_v50  ;;  %10783 = vst [vmem:[#allocation51_spill] sm:$0xff] %v8809_v20  ;;  %v450_v3 = vsub.f32 %v8771_v23, %v10486_v51  ;;  %v671_v10 = vsub.f32 %v8791_v54, %v10489_v52 }
  0x5e   :  { %v445_v36 = vand.u32 4294901760, %v444_v30  ;;  %v552_v6 = vsub.f32 %v8777_v19, %v10784_v0  ;;  %v10492_v50 = vand.u32 4294901760, %v8801_v14  ;;  %v546_v2 = vand.u32 4294901760, %v545_v1 }
  0x5f   :  { %v8818_v8 = vpack.c.bf16 %v665_v4, %v658_v35  ;;  %v8826_v30 = vsub.f32 %v8630_v13, %v10786_v62  ;;  %v451_v51 = vand.u32 4294901760, %v450_v3  ;;  %v10787_v4 = vand.u32 4294901760, %v8639_v21 }
  0x60   :  { %446 = vmatprep.mubr.f32.mxu0 %v445_v36  ;;  %v553_v23 = vand.u32 4294901760, %v552_v6  ;;  %v678_v0 = vsub.f32 %v8801_v14, %v10492_v50  ;;  %v672_v35 = vand.u32 4294901760, %v671_v10  ;;  %v10800_v50 = vand.u32 4294901760, %v8375_v53 }
  0x61   :  { %10785 = vst [vmem:[#allocation52_spill] sm:$0xff] %v8818_v8  ;;  %v8834_v1 = vsub.f32 %v8639_v21, %v10787_v4  ;;  %6994 = vmatprep.subr.bf16.mxu1 %v8818_v8  ;;  %v10491_v52 = vand.u32 4294901760, %v8826_v30  ;;  %452 = vmatmul.mubr.f32.vlgmr.msra.gmra.mrb[0].mxu0 %v451_v51  ;;  %v8847_v21 = vpack.c.bf16 %v8409_v12, %v8402_v5  ;;  %v10810_v53 = vand.u32 4294901760, %v8480_v55 }
  0x62   :  { %v8838_v62 = vpack.c.bf16 %v553_v23, %v546_v2  ;;  %v679_v13 = vand.u32 4294901760, %v678_v0  ;;  %7004 = vmatpush3.bf16.msra.mxu0 %v8781_v16  ;;  %v8858_v51 = vpack.c.bf16 %v8452_v7, %v8443_v61  ;;  %819 = vmatprep.mubr.f32.mxu0 %v8747_v46  ;;  %v8864_v0 = vpack.c.bf16 %v8490_v63, %v8480_v55 }
  0x63   :  { %v10490_v3 = vand.u32 4294901760, %v8834_v1  ;;  %v559_v36 = vsub.f32 %v8826_v30, %v10491_v52  ;;  %10789 = vst [vmem:[#allocation54_spill] sm:$0xff] %v8847_v21  ;;  %7006 = vmatprep.subr.bf16.mxu0 %v8809_v20  ;;  %v8868_v4 = vpack.c.bf16 %v8519_v33, %v8505_v27  ;;  %v10801_v20 = vand.u32 4294901760, %v8388_v57 }
  0x64   :  { %10788 = vst [vmem:[#allocation53_spill] sm:$0xff] %v8838_v62  ;;  %6996 = vmatpush3.bf16.msra.mxu1 %v8838_v62  ;;  %v8850_v10 = vpack.c.bf16 %v679_v13, %v672_v35  ;;  %10791 = vst [vmem:[#allocation56_spill] sm:$0xff] %v8858_v51  ;;  %v10794_v35 = vand.u32 4294901760, %v8333_v34  ;;  %v10795_v13 = vand.u32 4294901760, %v8342_v38  ;;  %v10804_v34 = vand.u32 4294901760, %v8409_v12 }
  0x65   :  { %v566_v23 = vsub.f32 %v8834_v1, %v10490_v3  ;;  %v560_v2 = vand.u32 4294901760, %v559_v36  ;;  %10792 = vst [vmem:[#allocation57_spill] sm:$0xff] %v8864_v0  ;;  %10793 = vst [vmem:[#allocation58_spill] sm:$0xff] %v8868_v4  ;;  %v10797_v3 = vand.u32 4294901760, %v8354_v43  ;;  %v8887_v16 = vpack.c.bf16 %v10801_v20, %v10800_v50 }
  0x66   :  { %10790 = vst [vmem:[#allocation55_spill] sm:$0xff] %v8850_v10  ;;  %6998 = vmatprep.subr.bf16.mxu1 %v8850_v10  ;;  %7008 = vmatpush3.bf16.msra.mxu0 %v8847_v21  ;;  %v8875_v36 = vpack.c.bf16 %v10795_v13, %v10794_v35  ;;  %v10803_v21 = vand.u32 4294901760, %v8402_v5  ;;  %v10807_v43 = vand.u32 4294901760, %v8443_v61  ;;  %v10811_v57 = vand.u32 4294901760, %v8490_v63 }
  0x67   :  { %v567_v6 = vand.u32 4294901760, %v566_v23  ;;  %v10798_v23 = vand.u32 4294901760, %v8356_v44  ;;  %10802 = vst [vmem:[#allocation61_spill] sm:$0xff] %v8887_v16  ;;  %7010 = vmatprep.subr.bf16.mxu0 %v8858_v51  ;;  %v10808_v44 = vand.u32 4294901760, %v8452_v7  ;;  %v10813_v5 = vand.u32 4294901760, %v8505_v27  ;;  %v10870_v51 = vld [vmem:[#allocation39_spill] sm:$0xff] }
  0x68   :  { %10796 = vst [vmem:[#allocation59_spill] sm:$0xff] %v8875_v36  ;;  %v8893_v10 = vpack.c.bf16 %v10804_v34, %v10803_v21  ;;  %v8908_v20 = vpack.c.bf16 %v10811_v57, %v10810_v53  ;;  %v10814_v12 = vand.u32 4294901760, %v8519_v33  ;;  %v10816_v21 = vand.u32 4294901760, %v8537_v39 }
  0x69   :  { %v8881_v52 = vpack.c.bf16 %v10798_v23, %v10797_v3  ;;  %v8895_v38 = vpack.c.bf16 %v567_v6, %v560_v2  ;;  %v8902_v3 = vpack.c.bf16 %v10808_v44, %v10807_v43  ;;  %v10817_v61 = vand.u32 4294901760, %v8551_v11 }
  0x6a   :  { %10805 = vst [vmem:[#allocation62_spill] sm:$0xff] %v8893_v10  ;;  %10812 = vst [vmem:[#allocation65_spill] sm:$0xff] %v8908_v20  ;;  %v8914_v50 = vpack.c.bf16 %v10814_v12, %v10813_v5  ;;  %v10819_v7 = vand.u32 4294901760, %v8580_v42  ;;  %v10820_v55 = vand.u32 4294901760, %v8594_v45  ;;  %v10822_v63 = vand.u32 4294901760, %v8611_v40  ;;  %7012 = vmatpush3.bf16.msra.mxu0 %v8864_v0  ;;  %v78_v12 = vld [vmem:[#allocation2 + $0x100] sm:$0xff] }
  0x6b   :  { %10799 = vst [vmem:[#allocation60_spill] sm:$0xff] %v8881_v52  ;;  %10806 = vst [vmem:[#allocation63_spill] sm:$0xff] %v8895_v38  ;;  %v8920_v2 = vpack.c.bf16 %v10817_v61, %v10816_v21  ;;  %v10823_v27 = vand.u32 4294901760, %v8616_v60  ;;  %v10825_v33 = vand.u32 4294901760, %v8651_v9  ;;  %v10826_v13 = vand.u32 4294901760, %v8656_v59  ;;  %7000 = vmatpush3.bf16.msra.mxu1 %v8895_v38  ;;  %7014 = vmatprep.subr.bf16.mxu0 %v8868_v4  ;;  %v10843_v21 = vld [vmem:[#allocation45_spill] sm:$0xff] }
  0x6c   :  { %10809 = vst [vmem:[#allocation64_spill] sm:$0xff] %v8902_v3  ;;  %10815 = vst [vmem:[#allocation66_spill] sm:$0xff] %v8914_v50  ;;  %v8926_v6 = vpack.c.bf16 %v10820_v55, %v10819_v7  ;;  %v10828_v34 = vand.u32 4294901760, %v8673_v22  ;;  %v10829_v43 = vand.u32 4294901760, %v8685_v18  ;;  %7034 = vmatprep.subr.bf16.mxu1 %v8319_v24  ;;  %v8951_v53 = vpack.c.bf16 %v8551_v11, %v8537_v39  ;;  %v79_v61 = vld [vmem:[#allocation2 + $0x108] sm:$0xff]  ;;  %v9100_v4 = vld [vmem:[#allocation2 + $0x130] sm:$0xff] }
  0x6d   :  { %10818 = vst [vmem:[#allocation67_spill] sm:$0xff] %v8920_v2  ;;  %v8932_v35 = vpack.c.bf16 %v10823_v27, %v10822_v63  ;;  %v8938_v23 = vpack.c.bf16 %v10826_v13, %v10825_v33  ;;  %v8956_v57 = vpack.c.bf16 %v8594_v45, %v8580_v42  ;;  %v10833_v5 = vand.u32 4294901760, %v8747_v46  ;;  %v10842_v46 = vld [vmem:[#allocation34_spill] sm:$0xff]  ;;  %v10844_v63 = vld [vmem:[#allocation36_spill] sm:$0xff] }
  0x6e   :  { %10821 = vst [vmem:[#allocation68_spill] sm:$0xff] %v8926_v6  ;;  %v8945_v44 = vpack.c.bf16 %v10829_v43, %v10828_v34  ;;  %10831 = vst [vmem:[#allocation72_spill] sm:$0xff] %v8951_v53  ;;  %684 = vmatmul.mubr.f32.vlgmr.msra.gmra.mrb[0].mxu1 %v8750_v48  ;;  %7016 = vmatpush3.bf16.msra.mxu0 %v8951_v53  ;;  %v8966_v11 = vpack.c.bf16 %v8616_v60, %v8611_v40  ;;  %v1208_v27 = vand.u32 4294901760, %v78_v12  ;;  %v10845_v33 = vld [vmem:[#allocation38_spill] sm:$0xff]  ;;  %v96_v34 = vld [vmem:[#allocation2 + $0x190] sm:$0xff] }
  0x6f   :  { %10824 = vst [vmem:[#allocation69_spill] sm:$0xff] %v8932_v35  ;;  %10827 = vst [vmem:[#allocation70_spill] sm:$0xff] %v8938_v23  ;;  %7036 = vmatpush3.bf16.msra.mxu1 %v8328_v31  ;;  %926 = vmatprep.mubr.f32.mxu1 %v10833_v5  ;;  %v8971_v39 = vpack.c.bf16 %v8656_v59, %v8651_v9  ;;  %v8978_v42 = vpack.c.bf16 %v8685_v18, %v8673_v22  ;;  %v10841_v9 = vld [vmem:[#allocation49_spill] sm:$0xff]  ;;  %v94_v18 = vld [vmem:[#allocation2 + $0x180] sm:$0xff]  ;;  %v1211_v13 = vand.u32 4294901760, %v79_v61 }
  0x70   :  { %10830 = vst [vmem:[#allocation71_spill] sm:$0xff] %v8945_v44  ;;  %10832 = vst [vmem:[#allocation73_spill] sm:$0xff] %v8956_v57  ;;  %7038 = vmatprep.subr.bf16.mxu1 %v8330_v32  ;;  %7018 = vmatprep.subr.bf16.mxu0 %v8956_v57  ;;  %v8983_v40 = vpack.c.bf16 %v8742_v29, %v8727_v15  ;;  %v8990_v59 = vpack.c.bf16 %v8777_v19, %v8766_v49  ;;  %v95_v22 = vld [vmem:[#allocation2 + $0x188] sm:$0xff]  ;;  %v1256_v7 = vand.u32 4294901760, %v94_v18  ;;  %v97_v43 = vld [vmem:[#allocation2 + $0x198] sm:$0xff] }
  0x71   :  { %10834 = vst [vmem:[#allocation74_spill] sm:$0xff] %v8966_v11  ;;  %10835 = vst [vmem:[#allocation75_spill] sm:$0xff] %v8971_v39  ;;  %v8995_v45 = vpack.c.bf16 %v8801_v14, %v8791_v54  ;;  %v9002_v60 = vpack.c.bf16 %v8834_v1, %v8826_v30  ;;  %v1259_v55 = vand.u32 4294901760, %v95_v22  ;;  %v80_v5 = vld [vmem:[#allocation2 + $0x110] sm:$0xff]  ;;  %v9048_v57 = vsub.f32 %v79_v61, %v1211_v13 }
  0x72   :  { %7020 = vmatpush3.bf16.msra.mxu0 %v8966_v11  ;;  %10836 = vst [vmem:[#allocation76_spill] sm:$0xff] %v8978_v42  ;;  %10837 = vst [vmem:[#allocation77_spill] sm:$0xff] %v8983_v40  ;;  %v9032_v11 = vsub.f32 %v78_v12, %v1208_v27  ;;  %v10856_v12 = vand.u32 4294901760, %v8826_v30  ;;  %v9066_v30 = vld [vmem:[#allocation2 + $0x120] sm:$0xff]  ;;  %v10867_v53 = vld [vmem:[#allocation13_spill] sm:$0xff] }
  0x73   :  { %7040 = vmatpush3.bf16.msra.mxu1 %v8340_v37  ;;  %7022 = vmatprep.subr.bf16.mxu0 %v8971_v39  ;;  %10838 = vst [vmem:[#allocation78_spill] sm:$0xff] %v8990_v59  ;;  %10839 = vst [vmem:[#allocation79_spill] sm:$0xff] %v8995_v45  ;;  %v9030_v39 = vld [vmem:[#allocation2 + $0x1a0] sm:$0xff] }
  0x74   :  { %7042 = vmatprep.subr.bf16.mxu1 %v8351_v41  ;;  %10840 = vst [vmem:[#allocation80_spill] sm:$0xff] %v9002_v60  ;;  %v1268_v61 = vand.u32 4294901760, %v9030_v39 }
  0x76   :  { %7024 = vmatpush3.bf16.msra.mxu0 %v8978_v42  ;;  %v1265_v42 = vand.u32 4294901760, %v97_v43 }
  0x77   :  { %7044 = vmatpush3.bf16.msra.mxu1 %v8366_v47  ;;  %7026 = vmatprep.subr.bf16.mxu0 %v8983_v40 }
  0x78   :  { %7046 = vmatprep.subr.bf16.mxu1 %v8386_v56 }
  0x7a   :  { %7028 = vmatpush3.bf16.msra.mxu0 %v8990_v59  ;;  %v10848_v59 = vand.u32 4294901760, %v8742_v29  ;;  %v10853_v29 = vand.u32 4294901760, %v8791_v54  ;;  %v10859_v54 = vand.u32 4294901760, %v10841_v9 }
  0x7b   :  { %7048 = vmatpush3.bf16.msra.mxu1 %v8422_v17  ;;  %7030 = vmatprep.subr.bf16.mxu0 %v8995_v45  ;;  %v10847_v45 = vand.u32 4294901760, %v8727_v15  ;;  %v10854_v15 = vand.u32 4294901760, %v8801_v14  ;;  %v9061_v14 = vpack.c.bf16 %v1211_v13, %v1208_v27 }
  0x7c   :  { %7050 = vmatprep.subr.bf16.mxu1 %v8466_v26 }
  0x7d   :  { %v9028_v40 = vpack.c.bf16 %v10848_v59, %v10847_v45  ;;  %v9046_v59 = vpack.c.bf16 %v10854_v15, %v10853_v29  ;;  %v99_v45 = vld [vmem:[#allocation2 + $0x1a8] sm:$0xff]  ;;  %10860 = vst [vmem:[#allocation83_spill] sm:$0xff] %v9061_v14 }
  0x7e   :  { %7032 = vmatpush3.bf16.msra.mxu0 %v9002_v60  ;;  %v10846_v60 = vld [vmem:[#allocation41_spill] sm:$0xff]  ;;  %v10862_v15 = vld [vmem:[#allocation12_spill] sm:$0xff] }
  0x7f   :  { %7052 = vmatpush3.bf16.msra.mxu1 %v8475_v25  ;;  %7066 = vmatprep.subr.bf16.mxu0 %v8875_v36  ;;  %v9021_v36 = vsub.f32 %v95_v22, %v1259_v55  ;;  %10849 = vst [vmem:[#allocation49_spill] sm:$0xff] %v9028_v40  ;;  %v10851_v22 = vand.u32 4294901760, %v8777_v19  ;;  %10855 = vst [vmem:[#allocation81_spill] sm:$0xff] %v9046_v59  ;;  %v9057_v19 = vpack.c.bf16 %v1259_v55, %v1256_v7 }
  0x80   :  { %7054 = vmatprep.subr.bf16.mxu1 %v8514_v28  ;;  %v117_v29 = vadd.s32 384, %v10862_v15 }
  0x81   :  { %822 = vmatmul.mubr.f32.vlgmr.msra.gmra.mrb[2].mxu0 %v10841_v9  ;;  %v1271_v9 = vand.u32 4294901760, %v99_v45 }
  0x82   :  { %7068 = vmatpush3.bf16.msra.mxu0 %v8881_v52  ;;  %1096 = vmatprep.mubr.f32.mxu0 %v10843_v21  ;;  %v81_v52 = vld [vmem:[#allocation2 + $0x118] sm:$0xff] }
  0x83   :  { %7056 = vmatpush3.bf16.msra.mxu1 %v8560_v58  ;;  %7070 = vmatprep.subr.bf16.mxu0 %v8887_v16  ;;  %v9019_v16 = vsub.f32 %v94_v18, %v1256_v7  ;;  %v10850_v18 = vand.u32 4294901760, %v8766_v49 }
  0x84   :  { %7058 = vmatprep.subr.bf16.mxu1 %v10842_v46 }
  0x85   :  { %v10865_v13 = vand.u32 4294901760, %v9019_v16 }
  0x86   :  { %7072 = vmatpush3.bf16.msra.mxu0 %v8893_v10  ;;  %v1262_v10 = vand.u32 4294901760, %v96_v34 }
  0x87   :  { %7060 = vmatpush3.bf16.msra.mxu1 %v10844_v63  ;;  %7074 = vmatprep.subr.bf16.mxu0 %v8902_v3  ;;  %v9040_v3 = vpack.c.bf16 %v10851_v22, %v10850_v18  ;;  %v1214_v18 = vand.u32 4294901760, %v80_v5  ;;  %v1217_v22 = vand.u32 4294901760, %v81_v52 }
  0x88   :  { %7062 = vmatprep.subr.bf16.mxu1 %v10845_v33  ;;  %v9073_v7 = vpack.c.bf16 %v1265_v42, %v1262_v10  ;;  %v9077_v27 = vsub.f32 %v96_v34, %v1262_v10  ;;  %v1220_v10 = vand.u32 4294901760, %v9066_v30 }
  0x89   :  { %10852 = vst [vmem:[#allocation45_spill] sm:$0xff] %v9040_v3  ;;  %v9113_v8 = vsub.f32 %v80_v5, %v1214_v18  ;;  %v9130_v5 = vsub.f32 %v9030_v39, %v1268_v61 }
  0x8a   :  { %7076 = vmatpush3.bf16.msra.mxu0 %v8908_v20  ;;  %v10857_v20 = vand.u32 4294901760, %v8834_v1  ;;  %v9068_v1 = vld [vmem:[#allocation2 + $0x128] sm:$0xff]  ;;  %10861 = vst [vmem:[#allocation84_spill] sm:$0xff] %v9073_v7  ;;  %v10878_v39 = vand.u32 4294901760, %v9077_v27 }
  0x8b   :  { %7064 = vmatpush3.bf16.msra.mxu1 %v10846_v60  ;;  %7078 = vmatprep.subr.bf16.mxu0 %v8914_v50  ;;  %v10863_v50 = vld [vmem:[#allocation11_spill] sm:$0xff]  ;;  %v1223_v34 = vand.u32 4294901760, %v9068_v1  ;;  %10874 = vst [vmem:[#allocation86_spill] sm:$0xff] %v9130_v5 }
  0x8c   :  { %7098 = vmatprep.subr.bf16.mxu1 %v8319_v24  ;;  %v9055_v49 = vpack.c.bf16 %v10857_v20, %v10856_v12  ;;  %v9070_v20 = vld [vmem:[#allocation2 + $0x1b0] sm:$0xff]  ;;  %v9082_v12 = vld [vmem:[#allocation2 + $0x1b8] sm:$0xff]  ;;  %v10869_v0 = vsub.s32 3, %v10863_v50 }
  0x8d   :  { %v9194_v24 = vsub.f32 %v9068_v1, %v1223_v34 }
  0x8e   :  { %10858 = vst [vmem:[#allocation82_spill] sm:$0xff] %v9055_v49  ;;  %930 = vmatmul.mubr.f32.vlgmr.msra.gmra.mrb[2].mxu1 %v10859_v54  ;;  %7080 = vmatpush3.bf16.msra.mxu0 %v8920_v2  ;;  %v9084_v54 = vsub.f32 %v97_v43, %v1265_v42  ;;  %v1435_v2 = vsub.f32 %v9019_v16, %v10865_v13  ;;  %v10866_v42 = vand.u32 4294901760, %v9021_v36  ;;  %v9111_v13 = vld [vmem:[#allocation2 + $0x138] sm:$0xff] }
  0x8f   :  { %7100 = vmatpush3.bf16.msra.mxu1 %v8328_v31  ;;  %1200 = vmatprep.mubr.f32.mxu1 %v10843_v21  ;;  %v9089_v21 = vpack.c.bf16 %v1217_v22, %v1214_v18  ;;  %v150_v38 = vrot.slane %v10870_v51, %v10869_v0  ;;  %v9132_v18 = vsub.f32 %v99_v45, %v1271_v9  ;;  %v10884_v31 = vand.u32 4294901760, %v9113_v8 }
  0x90   :  { %7102 = vmatprep.subr.bf16.mxu1 %v8330_v32  ;;  %7082 = vmatprep.subr.bf16.mxu0 %v8926_v6  ;;  %v1442_v43 = vsub.f32 %v9021_v36, %v10866_v42  ;;  %v9103_v6 = vadd.s32 %v10867_v53, %v117_v29  ;;  %v9115_v42 = vsub.f32 %v81_v52, %v1217_v22  ;;  %v10872_v29 = vand.u32 4294901760, %v9032_v11 }
  0x91   :  { %10864 = vst [vmem:[#allocation85_spill] sm:$0xff] %v9089_v21  ;;  %v1226_v52 = vand.u32 4294901760, %v9100_v4  ;;  %10875 = vst [vmem:[#allocation87_spill] sm:$0xff] %v9132_v18  ;;  %v1449_v45 = vsub.f32 %v9077_v27, %v10878_v39  ;;  %v10880_v39 = vand.u32 4294901760, %v9070_v20  ;;  %v9181_v32 = vsub.f32 %v9066_v30, %v1220_v10 }
  0x92   :  { %10868 = vst [vmem:[#allocation13_spill] sm:$0xff] %v9103_v6  ;;  %10871 = vst [vmem:[#allocation39_spill] sm:$0xff] %v9115_v42  ;;  %7084 = vmatpush3.bf16.msra.mxu0 %v8932_v35  ;;  %v1323_v0 = vsub.f32 %v9032_v11, %v10872_v29  ;;  %vm128_vm2 = vcmp.lt.s32.totalorder %v9103_v6, 32  ;;  %v1436_v29 = vand.u32 4294901760, %v1435_v2  ;;  %v1443_v35 = vand.u32 4294901760, %v1442_v43 }
  0x93   :  { %7104 = vmatpush3.bf16.msra.mxu1 %v8340_v37  ;;  %v10873_v37 = vand.u32 4294901760, %v9048_v57  ;;  %7086 = vmatprep.subr.bf16.mxu0 %v8938_v23  ;;  %v9136_v22 = vsel %vm128_vm2, %v150_v38, 1.0  ;;  %v9143_v23 = vpack.c.bf16 %v1271_v9, %v1268_v61  ;;  %v10879_v6 = vand.u32 4294901760, %v9084_v54 }
  0x94   :  { %7106 = vmatprep.subr.bf16.mxu1 %v8351_v41  ;;  %10876 = vst [vmem:[#allocation88_spill] sm:$0xff] %v9136_v22  ;;  %v9140_v62 = vand.u32 4294901760, %v9136_v22  ;;  %v1324_v2 = vand.u32 4294901760, %v1323_v0  ;;  %v9160_v9 = vpack.c.bf16 %v1223_v34, %v1220_v10  ;;  %v10881_v38 = vand.u32 4294901760, %v9082_v12  ;;  %v9168_v0 = vld [vmem:[#allocation2 + $0x1c0] sm:$0xff] }
  0x95   :  { %v1330_v55 = vsub.f32 %v9048_v57, %v10873_v37  ;;  %v1229_v37 = vand.u32 4294901760, %v9111_v13  ;;  %v10888_v1 = vand.u32 4294901760, %v9132_v18 }
  0x96   :  { %10877 = vst [vmem:[#allocation89_spill] sm:$0xff] %v9140_v62  ;;  %7088 = vmatpush3.bf16.msra.mxu0 %v8945_v44  ;;  %v9157_v61 = vsub.f32 %v9136_v22, %v9140_v62  ;;  %v9166_v41 = vpack.c.bf16 %v10881_v38, %v10880_v39  ;;  %v9174_v22 = vpack.c.bf16 %v1443_v35, %v1436_v29  ;;  %v1450_v39 = vand.u32 4294901760, %v1449_v45  ;;  %v9191_v29 = vld [vmem:[#allocation2 + $0x148] sm:$0xff] }
  0x97   :  { %7108 = vmatpush3.bf16.msra.mxu1 %v8366_v47  ;;  %v1331_v43 = vand.u32 4294901760, %v1330_v55  ;;  %v1456_v47 = vsub.f32 %v9084_v54, %v10879_v6  ;;  %7090 = vmatprep.subr.bf16.mxu0 %v9028_v40  ;;  %v9170_v55 = vld [vmem:[#allocation2 + $0x1c8] sm:$0xff]  ;;  %v9178_v40 = vld [vmem:[#allocation2 + $0x140] sm:$0xff]  ;;  %v1337_v6 = vsub.f32 %v9113_v8, %v10884_v31  ;;  %v10885_v44 = vand.u32 4294901760, %v9115_v42 }
  0x98   :  { %7110 = vmatprep.subr.bf16.mxu1 %v8386_v56  ;;  %10882 = vst [vmem:[#allocation90_spill] sm:$0xff] %v9166_v41  ;;  %10883 = vst [vmem:[#allocation91_spill] sm:$0xff] %v9174_v22  ;;  %v9176_v56 = vpack.c.bf16 %v1229_v37, %v1226_v52  ;;  %v1280_v45 = vand.u32 4294901760, %v9168_v0  ;;  %v1283_v31 = vand.u32 4294901760, %v9170_v55  ;;  %v1470_v34 = vsub.f32 %v9132_v18, %v10888_v1 }
  0x99   :  { %v1344_v35 = vsub.f32 %v9115_v42, %v10885_v44  ;;  %v9198_v30 = vpack.c.bf16 %v1331_v43, %v1324_v2  ;;  %v1457_v10 = vand.u32 4294901760, %v1456_v47  ;;  %v10887_v44 = vand.u32 4294901760, %v9130_v5  ;;  %v9212_v2 = vld [vmem:[#allocation2 + $0x1d8] sm:$0xff] }
  0x9a   :  { %7092 = vmatpush3.bf16.msra.mxu0 %v9040_v3  ;;  %v9210_v3 = vld [vmem:[#allocation2 + $0x1d0] sm:$0xff]  ;;  %v10889_v47 = vand.u32 4294901760, %v9157_v61  ;;  %v10891_v1 = vand.u32 4294901760, %v9082_v12  ;;  %v1338_v18 = vand.u32 4294901760, %v1337_v6 }
  0x9b   :  { %7112 = vmatpush3.bf16.msra.mxu1 %v8422_v17  ;;  %10886 = vst [vmem:[#allocation92_spill] sm:$0xff] %v9198_v30  ;;  %7094 = vmatprep.subr.bf16.mxu0 %v9046_v59  ;;  %v1463_v38 = vsub.f32 %v9130_v5, %v10887_v44  ;;  %v10592_v17 = vand.u32 4294901760, %v9181_v32  ;;  %v10890_v44 = vand.u32 4294901760, %v9070_v20  ;;  %v1345_v42 = vand.u32 4294901760, %v1344_v35 }
  0x9c   :  { %7114 = vmatprep.subr.bf16.mxu1 %v8466_v26  ;;  %v1306_v43 = vsub.f32 %v9157_v61, %v10889_v47  ;;  %v9227_v26 = vsub.f32 %v9082_v12, %v10891_v1  ;;  %v9232_v59 = vsub.f32 %v9100_v4, %v1226_v52  ;;  %v1289_v12 = vand.u32 4294901760, %v9212_v2 }
  0x9d   :  { %v9222_v5 = vsub.f32 %v9070_v20, %v10890_v44  ;;  %v9236_v20 = vpack.c.bf16 %v1457_v10, %v1450_v39  ;;  %v1286_v44 = vand.u32 4294901760, %v9210_v3  ;;  %v9241_v1 = vsub.f32 %v9111_v13, %v1229_v37  ;;  %v9267_v10 = vld [vmem:[#allocation2 + $0x158] sm:$0xff] }
  0x9e   :  { %10892 = vst [vmem:[#allocation93_spill] sm:$0xff] %v9232_v59  ;;  %7096 = vmatpush3.bf16.msra.mxu0 %v9055_v49  ;;  %v1464_v6 = vand.u32 4294901760, %v1463_v38  ;;  %v1471_v35 = vand.u32 4294901760, %v1470_v34  ;;  %v1307_v47 = vand.u32 4294901760, %v1306_v43  ;;  %v116_v4 = vadd.s32 256, %v10862_v15 }
  0x9f   :  { %7116 = vmatpush3.bf16.msra.mxu1 %v8475_v25  ;;  %10893 = vst [vmem:[#allocation94_spill] sm:$0xff] %v9236_v20  ;;  %7130 = vmatprep.subr.bf16.mxu0 %v9057_v19  ;;  %v9245_v52 = vpack.c.bf16 %v1283_v31, %v1280_v45  ;;  %v1351_v39 = vsub.f32 %v9181_v32, %v10592_v17  ;;  %v10896_v37 = vand.u32 4294901760, %v9178_v40  ;;  %v10897_v38 = vand.u32 4294901760, %v9191_v29 }
  0xa0   :  { %7118 = vmatprep.subr.bf16.mxu1 %v8514_v28  ;;  %v9252_v28 = vld [vmem:[#allocation2 + $0x150] sm:$0xff]  ;;  %v9256_v13 = vpack.c.bf16 %v1345_v42, %v1338_v18  ;;  %v10898_v43 = vand.u32 4294901760, %v9194_v24  ;;  %v9273_v18 = vld [vmem:[#allocation2 + $0x1e0] sm:$0xff]  ;;  %v9285_v49 = vpack.c.bf16 %v1471_v35, %v1464_v6  ;;  %v9291_v25 = vadd.s32 %v10867_v53, %v116_v4 }
  0xa1   :  { %10894 = vst [vmem:[#allocation95_spill] sm:$0xff] %v9245_v52  ;;  %1098 = vmatmul.mubr.f32.vlgmr.msra.gmra.mrb[4].mxu0 %v8750_v48  ;;  %v9262_v34 = vpack.c.bf16 %v10897_v38, %v10896_v37  ;;  %v9278_v37 = vsub.f32 %v9168_v0, %v1280_v45  ;;  %v9281_v38 = vsub.f32 %v9170_v55, %v1283_v31  ;;  %v1238_v42 = vand.u32 4294901760, %v9252_v28 }
  0xa2   :  { %10895 = vst [vmem:[#allocation96_spill] sm:$0xff] %v9256_v13  ;;  %v1358_v17 = vsub.f32 %v9194_v24, %v10898_v43  ;;  %7132 = vmatpush3.bf16.msra.mxu0 %v9061_v14  ;;  %10899 = vst [vmem:[#allocation97_spill] sm:$0xff] %v9285_v49  ;;  %1308 = vmatprep.mubr.f32.mxu0 %v1307_v47  ;;  %v1352_v15 = vand.u32 4294901760, %v1351_v39  ;;  %v10901_v0 = vand.u32 4294901760, %v9222_v5  ;;  %v10902_v45 = vand.u32 4294901760, %v9227_v26 }
  0xa3   :  { %7120 = vmatpush3.bf16.msra.mxu1 %v8560_v58  ;;  %v9275_v58 = vld [vmem:[#allocation2 + $0x1e8] sm:$0xff]  ;;  %7134 = vmatprep.subr.bf16.mxu0 %v9073_v7  ;;  %10900 = vst [vmem:[#allocation98_spill] sm:$0xff] %v9291_v25  ;;  %v1241_v6 = vand.u32 4294901760, %v9267_v10  ;;  %v10903_v43 = vand.u32 4294901760, %v9232_v59  ;;  %v1292_v53 = vand.u32 4294901760, %v9273_v18  ;;  %v10904_v39 = vand.u32 4294901760, %v9241_v1 }
  0xa4   :  { %7122 = vmatprep.subr.bf16.mxu1 %v10842_v46  ;;  %v9287_v46 = vpack.c.bf16 %v1289_v12, %v1286_v44  ;;  %v1477_v55 = vsub.f32 %v9222_v5, %v10901_v0  ;;  %v1484_v31 = vsub.f32 %v9227_v26, %v10902_v45  ;;  %v1359_v35 = vand.u32 4294901760, %v1358_v17  ;;  %v91_v7 = vld [vmem:[#allocation2 + $0x168] sm:$0xff] }
  0xa5   :  { %v1365_v47 = vsub.f32 %v9232_v59, %v10903_v43  ;;  %v1295_v4 = vand.u32 4294901760, %v9275_v58  ;;  %v1372_v0 = vsub.f32 %v9241_v1, %v10904_v39  ;;  %v10905_v43 = vsub.s32 2, %v10863_v50 }
  0xa6   :  { %7136 = vmatpush3.bf16.msra.mxu0 %v9089_v21  ;;  %v10907_v59 = vand.u32 4294901760, %v9191_v29  ;;  %v9328_v17 = vsub.f32 %v9210_v3, %v1286_v44  ;;  %vm127_vm3 = vcmp.lt.s32.totalorder %v9291_v25, 32  ;;  %v1478_v45 = vand.u32 4294901760, %v1477_v55 }
  0xa7   :  { %7124 = vmatpush3.bf16.msra.mxu1 %v10844_v63  ;;  %v90_v63 = vld [vmem:[#allocation2 + $0x160] sm:$0xff]  ;;  %v146_v14 = vrot.slane %v10870_v51, %v10905_v43  ;;  %7138 = vmatprep.subr.bf16.mxu0 %v9143_v23  ;;  %v1485_v50 = vand.u32 4294901760, %v1484_v31  ;;  %v9331_v51 = vpack.c.bf16 %v1241_v6, %v1238_v42  ;;  %v9334_v43 = vsub.f32 %v9212_v2, %v1289_v12  ;;  %v9346_v2 = vld [vmem:[#allocation2 + $0x1f0] sm:$0xff]  ;;  %v9348_v12 = vld [vmem:[#allocation2 + $0x1f8] sm:$0xff] }
  0xa8   :  { %7126 = vmatprep.subr.bf16.mxu1 %v10845_v33  ;;  %v10906_v33 = vand.u32 4294901760, %v9178_v40  ;;  %v9325_v39 = vsub.f32 %v9191_v29, %v10907_v59  ;;  %v1244_v59 = vand.u32 4294901760, %v90_v63  ;;  %v1247_v29 = vand.u32 4294901760, %v91_v7 }
  0xa9   :  { %10908 = vst [vmem:[#allocation99_spill] sm:$0xff] %v9331_v51  ;;  %v1366_v3 = vand.u32 4294901760, %v1365_v47  ;;  %v1373_v44 = vand.u32 4294901760, %v1372_v0  ;;  %v10911_v55 = vand.u32 4294901760, %v9278_v37  ;;  %v1298_v0 = vand.u32 4294901760, %v9346_v2 }
  0xaa   :  { %v9320_v21 = vsub.f32 %v9178_v40, %v10906_v33  ;;  %v9337_v40 = vpack.c.bf16 %v1359_v35, %v1352_v15  ;;  %v9339_v33 = vpack.c.bf16 %v1295_v4, %v1292_v53  ;;  %7140 = vmatpush3.bf16.msra.mxu0 %v9160_v9  ;;  %v9352_v15 = vsel %vm127_vm3, %v146_v14, 1.0 }
  0xab   :  { %7128 = vmatpush3.bf16.msra.mxu1 %v10846_v60  ;;  %v1491_v31 = vsub.f32 %v9278_v37, %v10911_v55  ;;  %10912 = vst [vmem:[#allocation102_spill] sm:$0xff] %v9352_v15  ;;  %7142 = vmatprep.subr.bf16.mxu0 %v9166_v41  ;;  %v10913_v35 = vand.u32 4294901760, %v9281_v38  ;;  %v9362_v60 = vpack.c.bf16 %v1485_v50, %v1478_v45  ;;  %v1301_v55 = vand.u32 4294901760, %v9348_v12 }
  0xac   :  { %10909 = vst [vmem:[#allocation100_spill] sm:$0xff] %v9337_v40  ;;  %10910 = vst [vmem:[#allocation101_spill] sm:$0xff] %v9339_v33  ;;  %7162 = vmatprep.subr.bf16.mxu1 %v9174_v22  ;;  %v10620_v47 = vand.u32 4294901760, %v9320_v21  ;;  %v9366_v14 = vsub.f32 %v9252_v28, %v1238_v42  ;;  %v9369_v41 = vsub.f32 %v9267_v10, %v1241_v6  ;;  %v92_v10 = vld [vmem:[#allocation2 + $0x170] sm:$0xff]  ;;  %v93_v42 = vld [vmem:[#allocation2 + $0x178] sm:$0xff] }
  0xad   :  { %v1498_v22 = vsub.f32 %v9281_v38, %v10913_v35  ;;  %10914 = vst [vmem:[#allocation103_spill] sm:$0xff] %v9362_v60  ;;  %v9372_v35 = vpack.c.bf16 %v1247_v29, %v1244_v59  ;;  %v9382_v28 = vpack.c.bf16 %v1373_v44, %v1366_v3  ;;  %v1492_v50 = vand.u32 4294901760, %v1491_v31 }
  0xae   :  { %1202 = vmatmul.mubr.f32.vlgmr.msra.gmra.mrb[4].mxu1 %v8750_v48  ;;  %v9377_v48 = vand.u32 4294901760, %v9352_v15  ;;  %7144 = vmatpush3.bf16.msra.mxu0 %v9176_v56  ;;  %v9385_v6 = vsub.f32 %v9273_v18, %v1292_v53  ;;  %v9388_v45 = vsub.f32 %v9275_v58, %v1295_v4  ;;  %v10918_v44 = vand.u32 4294901760, %v9328_v17 }
  0xaf   :  { %7164 = vmatpush3.bf16.msra.mxu1 %v9198_v30  ;;  %10915 = vst [vmem:[#allocation104_spill] sm:$0xff] %v9372_v35  ;;  %1544 = vmatprep.mubr.f32.mxu1 %v9140_v62  ;;  %10916 = vst [vmem:[#allocation105_spill] sm:$0xff] %v9382_v28  ;;  %v1499_v25 = vand.u32 4294901760, %v1498_v22  ;;  %v10917_v30 = vand.u32 4294901760, %v9325_v39  ;;  %v10919_v18 = vand.u32 4294901760, %v9334_v43  ;;  %v9405_v4 = vsub.f32 %v90_v63, %v1244_v59 }
  0xb0   :  { %7166 = vmatprep.subr.bf16.mxu1 %v9236_v20  ;;  %7146 = vmatprep.subr.bf16.mxu0 %v9245_v52  ;;  %v1379_v20 = vsub.f32 %v9320_v21, %v10620_v47  ;;  %v1505_v31 = vsub.f32 %v9328_v17, %v10918_v44  ;;  %v1250_v47 = vand.u32 4294901760, %v92_v10  ;;  %v1253_v62 = vand.u32 4294901760, %v93_v42 }
  0xb1   :  { %v1386_v3 = vsub.f32 %v9325_v39, %v10917_v30  ;;  %v1512_v58 = vsub.f32 %v9334_v43, %v10919_v18  ;;  %v9410_v30 = vsub.f32 %v9352_v15, %v9377_v48  ;;  %v9412_v52 = vsub.f32 %v91_v7, %v1247_v29 }
  0xb2   :  { %7148 = vmatpush3.bf16.msra.mxu0 %v9262_v34  ;;  %v9419_v63 = vsub.f32 %v9346_v2, %v1298_v0  ;;  %v9422_v59 = vsub.f32 %v9348_v12, %v1301_v55  ;;  %v9425_v22 = vpack.c.bf16 %v1499_v25, %v1492_v50  ;;  %v1380_v7 = vand.u32 4294901760, %v1379_v20 }
  0xb3   :  { %7168 = vmatpush3.bf16.msra.mxu1 %v9256_v13  ;;  %7150 = vmatprep.subr.bf16.mxu0 %v9287_v46  ;;  %v1387_v29 = vand.u32 4294901760, %v1386_v3  ;;  %v1506_v53 = vand.u32 4294901760, %v1505_v31  ;;  %v1513_v15 = vand.u32 4294901760, %v1512_v58  ;;  %v10922_v18 = vand.u32 4294901760, %v9369_v41 }
  0xb4   :  { %7170 = vmatprep.subr.bf16.mxu1 %v9285_v49  ;;  %10920 = vst [vmem:[#allocation106_spill] sm:$0xff] %v9425_v22  ;;  %v10921_v49 = vand.u32 4294901760, %v9366_v14  ;;  %v9437_v20 = vsub.f32 %v92_v10, %v1250_v47  ;;  %v9439_v50 = vsub.f32 %v93_v42, %v1253_v62  ;;  %v10924_v31 = vand.u32 4294901760, %v9388_v45 }
  0xb5   :  { %v1400_v2 = vsub.f32 %v9369_v41, %v10922_v18  ;;  %v9452_v10 = vpack.c.bf16 %v1387_v29, %v1380_v7  ;;  %v9454_v42 = vpack.c.bf16 %v1301_v55, %v1298_v0  ;;  %v9456_v12 = vpack.c.bf16 %v1253_v62, %v1250_v47 }
  0xb6   :  { %v1393_v44 = vsub.f32 %v9366_v14, %v10921_v49  ;;  %7152 = vmatpush3.bf16.msra.mxu0 %v9331_v51  ;;  %v10923_v49 = vand.u32 4294901760, %v9385_v6  ;;  %v1526_v58 = vsub.f32 %v9388_v45, %v10924_v31  ;;  %v9458_v13 = vpack.c.bf16 %v1513_v15, %v1506_v53 }
  0xb7   :  { %7172 = vmatpush3.bf16.msra.mxu1 %v9337_v40  ;;  %7154 = vmatprep.subr.bf16.mxu0 %v9339_v33  ;;  %10925 = vst [vmem:[#allocation107_spill] sm:$0xff] %v9452_v10  ;;  %10926 = vst [vmem:[#allocation108_spill] sm:$0xff] %v9454_v42  ;;  %v10929_v40 = vand.u32 4294901760, %v9405_v4  ;;  %v10930_v25 = vand.u32 4294901760, %v9410_v30  ;;  %v10931_v7 = vand.u32 4294901760, %v9412_v52  ;;  %v10638_v62 = vand.u32 4294901760, %v9437_v20 }
  0xb8   :  { %7174 = vmatprep.subr.bf16.mxu1 %v9362_v60  ;;  %v1519_v3 = vsub.f32 %v9385_v6, %v10923_v49  ;;  %10927 = vst [vmem:[#allocation109_spill] sm:$0xff] %v9456_v12  ;;  %10928 = vst [vmem:[#allocation110_spill] sm:$0xff] %v9458_v13  ;;  %v1394_v60 = vand.u32 4294901760, %v1393_v44  ;;  %v1401_v49 = vand.u32 4294901760, %v1400_v2  ;;  %v10637_v15 = vand.u32 4294901760, %v9439_v50 }
  0xb9   :  { %v1407_v31 = vsub.f32 %v9405_v4, %v10929_v40  ;;  %v1312_v18 = vsub.f32 %v9410_v30, %v10930_v25  ;;  %v1414_v0 = vsub.f32 %v9412_v52, %v10931_v7  ;;  %v1527_v40 = vand.u32 4294901760, %v1526_v58 }
  0xba   :  { %7156 = vmatpush3.bf16.msra.mxu0 %v9372_v35  ;;  %v1520_v47 = vand.u32 4294901760, %v1519_v3  ;;  %v10932_v55 = vand.u32 4294901760, %v9419_v63  ;;  %v10933_v44 = vand.u32 4294901760, %v9422_v59  ;;  %v9483_v2 = vpack.c.bf16 %v9021_v36, %v9019_v16 }
  0xbb   :  { %7176 = vmatpush3.bf16.msra.mxu1 %v9382_v28  ;;  %7158 = vmatprep.subr.bf16.mxu0 %v9454_v42  ;;  %v9485_v25 = vpack.c.bf16 %v1401_v49, %v1394_v60  ;;  %v1408_v7 = vand.u32 4294901760, %v1407_v31  ;;  %v1313_v3 = vand.u32 4294901760, %v1312_v18  ;;  %v1415_v58 = vand.u32 4294901760, %v1414_v0 }
  0xbc   :  { %7178 = vmatprep.subr.bf16.mxu1 %v9425_v22  ;;  %v1533_v53 = vsub.f32 %v9419_v63, %v10932_v55  ;;  %v1540_v29 = vsub.f32 %v9422_v59, %v10933_v44  ;;  %10934 = vst [vmem:[#allocation111_spill] sm:$0xff] %v9483_v2  ;;  %v1421_v55 = vsub.f32 %v9437_v20, %v10638_v62  ;;  %v10943_v62 = vld [vmem:[#allocation86_spill] sm:$0xff] }
  0xbd   :  { %10935 = vst [vmem:[#allocation112_spill] sm:$0xff] %v9485_v25  ;;  %v1428_v44 = vsub.f32 %v9439_v50, %v10637_v15  ;;  %v9496_v22 = vpack.c.bf16 %v1527_v40, %v1520_v47  ;;  %v9500_v60 = vpack.c.bf16 %v9048_v57, %v9032_v11  ;;  %v9505_v31 = vpack.c.bf16 %v9084_v54, %v9077_v27 }
  0xbe   :  { %7160 = vmatpush3.bf16.msra.mxu0 %v9456_v12  ;;  %v1534_v18 = vand.u32 4294901760, %v1533_v53  ;;  %v1541_v49 = vand.u32 4294901760, %v1540_v29  ;;  %v9508_v0 = vpack.c.bf16 %v1415_v58, %v1408_v7  ;;  %v1422_v15 = vand.u32 4294901760, %v1421_v55  ;;  %v10941_v53 = vld [vmem:[#allocation39_spill] sm:$0xff] }
  0xbf   :  { %7180 = vmatpush3.bf16.msra.mxu1 %v9452_v10  ;;  %10936 = vst [vmem:[#allocation113_spill] sm:$0xff] %v9496_v22  ;;  %10937 = vst [vmem:[#allocation114_spill] sm:$0xff] %v9500_v60  ;;  %7194 = vmatprep.subr.bf16.mxu0 %v9483_v2  ;;  %v1429_v47 = vand.u32 4294901760, %v1428_v44  ;;  %v9516_v29 = vpack.c.bf16 %v10941_v53, %v9113_v8  ;;  %v10944_v2 = vld [vmem:[#allocation87_spill] sm:$0xff]  ;;  %v9536_v58 = vpack.c.bf16 %v9227_v26, %v9222_v5 }
  0xc0   :  { %7182 = vmatprep.subr.bf16.mxu1 %v9458_v13  ;;  %10938 = vst [vmem:[#allocation115_spill] sm:$0xff] %v9505_v31  ;;  %10939 = vst [vmem:[#allocation116_spill] sm:$0xff] %v9508_v0  ;;  %v9512_v40 = vpack.c.bf16 %v1541_v49, %v1534_v18  ;;  %v9548_v44 = vpack.c.bf16 %v9281_v38, %v9278_v37  ;;  %v10952_v18 = vld [vmem:[#allocation83_spill] sm:$0xff]  ;;  %v10953_v49 = vand.u32 4294901760, %v9157_v61 }
  0xc1   :  { %1314 = vmatmul.mubr.f32.vlgmr.msra.gmra.mrb[6].mxu0 %v1313_v3  ;;  %10942 = vst [vmem:[#allocation39_spill] sm:$0xff] %v9516_v29  ;;  %v9525_v7 = vpack.c.bf16 %v1429_v47, %v1422_v15  ;;  %v9531_v3 = vpack.c.bf16 %v9194_v24, %v9181_v32  ;;  %10948 = vst [vmem:[#allocation119_spill] sm:$0xff] %v9536_v58  ;;  %v10949_v15 = vld [vmem:[#allocation93_spill] sm:$0xff]  ;;  %v10954_v47 = vld [vmem:[#allocation84_spill] sm:$0xff] }
  0xc2   :  { %7196 = vmatpush3.bf16.msra.mxu0 %v9500_v60  ;;  %10940 = vst [vmem:[#allocation117_spill] sm:$0xff] %v9512_v40  ;;  %1681 = vmatprep.mubr.f32.mxu0 %v9157_v61  ;;  %v9543_v55 = vpack.c.bf16 %v9241_v1, %v10949_v15  ;;  %10951 = vst [vmem:[#allocation120_spill] sm:$0xff] %v9548_v44  ;;  %v9570_v61 = vpack.c.bf16 %v9369_v41, %v9366_v14  ;;  %v10969_v60 = vand.u32 4294901760, %v9048_v57 }
  0xc3   :  { %7184 = vmatpush3.bf16.msra.mxu1 %v9485_v25  ;;  %7198 = vmatprep.subr.bf16.mxu0 %v9505_v31  ;;  %v9521_v25 = vpack.c.bf16 %v10944_v2, %v10943_v62  ;;  %10946 = vst [vmem:[#allocation87_spill] sm:$0xff] %v9525_v7  ;;  %10947 = vst [vmem:[#allocation118_spill] sm:$0xff] %v9531_v3  ;;  %v10975_v57 = vand.u32 4294901760, %v9113_v8  ;;  %v10984_v8 = vand.u32 4294901760, %v9181_v32  ;;  %v10991_v32 = vand.u32 4294901760, %v9241_v1 }
  0xc4   :  { %7186 = vmatprep.subr.bf16.mxu1 %v9496_v22  ;;  %10950 = vst [vmem:[#allocation93_spill] sm:$0xff] %v9543_v55  ;;  %v10997_v1 = vand.u32 4294901760, %v9320_v21 }
  0xc5   :  { %10945 = vst [vmem:[#allocation86_spill] sm:$0xff] %v9521_v25 }
  0xc6   :  { %7200 = vmatpush3.bf16.msra.mxu0 %v9516_v29  ;;  %v9594_v29 = vpack.c.bf16 %v9439_v50, %v9437_v20 }
  0xc7   :  { %7188 = vmatpush3.bf16.msra.mxu1 %v9508_v0  ;;  %7202 = vmatprep.subr.bf16.mxu0 %v9521_v25  ;;  %v10957_v25 = vld [vmem:[#allocation85_spill] sm:$0xff] }
  0xc8   :  { %7190 = vmatprep.subr.bf16.mxu1 %v9512_v40  ;;  %10958 = vst [vmem:[#allocation85_spill] sm:$0xff] %v9570_v61 }
  0xca   :  { %7204 = vmatpush3.bf16.msra.mxu0 %v9531_v3  ;;  %v9558_v3 = vpack.c.bf16 %v9325_v39, %v9320_v21  ;;  %v11003_v21 = vand.u32 4294901760, %v9366_v14  ;;  %v11010_v14 = vand.u32 4294901760, %v9412_v52 }
  0xcb   :  { %7192 = vmatpush3.bf16.msra.mxu1 %v9525_v7  ;;  %7206 = vmatprep.subr.bf16.mxu0 %v9536_v58  ;;  %v9563_v58 = vpack.c.bf16 %v9334_v43, %v9328_v17 }
  0xcc   :  { %7226 = vmatprep.subr.bf16.mxu1 %v9057_v19  ;;  %10955 = vst [vmem:[#allocation83_spill] sm:$0xff] %v9558_v3 }
  0xcd   :  { %10956 = vst [vmem:[#allocation84_spill] sm:$0xff] %v9563_v58 }
  0xce   :  { %1546 = vmatmul.mubr.f32.vlgmr.msra.gmra.mrb[6].mxu1 %v9377_v48  ;;  %7208 = vmatpush3.bf16.msra.mxu0 %v9543_v55  ;;  %v9582_v55 = vpack.c.bf16 %v9412_v52, %v9405_v4  ;;  %v11015_v52 = vand.u32 4294901760, %v9437_v20  ;;  %v11019_v20 = vld [vmem:[#allocation17_spill] sm:$0xff] }
  0xcf   :  { %7228 = vmatpush3.bf16.msra.mxu1 %v10952_v18  ;;  %1788 = vmatprep.mubr.f32.mxu1 %v10953_v49  ;;  %v9575_v49 = vpack.c.bf16 %v9388_v45, %v9385_v6 }
  0xd0   :  { %7230 = vmatprep.subr.bf16.mxu1 %v10954_v47  ;;  %7210 = vmatprep.subr.bf16.mxu0 %v9548_v44  ;;  %v10960_v44 = vld [vmem:[#allocation90_spill] sm:$0xff] }
  0xd1   :  { %10959 = vst [vmem:[#allocation121_spill] sm:$0xff] %v9575_v49  ;;  %10961 = vst [vmem:[#allocation90_spill] sm:$0xff] %v9582_v55 }
  0xd2   :  { %7212 = vmatpush3.bf16.msra.mxu0 %v9558_v3  ;;  %v9587_v3 = vpack.c.bf16 %v9422_v59, %v9419_v63 }
  0xd3   :  { %7232 = vmatpush3.bf16.msra.mxu1 %v10957_v25  ;;  %7214 = vmatprep.subr.bf16.mxu0 %v9563_v58  ;;  %v10963_v58 = vld [vmem:[#allocation95_spill] sm:$0xff] }
  0xd4   :  { %7234 = vmatprep.subr.bf16.mxu1 %v9143_v23  ;;  %10962 = vst [vmem:[#allocation122_spill] sm:$0xff] %v9587_v3  ;;  %10964 = vst [vmem:[#allocation95_spill] sm:$0xff] %v9594_v29 }
  0xd6   :  { %7216 = vmatpush3.bf16.msra.mxu0 %v9570_v61  ;;  %v10965_v61 = vand.u32 4294901760, %v9019_v16  ;;  %v10971_v16 = vand.u32 4294901760, %v9077_v27  ;;  %v10978_v27 = vand.u32 4294901760, %v10943_v62 }
  0xd7   :  { %7236 = vmatpush3.bf16.msra.mxu1 %v9160_v9  ;;  %7218 = vmatprep.subr.bf16.mxu0 %v9575_v49  ;;  %v10966_v49 = vand.u32 4294901760, %v9021_v36  ;;  %v10972_v36 = vand.u32 4294901760, %v9084_v54  ;;  %v10979_v54 = vand.u32 4294901760, %v10944_v2  ;;  %v10987_v2 = vand.u32 4294901760, %v9222_v5 }
  0xd8   :  { %7238 = vmatprep.subr.bf16.mxu1 %v10960_v44 }
  0xd9   :  { %v9601_v31 = vpack.c.bf16 %v10966_v49, %v10965_v61  ;;  %v9617_v61 = vpack.c.bf16 %v10972_v36, %v10971_v16  ;;  %v10974_v49 = vld [vmem:[#allocation11_spill] sm:$0xff]  ;;  %v10981_v16 = vld [vmem:[#allocation89_spill] sm:$0xff]  ;;  %v10982_v36 = vld [vmem:[#allocation12_spill] sm:$0xff] }
  0xda   :  { %7220 = vmatpush3.bf16.msra.mxu0 %v9582_v55  ;;  %v10968_v55 = vand.u32 4294901760, %v9032_v11  ;;  %v10976_v11 = vand.u32 4294901760, %v10941_v53  ;;  %v10985_v53 = vand.u32 4294901760, %v9194_v24  ;;  %v10990_v24 = vand.u32 4294901760, %v10949_v15 }
  0xdb   :  { %7240 = vmatpush3.bf16.msra.mxu1 %v9176_v56  ;;  %7222 = vmatprep.subr.bf16.mxu0 %v9587_v3  ;;  %10967 = vst [vmem:[#allocation123_spill] sm:$0xff] %v9601_v31  ;;  %10973 = vst [vmem:[#allocation125_spill] sm:$0xff] %v9617_v61  ;;  %v129_v3 = vmul.u32 128, %v10974_v49 }
  0xdc   :  { %7242 = vmatprep.subr.bf16.mxu1 %v10963_v58  ;;  %v9610_v7 = vpack.c.bf16 %v10969_v60, %v10968_v55  ;;  %v9628_v60 = vpack.c.bf16 %v10976_v11, %v10975_v57  ;;  %v9635_v55 = vpack.c.bf16 %v10979_v54, %v10978_v27  ;;  %v9648_v62 = vpack.c.bf16 %v10985_v53, %v10984_v8  ;;  %v45_v11 = vld [vmem:[%s10399_s3] sm:$0x1] }
  0xdd   :  { %v9639_v49 = vadd.s32 %v129_v3, %v10982_v36  ;;  %v10988_v57 = vand.u32 4294901760, %v9227_v26  ;;  %v9668_v5 = vpack.c.bf16 %v10991_v32, %v10990_v24  ;;  %v10993_v26 = vand.u32 4294901760, %v9278_v37 }
  0xde   :  { %7224 = vmatpush3.bf16.msra.mxu0 %v9594_v29  ;;  %10970 = vst [vmem:[#allocation124_spill] sm:$0xff] %v9610_v7  ;;  %10977 = vst [vmem:[#allocation126_spill] sm:$0xff] %v9628_v60  ;;  %v10994_v27 = vand.u32 4294901760, %v9281_v38  ;;  %v10996_v8 = vand.u32 4294901760, %v9410_v30  ;;  %v10998_v37 = vand.u32 4294901760, %v9325_v39  ;;  %v11001_v53 = vand.u32 4294901760, %v9334_v43 }
  0xdf   :  { %7244 = vmatpush3.bf16.msra.mxu1 %v9262_v34  ;;  %7258 = vmatprep.subr.bf16.mxu0 %v9601_v31  ;;  %10980 = vst [vmem:[#allocation127_spill] sm:$0xff] %v9635_v55  ;;  %10983 = vst [vmem:[#allocation89_spill] sm:$0xff] %v9639_v49  ;;  %v9655_v3 = vpack.c.bf16 %v10988_v57, %v10987_v2  ;;  %vm131_vm4 = vcmp.lt.s32.totalorder %v9639_v49, 8  ;;  %v11004_v39 = vand.u32 4294901760, %v9369_v41  ;;  %v11007_v43 = vand.u32 4294901760, %v9388_v45 }
  0xe0   :  { %7246 = vmatprep.subr.bf16.mxu1 %v9287_v46  ;;  %10986 = vst [vmem:[#allocation12_spill] sm:$0xff] %v9648_v62  ;;  %10992 = vst [vmem:[#allocation129_spill] sm:$0xff] %v9668_v5  ;;  %v9675_v54 = vpack.c.bf16 %v10994_v27, %v10993_v26  ;;  %v159_v36 = vsel %vm131_vm4, %v45_v11, 0.0  ;;  %v9689_v38 = vpack.c.bf16 %v10998_v37, %v10997_v1  ;;  %v11009_v41 = vand.u32 4294901760, %v9405_v4  ;;  %v11022_v1 = vld [vmem:[#allocation20_spill] sm:$0xff]  ;;  %v11023_v37 = vld [vmem:[#allocation21_spill] sm:$0xff] }
  0xe1   :  { %1684 = vmatmul.mubr.f32.vlgmr.msra.gmra.mrb[8].mxu0 %v9410_v30  ;;  %10989 = vst [vmem:[#allocation128_spill] sm:$0xff] %v9655_v3  ;;  %v9691_v15 = vand.u32 4294901760, %v159_v36  ;;  %v11000_v30 = vand.u32 4294901760, %v9328_v17  ;;  %v11006_v17 = vand.u32 4294901760, %v9385_v6  ;;  %v11012_v6 = vand.u32 4294901760, %v9419_v63 }
  0xe2   :  { %7260 = vmatpush3.bf16.msra.mxu0 %v9610_v7  ;;  %1958 = vmatprep.mubr.f32.mxu0 %v10981_v16  ;;  %10995 = vst [vmem:[#allocation130_spill] sm:$0xff] %v9675_v54  ;;  %10999 = vst [vmem:[#allocation131_spill] sm:$0xff] %v9689_v38  ;;  %v9726_v24 = vpack.c.bf16 %v11010_v14, %v11009_v41  ;;  %v11013_v45 = vand.u32 4294901760, %v9422_v59  ;;  %v11016_v4 = vand.u32 4294901760, %v9439_v50  ;;  %v11018_v59 = vld [vmem:[#allocation16_spill] sm:$0xff]  ;;  %v11020_v50 = vld [vmem:[#allocation18_spill] sm:$0xff] }
  0xe3   :  { %7248 = vmatpush3.bf16.msra.mxu1 %v9331_v51  ;;  %7262 = vmatprep.subr.bf16.mxu0 %v9617_v61  ;;  %v9698_v2 = vpack.c.bf16 %v11001_v53, %v11000_v30  ;;  %v9710_v57 = vsub.f32 %v159_v36, %v9691_v15  ;;  %v9717_v11 = vpack.c.bf16 %v11007_v43, %v11006_v17  ;;  %v11024_v30 = vld [vmem:[#allocation22_spill] sm:$0xff]  ;;  %v11025_v53 = vld [vmem:[#allocation24_spill] sm:$0xff] }
  0xe4   :  { %7250 = vmatprep.subr.bf16.mxu1 %v9339_v33  ;;  %11011 = vst [vmem:[#allocation135_spill] sm:$0xff] %v9726_v24  ;;  %v9736_v26 = vpack.c.bf16 %v11013_v45, %v11012_v6  ;;  %v9745_v27 = vpack.c.bf16 %v11016_v4, %v11015_v52  ;;  %v11029_v17 = vld [vmem:[#allocation32_spill] sm:$0xff]  ;;  %v11030_v43 = vld [vmem:[#allocation34_spill] sm:$0xff] }
  0xe5   :  { %11002 = vst [vmem:[#allocation132_spill] sm:$0xff] %v9698_v2  ;;  %11008 = vst [vmem:[#allocation134_spill] sm:$0xff] %v9717_v11  ;;  %v9729_v32 = vand.u32 4294901760, %v9710_v57  ;;  %v11031_v45 = vld [vmem:[#allocation36_spill] sm:$0xff]  ;;  %v11032_v52 = vld [vmem:[#allocation38_spill] sm:$0xff] }
  0xe6   :  { %7264 = vmatpush3.bf16.msra.mxu0 %v9628_v60  ;;  %11014 = vst [vmem:[#allocation136_spill] sm:$0xff] %v9736_v26  ;;  %11017 = vst [vmem:[#allocation137_spill] sm:$0xff] %v9745_v27 }
  0xe7   :  { %7252 = vmatpush3.bf16.msra.mxu1 %v9372_v35  ;;  %7266 = vmatprep.subr.bf16.mxu0 %v9635_v55  ;;  %v2169_v36 = vsub.f32 %v9710_v57, %v9729_v32 }
  0xe8   :  { %7254 = vmatprep.subr.bf16.mxu1 %v9454_v42 }
  0xe9   :  { %v2170_v63 = vand.u32 4294901760, %v2169_v36  ;;  %v11033_v36 = vld [vmem:[#allocation41_spill] sm:$0xff] }
  0xea   :  { %7268 = vmatpush3.bf16.msra.mxu0 %v9648_v62 }
  0xeb   :  { %7256 = vmatpush3.bf16.msra.mxu1 %v9456_v12  ;;  %7270 = vmatprep.subr.bf16.mxu0 %v9655_v3 }
  0xec   :  { %7290 = vmatprep.subr.bf16.mxu1 %v9057_v19 }
  0xee   :  { %1792 = vmatmul.mubr.f32.vlgmr.msra.gmra.mrb[8].mxu1 %v10996_v8  ;;  %7272 = vmatpush3.bf16.msra.mxu0 %v9668_v5  ;;  %v11021_v8 = vld [vmem:[#allocation19_spill] sm:$0xff] }
  0xef   :  { %7292 = vmatpush3.bf16.msra.mxu1 %v10952_v18  ;;  %2062 = vmatprep.mubr.f32.mxu1 %v10981_v16  ;;  %v9707_v16 = vpack.c.bf16 %v11004_v39, %v11003_v21  ;;  %v11027_v21 = vld [vmem:[#allocation28_spill] sm:$0xff]  ;;  %v11028_v39 = vld [vmem:[#allocation30_spill] sm:$0xff] }
  0xf0   :  { %7294 = vmatprep.subr.bf16.mxu1 %v10954_v47  ;;  %7274 = vmatprep.subr.bf16.mxu0 %v9675_v54  ;;  %v11047_v54 = vld [vmem:[#allocation40_spill] sm:$0xff] }
  0xf1   :  { %11005 = vst [vmem:[#allocation133_spill] sm:$0xff] %v9707_v16 }
  0xf2   :  { %7276 = vmatpush3.bf16.msra.mxu0 %v9689_v38  ;;  %v11043_v38 = vld [vmem:[#allocation35_spill] sm:$0xff] }
  0xf3   :  { %7296 = vmatpush3.bf16.msra.mxu1 %v10957_v25  ;;  %7278 = vmatprep.subr.bf16.mxu0 %v9698_v2  ;;  %v11042_v2 = vld [vmem:[#allocation33_spill] sm:$0xff] }
  0xf4   :  { %7298 = vmatprep.subr.bf16.mxu1 %v9143_v23 }
  0xf6   :  { %7280 = vmatpush3.bf16.msra.mxu0 %v9707_v16  ;;  %v11038_v16 = vld [vmem:[#allocation29_spill] sm:$0xff] }
  0xf7   :  { %7300 = vmatpush3.bf16.msra.mxu1 %v9160_v9  ;;  %7282 = vmatprep.subr.bf16.mxu0 %v9717_v11  ;;  %v11037_v11 = vld [vmem:[#allocation91_spill] sm:$0xff] }
  0xf8   :  { %7302 = vmatprep.subr.bf16.mxu1 %v10960_v44 }
  0xfa   :  { %7284 = vmatpush3.bf16.msra.mxu0 %v9726_v24 }
  0xfb   :  { %7304 = vmatpush3.bf16.msra.mxu1 %v9176_v56  ;;  %7286 = vmatprep.subr.bf16.mxu0 %v9736_v26 }
  0xfc   :  { %7306 = vmatprep.subr.bf16.mxu1 %v10963_v58 }
  0xfe   :  { %7288 = vmatpush3.bf16.msra.mxu0 %v9745_v27  ;;  %v11034_v27 = vld [vmem:[#allocation23_spill] sm:$0xff] }
  0xff   :  { %7308 = vmatpush3.bf16.msra.mxu1 %v9262_v34  ;;  %7322 = vmatprep.subr.bf16.mxu0 %v11018_v59 }
 0x100   :  { %7310 = vmatprep.subr.bf16.mxu1 %v9287_v46 }
 0x101   :  { %1960 = vmatmul.mubr.f32.vlgmr.msra.gmra.mrb[10].mxu0 %v9377_v48 }
 0x102   :  { %6141 = vmatprep.mubr.f32.mxu0 %v2170_v63 }
 0x103   :  { %7312 = vmatpush3.bf16.msra.mxu1 %v9331_v51 }
 0x104   :  { %7314 = vmatprep.subr.bf16.mxu1 %v9339_v33 }
 0x107   :  { %7316 = vmatpush3.bf16.msra.mxu1 %v9372_v35  ;;  %7324 = vmatpush3.bf16.xpose.msra.mxu0 %v11019_v20 }
 0x108   :  { %7318 = vmatprep.subr.bf16.mxu1 %v9454_v42  ;;  %7326 = vmatprep.subr.bf16.mxu0 %v11020_v50 }
 0x10b   :  { %7320 = vmatpush3.bf16.msra.mxu1 %v9456_v12 }
 0x10c   :  { %7514 = vmatprep.subr.bf16.mxu1 %v9057_v19 }
 0x10e   :  { %2064 = vmatmul.mubr.f32.vlgmr.msra.gmra.mrb[10].mxu1 %v9377_v48  ;;  %v11026_v48 = vld [vmem:[#allocation27_spill] sm:$0xff] }
 0x10f   :  { %6345 = vmatprep.mubr.f32.mxu1 %v2170_v63  ;;  %7328 = vmatpush3.bf16.xpose.msra.mxu0 %v11021_v8 }
 0x110   :  { %7330 = vmatprep.subr.bf16.mxu0 %v11022_v1 }
 0x114   :  { %7516 = vmatpush3.bf16.xpose.msra.mxu1 %v10952_v18 }
 0x115   :  { %7518 = vmatprep.subr.bf16.mxu1 %v10954_v47 }
 0x117   :  { %7332 = vmatpush3.bf16.xpose.msra.mxu0 %v11023_v37 }
 0x118   :  { %7334 = vmatprep.subr.bf16.mxu0 %v11024_v30 }
 0x11c   :  { %7520 = vmatpush3.bf16.xpose.msra.mxu1 %v10957_v25 }
 0x11d   :  { %7522 = vmatprep.subr.bf16.mxu1 %v9143_v23 }
 0x11f   :  { %7336 = vmatpush3.bf16.xpose.msra.mxu0 %v11025_v53 }
 0x120   :  { %7338 = vmatprep.subr.bf16.mxu0 %v11026_v48 }
 0x124   :  { %7524 = vmatpush3.bf16.xpose.msra.mxu1 %v9160_v9 }
 0x125   :  { %7526 = vmatprep.subr.bf16.mxu1 %v10960_v44 }
 0x127   :  { %7340 = vmatpush3.bf16.xpose.msra.mxu0 %v11027_v21 }
 0x128   :  { %7342 = vmatprep.subr.bf16.mxu0 %v11028_v39 }
 0x12c   :  { %7528 = vmatpush3.bf16.xpose.msra.mxu1 %v9176_v56 }
 0x12d   :  { %7530 = vmatprep.subr.bf16.mxu1 %v10963_v58 }
 0x12f   :  { %7344 = vmatpush3.bf16.xpose.msra.mxu0 %v11029_v17 }
 0x130   :  { %7346 = vmatprep.subr.bf16.mxu0 %v11030_v43 }
 0x134   :  { %7532 = vmatpush3.bf16.xpose.msra.mxu1 %v9262_v34  ;;  %v5721_v41 = vpop.f32.mrb[0].mxu0 }
 0x135   :  { %7534 = vmatprep.subr.bf16.mxu1 %v9287_v46  ;;  %v5722_v14 = vpop.f32.mrb[1].mxu0 }
 0x136   :  { %v5723_v6 = vadd.f32 %v5722_v14, %v5721_v41  ;;  %v11035_v41 = vld [vmem:[#allocation25_spill] sm:$0xff]  ;;  %v11036_v14 = vld [vmem:[#allocation26_spill] sm:$0xff] }
 0x137   :  { %7348 = vmatpush3.bf16.xpose.msra.mxu0 %v11031_v45 }
 0x138   :  { %7350 = vmatprep.subr.bf16.mxu0 %v11032_v52 }
 0x13c   :  { %7536 = vmatpush3.bf16.xpose.msra.mxu1 %v9331_v51 }
 0x13d   :  { %7538 = vmatprep.subr.bf16.mxu1 %v9339_v33 }
 0x13f   :  { %7352 = vmatpush3.bf16.xpose.msra.mxu0 %v11033_v36 }
 0x140   :  { %7354 = vmatprep.subr.bf16.mxu0 %v11034_v27  ;;  %v11039_v27 = vld [vmem:[#allocation31_spill] sm:$0xff] }
 0x141   :  { %v5756_v4 = vpop.f32.mrb[0].mxu1 }
 0x142   :  { %v5757_v49 = vpop.f32.mrb[1].mxu1 }
 0x143   :  { %v5758_v26 = vadd.f32 %v5757_v49, %v5756_v4  ;;  %v11040_v49 = vld [vmem:[#allocation92_spill] sm:$0xff] }
 0x144   :  { %7540 = vmatpush3.bf16.xpose.msra.mxu1 %v9372_v35 }
 0x145   :  { %v686_v24 = vadd.f32 %v5758_v26, %v5723_v6  ;;  %7542 = vmatprep.subr.bf16.mxu1 %v9454_v42  ;;  %v11041_v26 = vld [vmem:[#allocation94_spill] sm:$0xff] }
 0x146   :  { %6142 = vmatmul.mubr.f32.vlgmr.msra.gmra.mrb[12].mxu0 %v2170_v63 }
 0x147   :  { %7356 = vmatpush3.bf16.xpose.msra.mxu0 %v11035_v41  ;;  %6175 = vmatprep.mubr.f32.mxu0 %v9691_v15 }
 0x148   :  { %7358 = vmatprep.subr.bf16.mxu0 %v11036_v14 }
 0x14c   :  { %7544 = vmatpush3.bf16.xpose.msra.mxu1 %v9456_v12 }
 0x14d   :  { %7546 = vmatprep.subr.bf16.mxu1 %v11037_v11  ;;  %v11044_v11 = vld [vmem:[#allocation96_spill] sm:$0xff] }
 0x14f   :  { %7360 = vmatpush3.bf16.xpose.msra.mxu0 %v11038_v16  ;;  %v11045_v16 = vld [vmem:[#allocation97_spill] sm:$0xff] }
 0x150   :  { %7362 = vmatprep.subr.bf16.mxu0 %v11039_v27 }
 0x153   :  { %6346 = vmatmul.mubr.f32.vlgmr.msra.gmra.mrb[12].mxu1 %v2170_v63  ;;  %v11046_v63 = vld [vmem:[#allocation37_spill] sm:$0xff] }
 0x154   :  { %7548 = vmatpush3.bf16.xpose.msra.mxu1 %v11040_v49  ;;  %6379 = vmatprep.mubr.f32.mxu1 %v9691_v15  ;;  %v5791_v6 = vpop.f32.mrb[2].mxu0 }
 0x155   :  { %7550 = vmatprep.subr.bf16.mxu1 %v11041_v26  ;;  %v5792_v4 = vpop.f32.mrb[3].mxu0  ;;  %v11048_v26 = vld [vmem:[#allocation100_spill] sm:$0xff] }
 0x156   :  { %v5793_v41 = vadd.f32 %v5792_v4, %v5791_v6  ;;  %v11049_v6 = vld [vmem:[#allocation103_spill] sm:$0xff]  ;;  %v11050_v4 = vld [vmem:[#allocation42_spill] sm:$0xff] }
 0x157   :  { %7364 = vmatpush3.bf16.xpose.msra.mxu0 %v11042_v2 }
 0x158   :  { %v824_v14 = vadd.f32 %v5793_v41, %v686_v24  ;;  %7366 = vmatprep.subr.bf16.mxu0 %v11043_v38  ;;  %v11051_v24 = vld [vmem:[#allocation44_spill] sm:$0xff]  ;;  %v11052_v41 = vld [vmem:[#allocation106_spill] sm:$0xff] }
 0x15c   :  { %7552 = vmatpush3.bf16.xpose.msra.mxu1 %v11044_v11  ;;  %v11054_v11 = vld [vmem:[#allocation52_spill] sm:$0xff] }
 0x15d   :  { %7554 = vmatprep.subr.bf16.mxu1 %v11045_v16  ;;  %v11053_v16 = vld [vmem:[#allocation48_spill] sm:$0xff] }
 0x15f   :  { %7368 = vmatpush3.bf16.xpose.msra.mxu0 %v11046_v63 }
 0x160   :  { %7370 = vmatprep.subr.bf16.mxu0 %v11047_v54 }
 0x161   :  { %v5826_v27 = vpop.f32.mrb[2].mxu1 }
 0x162   :  { %v5827_v49 = vpop.f32.mrb[3].mxu1 }
 0x163   :  { %v5828_v5 = vadd.f32 %v5827_v49, %v5826_v27  ;;  %v11055_v49 = vld [vmem:[#allocation53_spill] sm:$0xff] }
 0x164   :  { %7556 = vmatpush3.bf16.xpose.msra.mxu1 %v11048_v26  ;;  %v11056_v26 = vld [vmem:[#allocation55_spill] sm:$0xff] }
 0x165   :  { %v932_v3 = vadd.f32 %v5828_v5, %v824_v14  ;;  %7558 = vmatprep.subr.bf16.mxu1 %v11049_v6 }
 0x167   :  { %7372 = vmatpush3.bf16.xpose.msra.mxu0 %v11050_v4 }
 0x168   :  { %7374 = vmatprep.subr.bf16.mxu0 %v11051_v24  ;;  %v11057_v24 = vld [vmem:[#allocation112_spill] sm:$0xff] }
 0x16c   :  { %7560 = vmatpush3.bf16.xpose.msra.mxu1 %v9382_v28  ;;  %v11058_v28 = vld [vmem:[#allocation63_spill] sm:$0xff] }
 0x16d   :  { %7562 = vmatprep.subr.bf16.mxu1 %v11052_v41 }
 0x16f   :  { %7376 = vmatpush3.bf16.xpose.msra.mxu0 %v11053_v16  ;;  %v11059_v16 = vld [vmem:[#allocation47_spill] sm:$0xff] }
 0x170   :  { %7378 = vmatprep.subr.bf16.mxu0 %v11054_v11 }
 0x174   :  { %7564 = vmatpush3.bf16.xpose.msra.mxu1 %v9452_v10  ;;  %v5861_v27 = vpop.f32.mrb[4].mxu0 }
 0x175   :  { %7566 = vmatprep.subr.bf16.mxu1 %v9458_v13  ;;  %v5862_v5 = vpop.f32.mrb[5].mxu0 }
 0x176   :  { %v5863_v14 = vadd.f32 %v5862_v5, %v5861_v27  ;;  %v11061_v27 = vld [vmem:[#allocation51_spill] sm:$0xff] }
 0x177   :  { %7380 = vmatpush3.bf16.xpose.msra.mxu0 %v11055_v49  ;;  %v11062_v5 = vld [vmem:[#allocation87_spill] sm:$0xff] }
 0x178   :  { %v1100_v6 = vadd.f32 %v5863_v14, %v932_v3  ;;  %7382 = vmatprep.subr.bf16.mxu0 %v11056_v26  ;;  %v11060_v3 = vld [vmem:[#allocation50_spill] sm:$0xff]  ;;  %v11063_v14 = vld [vmem:[#allocation111_spill] sm:$0xff] }
 0x17c   :  { %7568 = vmatpush3.bf16.xpose.msra.mxu1 %v11057_v24  ;;  %v11068_v24 = vld [vmem:[#allocation57_spill] sm:$0xff] }
 0x17d   :  { %7570 = vmatprep.subr.bf16.mxu1 %v9496_v22  ;;  %v11064_v22 = vld [vmem:[#allocation54_spill] sm:$0xff] }
 0x17f   :  { %7384 = vmatpush3.bf16.xpose.msra.mxu0 %v11058_v28  ;;  %v11073_v28 = vld [vmem:[#allocation73_spill] sm:$0xff] }
 0x180   :  { %7386 = vmatprep.subr.bf16.mxu0 %v11059_v16 }
 0x181   :  { %v5896_v41 = vpop.f32.mrb[4].mxu1 }
 0x182   :  { %v5897_v11 = vpop.f32.mrb[5].mxu1 }
 0x183   :  { %v5898_v10 = vadd.f32 %v5897_v11, %v5896_v41  ;;  %v11065_v11 = vld [vmem:[#allocation56_spill] sm:$0xff] }
 0x184   :  { %7572 = vmatpush3.bf16.xpose.msra.mxu1 %v9508_v0 }
 0x185   :  { %v1204_v13 = vadd.f32 %v5898_v10, %v1100_v6  ;;  %7574 = vmatprep.subr.bf16.mxu1 %v9512_v40  ;;  %v11066_v10 = vld [vmem:[#allocation114_spill] sm:$0xff]  ;;  %v11067_v6 = vld [vmem:[#allocation115_spill] sm:$0xff] }
 0x186   :  { %6176 = vmatmul.mubr.f32.vlgmr.msra.gmra.mrb[12].mxu0 %v9691_v15 }
 0x187   :  { %7388 = vmatpush3.bf16.xpose.msra.mxu0 %v11060_v3  ;;  %6209 = vmatprep.mubr.f32.mxu0 %v9710_v57  ;;  %v11072_v3 = vld [vmem:[#allocation72_spill] sm:$0xff] }
 0x188   :  { %7390 = vmatprep.subr.bf16.mxu0 %v11061_v27  ;;  %v11069_v27 = vld [vmem:[#allocation58_spill] sm:$0xff] }
 0x18c   :  { %7576 = vmatpush3.bf16.xpose.msra.mxu1 %v11062_v5 }
 0x18d   :  { %7578 = vmatprep.subr.bf16.mxu1 %v11063_v14  ;;  %v11070_v14 = vld [vmem:[#allocation39_spill] sm:$0xff] }
 0x18f   :  { %7392 = vmatpush3.bf16.xpose.msra.mxu0 %v11064_v22  ;;  %v11071_v22 = vld [vmem:[#allocation86_spill] sm:$0xff] }
 0x190   :  { %7394 = vmatprep.subr.bf16.mxu0 %v11065_v11 }
 0x193   :  { %6380 = vmatmul.mubr.f32.vlgmr.msra.gmra.mrb[12].mxu1 %v9691_v15 }
 0x194   :  { %7580 = vmatpush3.bf16.xpose.msra.mxu1 %v11066_v10  ;;  %6413 = vmatprep.mubr.f32.mxu1 %v9710_v57  ;;  %v5931_v41 = vpop.f32.mrb[6].mxu0 }
 0x195   :  { %7582 = vmatprep.subr.bf16.mxu1 %v11067_v6  ;;  %v5932_v40 = vpop.f32.mrb[7].mxu0  ;;  %v11074_v6 = vld [vmem:[#allocation118_spill] sm:$0xff] }
 0x196   :  { %v5933_v0 = vadd.f32 %v5932_v40, %v5931_v41  ;;  %v11075_v40 = vld [vmem:[#allocation119_spill] sm:$0xff]  ;;  %v11076_v41 = vld [vmem:[#allocation74_spill] sm:$0xff] }
 0x197   :  { %7396 = vmatpush3.bf16.xpose.msra.mxu0 %v11068_v24 }
 0x198   :  { %v1316_v5 = vadd.f32 %v5933_v0, %v1204_v13  ;;  %7398 = vmatprep.subr.bf16.mxu0 %v11069_v27  ;;  %v11077_v13 = vld [vmem:[#allocation75_spill] sm:$0xff]  ;;  %v11078_v0 = vld [vmem:[#allocation93_spill] sm:$0xff] }
 0x199   :  { %v11082_v27 = vld [vmem:[#allocation83_spill] sm:$0xff] }
 0x19c   :  { %7584 = vmatpush3.bf16.xpose.msra.mxu1 %v11070_v14  ;;  %v11079_v14 = vld [vmem:[#allocation120_spill] sm:$0xff] }
 0x19d   :  { %7586 = vmatprep.subr.bf16.mxu1 %v11071_v22  ;;  %v11080_v22 = vld [vmem:[#allocation76_spill] sm:$0xff] }
 0x19f   :  { %7400 = vmatpush3.bf16.xpose.msra.mxu0 %v11072_v3  ;;  %v11081_v3 = vld [vmem:[#allocation77_spill] sm:$0xff] }
 0x1a0   :  { %7402 = vmatprep.subr.bf16.mxu0 %v11073_v28 }
 0x1a1   :  { %v5966_v11 = vpop.f32.mrb[6].mxu1 }
 0x1a2   :  { %v5967_v10 = vpop.f32.mrb[7].mxu1 }
 0x1a3   :  { %v5968_v26 = vadd.f32 %v5967_v10, %v5966_v11  ;;  %v11083_v11 = vld [vmem:[#allocation84_spill] sm:$0xff] }
 0x1a4   :  { %7588 = vmatpush3.bf16.xpose.msra.mxu1 %v11074_v6 }
 0x1a5   :  { %v1548_v49 = vadd.f32 %v5968_v26, %v1316_v5  ;;  %7590 = vmatprep.subr.bf16.mxu1 %v11075_v40  ;;  %v11084_v40 = vld [vmem:[#allocation78_spill] sm:$0xff] }
 0x1a7   :  { %7404 = vmatpush3.bf16.xpose.msra.mxu0 %v11076_v41  ;;  %v11085_v41 = vld [vmem:[#allocation79_spill] sm:$0xff] }
 0x1a8   :  { %7406 = vmatprep.subr.bf16.mxu0 %v11077_v13  ;;  %v11086_v13 = vld [vmem:[#allocation85_spill] sm:$0xff] }
 0x1ac   :  { %7592 = vmatpush3.bf16.xpose.msra.mxu1 %v11078_v0  ;;  %v11087_v0 = vld [vmem:[#allocation121_spill] sm:$0xff] }
 0x1ad   :  { %7594 = vmatprep.subr.bf16.mxu1 %v11079_v14 }
 0x1af   :  { %7408 = vmatpush3.bf16.xpose.msra.mxu0 %v11080_v22  ;;  %v11088_v22 = vld [vmem:[#allocation80_spill] sm:$0xff] }
 0x1b0   :  { %7410 = vmatprep.subr.bf16.mxu0 %v11081_v3 }
 0x1b4   :  { %7596 = vmatpush3.bf16.xpose.msra.mxu1 %v11082_v27  ;;  %v6001_v10 = vpop.f32.mrb[8].mxu0 }
 0x1b5   :  { %7598 = vmatprep.subr.bf16.mxu1 %v11083_v11  ;;  %v6002_v26 = vpop.f32.mrb[9].mxu0  ;;  %v11089_v11 = vld [vmem:[#allocation90_spill] sm:$0xff] }
 0x1b6   :  { %v6003_v5 = vadd.f32 %v6002_v26, %v6001_v10  ;;  %v11090_v10 = vld [vmem:[#allocation122_spill] sm:$0xff] }
 0x1b7   :  { %7412 = vmatpush3.bf16.xpose.msra.mxu0 %v11084_v40 }
 0x1b8   :  { %v1686_v6 = vadd.f32 %v6003_v5, %v1548_v49  ;;  %7414 = vmatprep.subr.bf16.mxu0 %v11085_v41 }
 0x1bc   :  { %7600 = vmatpush3.bf16.xpose.msra.mxu1 %v11086_v13  ;;  %v11113_v13 = vld [vmem:[#allocation134_spill] sm:$0xff] }
 0x1bd   :  { %7602 = vmatprep.subr.bf16.mxu1 %v11087_v0  ;;  %v11110_v0 = vld [vmem:[#allocation45_spill] sm:$0xff] }
 0x1bf   :  { %7416 = vmatpush3.bf16.xpose.msra.mxu0 %v11088_v22 }
 0x1c0   :  { %7418 = vmatprep.subr.bf16.mxu0 %v11018_v59 }
 0x1c1   :  { %v6036_v14 = vpop.f32.mrb[8].mxu1 }
 0x1c2   :  { %v6037_v3 = vpop.f32.mrb[9].mxu1 }
 0x1c3   :  { %v6038_v27 = vadd.f32 %v6037_v3, %v6036_v14 }
 0x1c4   :  { %7604 = vmatpush3.bf16.xpose.msra.mxu1 %v11089_v11  ;;  %v11109_v11 = vld [vmem:[#allocation132_spill] sm:$0xff] }
 0x1c5   :  { %v1794_v28 = vadd.f32 %v6038_v27, %v1686_v6  ;;  %7606 = vmatprep.subr.bf16.mxu1 %v11090_v10  ;;  %v11106_v10 = vld [vmem:[#allocation71_spill] sm:$0xff] }
 0x1c6   :  { %6210 = vmatmul.mubr.f32.vlgmr.msra.gmra.mrb[12].mxu0 %v9710_v57 }
 0x1c7   :  { %7420 = vmatpush3.bf16.xpose.msra.mxu0 %v11019_v20  ;;  %6243 = vmatprep.mubr.f32.mxu0 %v9729_v32 }
 0x1c8   :  { %7422 = vmatprep.subr.bf16.mxu0 %v11020_v50 }
 0x1cc   :  { %7608 = vmatpush3.bf16.xpose.msra.mxu1 %v9594_v29  ;;  %v11105_v29 = vld [vmem:[#allocation130_spill] sm:$0xff] }
 0x1cd   :  { %7610 = vmatprep.subr.bf16.mxu1 %v9057_v19 }
 0x1cf   :  { %7424 = vmatpush3.bf16.xpose.msra.mxu0 %v11021_v8 }
 0x1d0   :  { %7426 = vmatprep.subr.bf16.mxu0 %v11022_v1 }
 0x1d3   :  { %6414 = vmatmul.mubr.f32.vlgmr.msra.gmra.mrb[12].mxu1 %v9710_v57 }
 0x1d4   :  { %7612 = vmatpush3.bf16.xpose.msra.mxu1 %v10952_v18  ;;  %6447 = vmatprep.mubr.f32.mxu1 %v9729_v32  ;;  %v6071_v49 = vpop.f32.mrb[10].mxu0 }
 0x1d5   :  { %7614 = vmatprep.subr.bf16.mxu1 %v10954_v47  ;;  %v6072_v3 = vpop.f32.mrb[11].mxu0 }
 0x1d6   :  { %v6073_v27 = vadd.f32 %v6072_v3, %v6071_v49  ;;  %v11093_v49 = vld [vmem:[#allocation60_spill] sm:$0xff]  ;;  %v11094_v3 = vld [vmem:[#allocation61_spill] sm:$0xff] }
 0x1d7   :  { %7428 = vmatpush3.bf16.xpose.msra.mxu0 %v11023_v37 }
 0x1d8   :  { %v1962_v14 = vadd.f32 %v6073_v27, %v1794_v28  ;;  %7430 = vmatprep.subr.bf16.mxu0 %v11024_v30  ;;  %v11092_v28 = vld [vmem:[#allocation59_spill] sm:$0xff]  ;;  %v11095_v27 = vld [vmem:[#allocation62_spill] sm:$0xff] }
 0x1dc   :  { %7616 = vmatpush3.bf16.xpose.msra.mxu1 %v10957_v25 }
 0x1dd   :  { %7618 = vmatprep.subr.bf16.mxu1 %v9143_v23 }
 0x1df   :  { %7432 = vmatpush3.bf16.xpose.msra.mxu0 %v11025_v53 }
 0x1e0   :  { %7434 = vmatprep.subr.bf16.mxu0 %v11026_v48 }
 0x1e1   :  { %v6106_v6 = vpop.f32.mrb[10].mxu1 }
 0x1e2   :  { %v6107_v57 = vpop.f32.mrb[11].mxu1 }
 0x1e3   :  { %v6108_v26 = vadd.f32 %v6107_v57, %v6106_v6  ;;  %v11097_v6 = vld [vmem:[#allocation65_spill] sm:$0xff]  ;;  %v11098_v57 = vld [vmem:[#allocation66_spill] sm:$0xff] }
 0x1e4   :  { %7620 = vmatpush3.bf16.xpose.msra.mxu1 %v9160_v9 }
 0x1e5   :  { %v9881_v5 = vadd.f32 %v6108_v26, %v1962_v14  ;;  %7622 = vmatprep.subr.bf16.mxu1 %v10960_v44  ;;  %v11096_v14 = vld [vmem:[#allocation64_spill] sm:$0xff]  ;;  %v11099_v26 = vld [vmem:[#allocation67_spill] sm:$0xff] }
 0x1e7   :  { %11091 = vst [vmem:[#allocation16_spill] sm:$0xff] %v9881_v5  ;;  %7436 = vmatpush3.bf16.xpose.msra.mxu0 %v11027_v21  ;;  %v11100_v5 = vld [vmem:[#allocation68_spill] sm:$0xff] }
 0x1e8   :  { %7438 = vmatprep.subr.bf16.mxu0 %v11028_v39 }
 0x1ec   :  { %7624 = vmatpush3.bf16.xpose.msra.mxu1 %v9176_v56 }
 0x1ed   :  { %7626 = vmatprep.subr.bf16.mxu1 %v10963_v58 }
 0x1ef   :  { %7440 = vmatpush3.bf16.xpose.msra.mxu0 %v11029_v17 }
 0x1f0   :  { %7442 = vmatprep.subr.bf16.mxu0 %v11030_v43 }
 0x1f4   :  { %7628 = vmatpush3.bf16.xpose.msra.mxu1 %v9262_v34 }
 0x1f5   :  { %7630 = vmatprep.subr.bf16.mxu1 %v9287_v46 }
 0x1f7   :  { %7444 = vmatpush3.bf16.xpose.msra.mxu0 %v11031_v45 }
 0x1f8   :  { %7446 = vmatprep.subr.bf16.mxu0 %v11032_v52 }
 0x1fc   :  { %7632 = vmatpush3.bf16.xpose.msra.mxu1 %v9331_v51 }
 0x1fd   :  { %7634 = vmatprep.subr.bf16.mxu1 %v9339_v33 }
 0x1ff   :  { %7448 = vmatpush3.bf16.xpose.msra.mxu0 %v11033_v36 }
 0x200   :  { %7450 = vmatprep.subr.bf16.mxu0 %v11092_v28 }
 0x204   :  { %7636 = vmatpush3.bf16.xpose.msra.mxu1 %v9372_v35 }
 0x205   :  { %7638 = vmatprep.subr.bf16.mxu1 %v9454_v42 }
 0x206   :  { %6244 = vmatmul.mubr.f32.vlgmr.msra.gmra.mrb[12].mxu0 %v9729_v32 }
 0x207   :  { %7452 = vmatpush3.bf16.xpose.msra.mxu0 %v11093_v49  ;;  %6277 = vmatprep.mubr.f32.mxu0 %v9691_v15 }
 0x208   :  { %7454 = vmatprep.subr.bf16.mxu0 %v11094_v3 }
 0x20c   :  { %7640 = vmatpush3.bf16.xpose.msra.mxu1 %v9456_v12 }
 0x20d   :  { %7642 = vmatprep.subr.bf16.mxu1 %v9601_v31  ;;  %v11103_v31 = vld [vmem:[#allocation70_spill] sm:$0xff] }
 0x20f   :  { %7456 = vmatpush3.bf16.xpose.msra.mxu0 %v11095_v27 }
 0x210   :  { %7458 = vmatprep.subr.bf16.mxu0 %v11096_v14 }
 0x213   :  { %6448 = vmatmul.mubr.f32.vlgmr.msra.gmra.mrb[12].mxu1 %v9729_v32  ;;  %v11101_v32 = vld [vmem:[#allocation128_spill] sm:$0xff] }
 0x214   :  { %7644 = vmatpush3.bf16.xpose.msra.mxu1 %v9610_v7  ;;  %6481 = vmatprep.mubr.f32.mxu1 %v9691_v15  ;;  %v11102_v7 = vld [vmem:[#allocation69_spill] sm:$0xff] }
 0x215   :  { %7646 = vmatprep.subr.bf16.mxu1 %v9617_v61  ;;  %v11104_v61 = vld [vmem:[#allocation129_spill] sm:$0xff] }
 0x217   :  { %7460 = vmatpush3.bf16.xpose.msra.mxu0 %v11097_v6 }
 0x218   :  { %7462 = vmatprep.subr.bf16.mxu0 %v11098_v57 }
 0x21c   :  { %7648 = vmatpush3.bf16.xpose.msra.mxu1 %v9628_v60  ;;  %v11107_v60 = vld [vmem:[#allocation49_spill] sm:$0xff] }
 0x21d   :  { %7650 = vmatprep.subr.bf16.mxu1 %v9635_v55  ;;  %v11108_v55 = vld [vmem:[#allocation131_spill] sm:$0xff] }
 0x21f   :  { %7464 = vmatpush3.bf16.xpose.msra.mxu0 %v11099_v26 }
 0x220   :  { %7466 = vmatprep.subr.bf16.mxu0 %v11100_v5 }
 0x224   :  { %7652 = vmatpush3.bf16.xpose.msra.mxu1 %v9648_v62  ;;  %v11111_v62 = vld [vmem:[#allocation81_spill] sm:$0xff] }
 0x225   :  { %7654 = vmatprep.subr.bf16.mxu1 %v11101_v32  ;;  %v11112_v32 = vld [vmem:[#allocation133_spill] sm:$0xff] }
 0x227   :  { %7468 = vmatpush3.bf16.xpose.msra.mxu0 %v11102_v7 }
 0x228   :  { %7470 = vmatprep.subr.bf16.mxu0 %v11103_v31  ;;  %v11114_v31 = vld [vmem:[#allocation82_spill] sm:$0xff] }
 0x22c   :  { %7656 = vmatpush3.bf16.xpose.msra.mxu1 %v11104_v61  ;;  %v11116_v61 = vld [vmem:[#allocation136_spill] sm:$0xff] }
 0x22d   :  { %7658 = vmatprep.subr.bf16.mxu1 %v11105_v29  ;;  %v11115_v29 = vld [vmem:[#allocation135_spill] sm:$0xff] }
 0x22f   :  { %7472 = vmatpush3.bf16.xpose.msra.mxu0 %v11106_v10 }
 0x230   :  { %7474 = vmatprep.subr.bf16.mxu0 %v11107_v60 }
 0x234   :  { %7660 = vmatpush3.bf16.xpose.msra.mxu1 %v11108_v55  ;;  %v10718_v55 = vmov 0.0  }
 0x235   :  { %7662 = vmatprep.subr.bf16.mxu1 %v11109_v11  ;;  %v11117_v11 = vld [vmem:[#allocation137_spill] sm:$0xff] }
 0x237   :  { %7476 = vmatpush3.bf16.xpose.msra.mxu0 %v11110_v0 }
 0x238   :  { %7478 = vmatprep.subr.bf16.mxu0 %v11111_v62 }
 0x23c   :  { %7664 = vmatpush3.bf16.xpose.msra.mxu1 %v11112_v32 }
 0x23d   :  { %7666 = vmatprep.subr.bf16.mxu1 %v11113_v13  ;;  %v11121_v13 = vld [vmem:[#allocation29_spill] sm:$0xff] }
 0x23f   :  { %7480 = vmatpush3.bf16.xpose.msra.mxu0 %v11114_v31 }
 0x240   :  { %7482 = vmatprep.subr.bf16.mxu0 %v11018_v59 }
 0x244   :  { %7668 = vmatpush3.bf16.xpose.msra.mxu1 %v11115_v29  ;;  %v11120_v29 = vld [vmem:[#allocation26_spill] sm:$0xff] }
 0x245   :  { %7670 = vmatprep.subr.bf16.mxu1 %v11116_v61  ;;  %v11119_v61 = vld [vmem:[#allocation25_spill] sm:$0xff] }
 0x246   :  { %6278 = vmatmul.mubr.f32.vlgmr.msra.gmra.mrb[12].mxu0 %v9691_v15 }
 0x247   :  { %7484 = vmatpush3.bf16.xpose.msra.mxu0 %v11019_v20  ;;  %6311 = vmatprep.mubr.f32.mxu0 %v9691_v15 }
 0x248   :  { %7486 = vmatprep.subr.bf16.mxu0 %v11020_v50 }
 0x24c   :  { %7672 = vmatpush3.bf16.xpose.msra.mxu1 %v11117_v11  ;;  %v11118_v11 = vld [vmem:[#allocation23_spill] sm:$0xff] }
 0x24d   :  { %7674 = vmatprep.subr.bf16.mxu1 %v9057_v19 }
 0x24f   :  { %7488 = vmatpush3.bf16.xpose.msra.mxu0 %v11021_v8 }
 0x250   :  { %7490 = vmatprep.subr.bf16.mxu0 %v11022_v1 }
 0x253   :  { %6482 = vmatmul.mubr.f32.vlgmr.msra.gmra.mrb[12].mxu1 %v9691_v15 }
 0x254   :  { %7676 = vmatpush3.bf16.xpose.msra.mxu1 %v10952_v18  ;;  %6515 = vmatprep.mubr.f32.mxu1 %v9691_v15 }
 0x255   :  { %7678 = vmatprep.subr.bf16.mxu1 %v10954_v47 }
 0x257   :  { %7492 = vmatpush3.bf16.xpose.msra.mxu0 %v11023_v37 }
 0x258   :  { %7494 = vmatprep.subr.bf16.mxu0 %v11024_v30 }
 0x25c   :  { %7680 = vmatpush3.bf16.xpose.msra.mxu1 %v10957_v25 }
 0x25d   :  { %7682 = vmatprep.subr.bf16.mxu1 %v9143_v23 }
 0x25f   :  { %7496 = vmatpush3.bf16.xpose.msra.mxu0 %v11025_v53 }
 0x260   :  { %7498 = vmatprep.subr.bf16.mxu0 %v11026_v48 }
 0x264   :  { %7684 = vmatpush3.bf16.xpose.msra.mxu1 %v9160_v9 }
 0x265   :  { %7686 = vmatprep.subr.bf16.mxu1 %v10960_v44 }
 0x267   :  { %7500 = vmatpush3.bf16.xpose.msra.mxu0 %v11027_v21 }
 0x268   :  { %7502 = vmatprep.subr.bf16.mxu0 %v11028_v39 }
 0x26c   :  { %7688 = vmatpush3.bf16.xpose.msra.mxu1 %v9176_v56 }
 0x26d   :  { %7690 = vmatprep.subr.bf16.mxu1 %v10963_v58 }
 0x26f   :  { %7504 = vmatpush3.bf16.xpose.msra.mxu0 %v11029_v17 }
 0x270   :  { %7506 = vmatprep.subr.bf16.mxu0 %v11030_v43 }
 0x274   :  { %7692 = vmatpush3.bf16.xpose.msra.mxu1 %v9262_v34 }
 0x275   :  { %7694 = vmatprep.subr.bf16.mxu1 %v9287_v46 }
 0x277   :  { %7508 = vmatpush3.bf16.xpose.msra.mxu0 %v11031_v45 }
 0x278   :  { %7510 = vmatprep.subr.bf16.mxu0 %v11032_v52 }
 0x27c   :  { %7696 = vmatpush3.bf16.xpose.msra.mxu1 %v9331_v51 }
 0x27d   :  { %7698 = vmatprep.subr.bf16.mxu1 %v9339_v33 }
 0x27f   :  { %7512 = vmatpush3.bf16.xpose.msra.mxu0 %v11033_v36 }
 0x280   :  { %7706 = vmatprep.subr.bf16.mxu0 %v11018_v59 }
 0x284   :  { %7700 = vmatpush3.bf16.xpose.msra.mxu1 %v9372_v35 }
 0x285   :  { %7702 = vmatprep.subr.bf16.mxu1 %v9454_v42 }
 0x286   :  { %6312 = vmatmul.mubr.f32.vlgmr.msra.gmra.mrb[12].mxu0 %v9691_v15 }
 0x287   :  { %7708 = vmatpush3.bf16.msra.mxu0 %v11019_v20 }
 0x288   :  { %7710 = vmatprep.subr.bf16.mxu0 %v11020_v50 }
 0x28b   :  { %7712 = vmatpush3.bf16.msra.mxu0 %v11021_v8 }
 0x28c   :  { %7704 = vmatpush3.bf16.xpose.msra.mxu1 %v9456_v12  ;;  %7714 = vmatprep.subr.bf16.mxu0 %v11022_v1  ;;  %v11133_v12 = vld [vmem:[#allocation43_spill] sm:$0xff] }
 0x28d   :  { %7738 = vmatprep.subr.bf16.mxu1 %v11118_v11  ;;  %v11122_v11 = vld [vmem:[#allocation31_spill] sm:$0xff] }
 0x28f   :  { %7716 = vmatpush3.bf16.msra.mxu0 %v11023_v37 }
 0x290   :  { %7718 = vmatprep.subr.bf16.mxu0 %v11024_v30 }
 0x293   :  { %6516 = vmatmul.mubr.f32.vlgmr.msra.gmra.mrb[12].mxu1 %v9691_v15  ;;  %7720 = vmatpush3.bf16.msra.mxu0 %v11025_v53  ;;  %v11126_v15 = vld [vmem:[#allocation53_spill] sm:$0xff] }
 0x294   :  { %7740 = vmatpush3.bf16.msra.mxu1 %v11119_v61  ;;  %7722 = vmatprep.subr.bf16.mxu0 %v11026_v48  ;;  %v11124_v61 = vld [vmem:[#allocation48_spill] sm:$0xff] }
 0x295   :  { %7742 = vmatprep.subr.bf16.mxu1 %v11120_v29  ;;  %v11123_v29 = vld [vmem:[#allocation44_spill] sm:$0xff] }
 0x297   :  { %7724 = vmatpush3.bf16.msra.mxu0 %v11027_v21 }
 0x298   :  { %7744 = vmatpush3.bf16.msra.mxu1 %v11121_v13  ;;  %7726 = vmatprep.subr.bf16.mxu0 %v11028_v39 }
 0x299   :  { %7746 = vmatprep.subr.bf16.mxu1 %v11122_v11 }
 0x29b   :  { %7728 = vmatpush3.bf16.msra.mxu0 %v11029_v17 }
 0x29c   :  { %7748 = vmatpush3.bf16.msra.mxu1 %v11042_v2  ;;  %7730 = vmatprep.subr.bf16.mxu0 %v11030_v43  ;;  %v11127_v2 = vld [vmem:[#allocation55_spill] sm:$0xff] }
 0x29d   :  { %7750 = vmatprep.subr.bf16.mxu1 %v11043_v38  ;;  %v11125_v38 = vld [vmem:[#allocation52_spill] sm:$0xff] }
 0x29f   :  { %7732 = vmatpush3.bf16.msra.mxu0 %v11031_v45 }
 0x2a0   :  { %7752 = vmatpush3.bf16.msra.mxu1 %v11046_v63  ;;  %7734 = vmatprep.subr.bf16.mxu0 %v11032_v52  ;;  %v110_v63 = vld [vmem:[#allocation5] sm:$0xf] }
 0x2a1   :  { %7754 = vmatprep.subr.bf16.mxu1 %v11047_v54  ;;  %v11128_v54 = vld [vmem:[#allocation63_spill] sm:$0xff] }
 0x2a3   :  { %7736 = vmatpush3.bf16.msra.mxu0 %v11033_v36 }
 0x2a4   :  { %7756 = vmatpush3.bf16.msra.mxu1 %v11050_v4  ;;  %7770 = vmatprep.subr.bf16.mxu0 %v11059_v16  ;;  %v11129_v4 = vld [vmem:[#allocation11_spill] sm:$0xff] }
 0x2a5   :  { %7758 = vmatprep.subr.bf16.mxu1 %v11123_v29  ;;  %v11130_v13 = vsub.s32 0, %v11129_v4  ;;  %v11131_v29 = vsub.s32 1, %v11129_v4 }
 0x2a7   :  { %v3783_v11 = vrot.slane %v110_v63, %v11130_v13  ;;  %v3787_v32 = vrot.slane %v110_v63, %v11131_v29  ;;  %v11134_v29 = vsub.s32 2, %v11129_v4 }
 0x2a8   :  { %7760 = vmatpush3.bf16.msra.mxu1 %v11124_v61 }
 0x2a9   :  { %7762 = vmatprep.subr.bf16.mxu1 %v11125_v38 }
 0x2ac   :  { %7764 = vmatpush3.bf16.msra.mxu1 %v11126_v15  ;;  %v11132_v15 = vld [vmem:[#allocation46_spill] sm:$0xff] }
 0x2ad   :  { %7766 = vmatprep.subr.bf16.mxu1 %v11127_v2 }
 0x2b0   :  { %7768 = vmatpush3.bf16.msra.mxu1 %v11128_v54 }
 0x2b1   :  { %7802 = vmatprep.subr.bf16.mxu1 %v11018_v59 }
 0x359   :  { %v2919_v16 = vpop.f32.mrb[12].mxu0 }
 0x35a   :  { %vm3800_vm5 = vcmp.eq.f32.partialorder %v2919_v16, %v3783_v11  ;;  %v2921_v61 = vpop.f32.mrb[13].mxu0  ;;  %v10021_v11 = vrot.slane %v110_v63, %v11134_v29 }
 0x35b   :  { %v5681_v38 = vsel %vm3800_vm5, 1.0, %v10718_v55  ;;  %vm3801_vm6 = vcmp.eq.f32.partialorder %v2921_v61, %v3787_v32  ;;  %v11135_v32 = vsub.s32 3, %v11129_v4 }
 0x35c   :  { %v3812_v2 = vmul.f32 %v5681_v38, %v11132_v15  ;;  %v5682_v54 = vsel %vm3801_vm6, 1.0, %v10718_v55  ;;  %v11137_v55 = vld [vmem:[#allocation51_spill] sm:$0xff] }
 0x35d   :  { %v3813_v42 = vmul.f32 %v5682_v54, %v11133_v12  ;;  %v10025_v61 = vrot.slane %v110_v63, %v11135_v32  ;;  %v11136_v32 = vld [vmem:[#allocation50_spill] sm:$0xff]  ;;  %v11139_v12 = vld [vmem:[#allocation56_spill] sm:$0xff] }
 0x35e   :  { %v10016_v35 = vand.u32 4294901760, %v3812_v2 }
 0x35f   :  { %v3912_v33 = vand.u32 4294901760, %v3813_v42 }
 0x360   :  { %v3919_v13 = vsub.f32 %v3812_v2, %v10016_v35 }
 0x361   :  { %v3913_v51 = vsub.f32 %v3813_v42, %v3912_v33  ;;  %4153 = vmatprep.mubr.f32.mxu1 %v3912_v33 }
 0x362   :  { %v3920_v16 = vand.u32 4294901760, %v3919_v13  ;;  %4155 = vmatmul.mubr.f32.vlgmr.msra.gmra.mrb[14].mxu1 %v10016_v35 }
 0x363   :  { %7804 = vmatpush3.bf16.msra.mxu1 %v11019_v20  ;;  %v3914_v38 = vand.u32 4294901760, %v3913_v51 }
 0x364   :  { %7806 = vmatprep.subr.bf16.mxu1 %v11020_v50  ;;  %v3921_v42 = vsub.f32 %v3919_v13, %v3920_v16 }
 0x365   :  { %4397 = vmatprep.mubr.f32.mxu1 %v3914_v38  ;;  %v3915_v29 = vsub.f32 %v3913_v51, %v3914_v38  ;;  %v11138_v38 = vld [vmem:[#allocation54_spill] sm:$0xff] }
 0x366   :  { %v10029_v54 = vpop.f32.mrb[12].mxu1  ;;  %v3922_v4 = vand.u32 4294901760, %v3921_v42  ;;  %v11140_v42 = vld [vmem:[#allocation58_spill] sm:$0xff] }
 0x367   :  { %vm3802_vm7 = vcmp.eq.f32.partialorder %v10029_v54, %v10021_v11  ;;  %v3776_v2 = vpop.f32.mrb[13].mxu1  ;;  %7808 = vmatpush3.bf16.msra.mxu1 %v11021_v8  ;;  %v3916_v63 = vand.u32 4294901760, %v3915_v29  ;;  %v11143_v29 = vld [vmem:[#allocation74_spill] sm:$0xff]  ;;  %v11171_v11 = vld [vmem:[#allocation109_spill] sm:$0xff] }
 0x368   :  { %vm3803_vm8 = vcmp.eq.f32.partialorder %v3776_v2, %v10025_v61  ;;  %7810 = vmatprep.subr.bf16.mxu1 %v11022_v1  ;;  %v11172_v61 = vld [vmem:[#allocation111_spill] sm:$0xff]  ;;  %v11173_v54 = vld [vmem:[#allocation114_spill] sm:$0xff] }
 0x369   :  { %3917 = vmatprep.mubr.f32.mxu0 %v3916_v63  ;;  %v11146_v63 = vld [vmem:[#allocation77_spill] sm:$0xff]  ;;  %v11174_v2 = vld [vmem:[#allocation115_spill] sm:$0xff] }
 0x36a   :  { %3923 = vmatmul.mubr.f32.vlgmr.msra.gmra.mrb[14].mxu0 %v3922_v4  ;;  %v11175_v4 = vld [vmem:[#allocation39_spill] sm:$0xff] }
 0x36b   :  { %7772 = vmatpush3.bf16.msra.mxu0 %v11136_v32  ;;  %7812 = vmatpush3.bf16.msra.mxu1 %v11023_v37  ;;  %v11176_v32 = vld [vmem:[#allocation86_spill] sm:$0xff] }
 0x36c   :  { %4290 = vmatprep.mubr.f32.mxu0 %v3913_v51  ;;  %7774 = vmatprep.subr.bf16.mxu0 %v11137_v55  ;;  %v11141_v51 = vld [vmem:[#allocation72_spill] sm:$0xff]  ;;  %v11142_v55 = vld [vmem:[#allocation73_spill] sm:$0xff] }
 0x36d   :  { %7814 = vmatprep.subr.bf16.mxu1 %v11024_v30 }
 0x36f   :  { %7776 = vmatpush3.bf16.msra.mxu0 %v11138_v38  ;;  %7816 = vmatpush3.bf16.msra.mxu1 %v11025_v53  ;;  %v11177_v38 = vld [vmem:[#allocation118_spill] sm:$0xff] }
 0x370   :  { %7778 = vmatprep.subr.bf16.mxu0 %v11139_v12  ;;  %7818 = vmatprep.subr.bf16.mxu1 %v11026_v48  ;;  %v11144_v12 = vld [vmem:[#allocation75_spill] sm:$0xff] }
 0x373   :  { %7780 = vmatpush3.bf16.msra.mxu0 %v11068_v24  ;;  %7820 = vmatpush3.bf16.msra.mxu1 %v11027_v21  ;;  %v11145_v24 = vld [vmem:[#allocation76_spill] sm:$0xff] }
 0x374   :  { %7782 = vmatprep.subr.bf16.mxu0 %v11140_v42  ;;  %7822 = vmatprep.subr.bf16.mxu1 %v11028_v39  ;;  %v11178_v42 = vld [vmem:[#allocation119_spill] sm:$0xff] }
 0x377   :  { %7784 = vmatpush3.bf16.msra.mxu0 %v11141_v51  ;;  %7824 = vmatpush3.bf16.msra.mxu1 %v11029_v17  ;;  %v11179_v51 = vld [vmem:[#allocation93_spill] sm:$0xff] }
 0x378   :  { %7786 = vmatprep.subr.bf16.mxu0 %v11142_v55  ;;  %7826 = vmatprep.subr.bf16.mxu1 %v11030_v43  ;;  %v11180_v55 = vld [vmem:[#allocation120_spill] sm:$0xff] }
 0x37b   :  { %7788 = vmatpush3.bf16.msra.mxu0 %v11143_v29  ;;  %7828 = vmatpush3.bf16.msra.mxu1 %v11031_v45  ;;  %v11181_v29 = vld [vmem:[#allocation83_spill] sm:$0xff] }
 0x37c   :  { %7790 = vmatprep.subr.bf16.mxu0 %v11144_v12  ;;  %7830 = vmatprep.subr.bf16.mxu1 %v11032_v52  ;;  %v11182_v12 = vld [vmem:[#allocation84_spill] sm:$0xff] }
 0x37f   :  { %7792 = vmatpush3.bf16.msra.mxu0 %v11145_v24  ;;  %7832 = vmatpush3.bf16.msra.mxu1 %v11033_v36  ;;  %v11183_v24 = vld [vmem:[#allocation85_spill] sm:$0xff] }
 0x380   :  { %7794 = vmatprep.subr.bf16.mxu0 %v11146_v63  ;;  %7866 = vmatprep.subr.bf16.mxu1 %v11018_v59  ;;  %v11184_v63 = vld [vmem:[#allocation121_spill] sm:$0xff] }
 0x382   :  { %4401 = vmatmul.mubr.f32.vlgmr.msra.gmra.mrb[16].mxu1 %v3920_v16 }
 0x383   :  { %7796 = vmatpush3.bf16.msra.mxu0 %v11084_v40  ;;  %7868 = vmatpush3.bf16.msra.mxu1 %v11019_v20  ;;  %v11161_v40 = vld [vmem:[#allocation110_spill] sm:$0xff] }
 0x384   :  { %4671 = vmatprep.mubr.f32.mxu1 %v3912_v33  ;;  %7798 = vmatprep.subr.bf16.mxu0 %v11085_v41 }
 0x385   :  { %7870 = vmatprep.subr.bf16.mxu1 %v11020_v50 }
 0x387   :  { %7800 = vmatpush3.bf16.msra.mxu0 %v11088_v22  ;;  %7872 = vmatpush3.bf16.msra.mxu1 %v11021_v8  ;;  %v11147_v22 = vmov 0.0   ;;  %v11149_v8 = vld [vmem:[#allocation70_spill] sm:$0xff] }
 0x388   :  { %7834 = vmatprep.subr.bf16.mxu0 %v11092_v28  ;;  %7874 = vmatprep.subr.bf16.mxu1 %v11022_v1  ;;  %v5684_v59 = vsel %vm3803_vm8, 1.0, %v11147_v22  ;;  %v11164_v28 = vld [vmem:[#allocation116_spill] sm:$0xff] }
 0x38a   :  { %4293 = vmatmul.mubr.f32.vlgmr.msra.gmra.mrb[16].mxu0 %v3919_v13  ;;  %v11170_v13 = vld [vmem:[#allocation108_spill] sm:$0xff] }
 0x38b   :  { %7836 = vmatpush3.bf16.msra.mxu0 %v11093_v49  ;;  %4567 = vmatprep.mubr.f32.mxu0 %v3912_v33  ;;  %v11148_v33 = vld [vmem:[#allocation88_spill] sm:$0xff]  ;;  %v11165_v49 = vld [vmem:[#allocation117_spill] sm:$0xff] }
 0x38c   :  { %7876 = vmatpush3.bf16.msra.mxu1 %v11023_v37  ;;  %7838 = vmatprep.subr.bf16.mxu0 %v11094_v3  ;;  %v3815_v20 = vmul.f32 %v5684_v59, %v11148_v33  ;;  %v11150_v37 = vld [vmem:[#allocation91_spill] sm:$0xff]  ;;  %v11185_v59 = vld [vmem:[#allocation90_spill] sm:$0xff] }
 0x38d   :  { %7878 = vmatprep.subr.bf16.mxu1 %v11024_v30  ;;  %v11166_v3 = vld [vmem:[#allocation99_spill] sm:$0xff] }
 0x38e   :  { %v10088_v50 = vand.u32 4294901760, %v3815_v20 }
 0x38f   :  { %7840 = vmatpush3.bf16.msra.mxu0 %v11095_v27 }
 0x390   :  { %7880 = vmatpush3.bf16.msra.mxu1 %v11025_v53  ;;  %7842 = vmatprep.subr.bf16.mxu0 %v11096_v14  ;;  %v10095_v1 = vsub.f32 %v3815_v20, %v10088_v50  ;;  %v11152_v53 = vld [vmem:[#allocation94_spill] sm:$0xff]  ;;  %v11167_v14 = vld [vmem:[#allocation87_spill] sm:$0xff] }
 0x391   :  { %7882 = vmatprep.subr.bf16.mxu1 %v11026_v48  ;;  %v11186_v20 = vld [vmem:[#allocation122_spill] sm:$0xff] }
 0x392   :  { %v4776_v30 = vand.u32 4294901760, %v10095_v1 }
 0x393   :  { %7844 = vmatpush3.bf16.msra.mxu0 %v11097_v6  ;;  %v11168_v6 = vld [vmem:[#allocation101_spill] sm:$0xff] }
 0x394   :  { %7884 = vmatpush3.bf16.msra.mxu1 %v11027_v21  ;;  %7846 = vmatprep.subr.bf16.mxu0 %v11098_v57  ;;  %v4777_v48 = vsub.f32 %v10095_v1, %v4776_v30  ;;  %v11154_v21 = vld [vmem:[#allocation97_spill] sm:$0xff]  ;;  %v11169_v57 = vld [vmem:[#allocation104_spill] sm:$0xff] }
 0x395   :  { %7886 = vmatprep.subr.bf16.mxu1 %v11028_v39 }
 0x396   :  { %v4778_v39 = vand.u32 4294901760, %v4777_v48 }
 0x397   :  { %7848 = vmatpush3.bf16.msra.mxu0 %v11099_v26 }
 0x398   :  { %7888 = vmatpush3.bf16.msra.mxu1 %v11029_v17  ;;  %7850 = vmatprep.subr.bf16.mxu0 %v11100_v5  ;;  %v11155_v17 = vld [vmem:[#allocation100_spill] sm:$0xff] }
 0x399   :  { %7890 = vmatprep.subr.bf16.mxu1 %v11030_v43  ;;  %v11158_v43 = vld [vmem:[#allocation106_spill] sm:$0xff] }
 0x39b   :  { %7852 = vmatpush3.bf16.msra.mxu0 %v11102_v7  ;;  %v11151_v7 = vld [vmem:[#allocation92_spill] sm:$0xff] }
 0x39c   :  { %7892 = vmatpush3.bf16.msra.mxu1 %v11031_v45  ;;  %7854 = vmatprep.subr.bf16.mxu0 %v11149_v8  ;;  %v11159_v45 = vld [vmem:[#allocation102_spill] sm:$0xff]  ;;  %v11187_v8 = vld [vmem:[#allocation95_spill] sm:$0xff] }
 0x39d   :  { %7894 = vmatprep.subr.bf16.mxu1 %v11032_v52 }
 0x39f   :  { %7856 = vmatpush3.bf16.msra.mxu0 %v11106_v10  ;;  %v11163_v10 = vld [vmem:[#allocation113_spill] sm:$0xff] }
 0x3a0   :  { %7896 = vmatpush3.bf16.msra.mxu1 %v11033_v36  ;;  %7858 = vmatprep.subr.bf16.mxu0 %v11107_v60  ;;  %v11153_v60 = vld [vmem:[#allocation96_spill] sm:$0xff]  ;;  %v11160_v36 = vld [vmem:[#allocation107_spill] sm:$0xff] }
 0x3a1   :  { %7930 = vmatprep.subr.bf16.mxu1 %v11150_v37  ;;  %v11194_v37 = vld [vmem:[#allocation128_spill] sm:$0xff] }
 0x3a3   :  { %4673 = vmatmul.mubr.f32.vlgmr.msra.gmra.mrb[18].mxu1 %v10016_v35  ;;  %7860 = vmatpush3.bf16.msra.mxu0 %v11110_v0  ;;  %v11162_v0 = vld [vmem:[#allocation112_spill] sm:$0xff] }
 0x3a4   :  { %7932 = vmatpush3.bf16.msra.mxu1 %v11151_v7  ;;  %5015 = vmatprep.mubr.f32.mxu1 %v10088_v50  ;;  %v11203_v7 = vld [vmem:[#allocation137_spill] sm:$0xff] }
 0x3a5   :  { %7862 = vmatprep.subr.bf16.mxu0 %v11111_v62  ;;  %7934 = vmatprep.subr.bf16.mxu1 %v11152_v53  ;;  %v11156_v62 = vld [vmem:[#allocation103_spill] sm:$0xff] }
 0x3a7   :  { %7864 = vmatpush3.bf16.msra.mxu0 %v11114_v31  ;;  %v11157_v31 = vld [vmem:[#allocation105_spill] sm:$0xff] }
 0x3a8   :  { %7936 = vmatpush3.bf16.msra.mxu1 %v11153_v60  ;;  %7898 = vmatprep.subr.bf16.mxu0 %v9057_v19 }
 0x3a9   :  { %7938 = vmatprep.subr.bf16.mxu1 %v11154_v21 }
 0x3aa   :  { %4569 = vmatmul.mubr.f32.vlgmr.msra.gmra.mrb[18].mxu0 %v10016_v35  ;;  %v5683_v35 = vsel %vm3802_vm7, 1.0, %v11147_v22 }
 0x3ab   :  { %7900 = vmatpush3.bf16.msra.mxu0 %v10952_v18  ;;  %4779 = vmatprep.mubr.f32.mxu0 %v4778_v39  ;;  %v3814_v52 = vmul.f32 %v5683_v35, %v11159_v45  ;;  %v11204_v35 = vld [vmem:[#allocation43_spill] sm:$0xff] }
 0x3ac   :  { %7940 = vmatpush3.bf16.msra.mxu1 %v11155_v17  ;;  %7902 = vmatprep.subr.bf16.mxu0 %v10954_v47 }
 0x3ad   :  { %7942 = vmatprep.subr.bf16.mxu1 %v11156_v62  ;;  %v10133_v41 = vand.u32 4294901760, %v3814_v52 }
 0x3af   :  { %7904 = vmatpush3.bf16.msra.mxu0 %v10957_v25  ;;  %v4781_v5 = vsub.f32 %v3814_v52, %v10133_v41  ;;  %v162_v52 = vadd.f32 1e-07, %v11159_v45 }
 0x3b0   :  { %7944 = vmatpush3.bf16.msra.mxu1 %v11157_v31  ;;  %7906 = vmatprep.subr.bf16.mxu0 %v9143_v23  ;;  %v160_v31 = vadd.f32 1e-07, %v11132_v15 }
 0x3b1   :  { %7946 = vmatprep.subr.bf16.mxu1 %v11158_v43  ;;  %v4782_v27 = vand.u32 4294901760, %v4781_v5  ;;  %v161_v43 = vadd.f32 1e-07, %v11204_v35 }
 0x3b3   :  { %7908 = vmatpush3.bf16.msra.mxu0 %v9160_v9  ;;  %v4783_v26 = vsub.f32 %v4781_v5, %v4782_v27 }
 0x3b4   :  { %7948 = vmatpush3.bf16.msra.mxu1 %v11160_v36  ;;  %7910 = vmatprep.subr.bf16.mxu0 %v10960_v44  ;;  %v10222_v36 = vadd.f32 4.0, %v160_v31 }
 0x3b5   :  { %7950 = vmatprep.subr.bf16.mxu1 %v11161_v40  ;;  %v4784_v16 = vand.u32 4294901760, %v4783_v26  ;;  %v10224_v40 = vadd.f32 4.0, %v161_v43 }
 0x3b6   :  { %8121 = vrcp.f32 %v10222_v36 }
 0x3b7   :  { %7912 = vmatpush3.bf16.msra.mxu0 %v9176_v56  ;;  %8123 = vrcp.f32 %v10224_v40 }
 0x3b8   :  { %7952 = vmatpush3.bf16.msra.mxu1 %v11162_v0  ;;  %7914 = vmatprep.subr.bf16.mxu0 %v10963_v58  ;;  %v164_v0 = vadd.f32 3.0, %v160_v31 }
 0x3b9   :  { %7954 = vmatprep.subr.bf16.mxu1 %v11163_v10  ;;  %v165_v10 = vadd.f32 3.0, %v161_v43 }
 0x3bb   :  { %7916 = vmatpush3.bf16.msra.mxu0 %v9262_v34 }
 0x3bc   :  { %7956 = vmatpush3.bf16.msra.mxu1 %v11164_v28  ;;  %7918 = vmatprep.subr.bf16.mxu0 %v9287_v46  ;;  %v166_v28 = vadd.f32 3.0, %v162_v52 }
 0x3bd   :  { %7958 = vmatprep.subr.bf16.mxu1 %v11165_v49  ;;  %v168_v49 = vmul.f32 %v164_v0, %v160_v31 }
 0x3bf   :  { %7920 = vmatpush3.bf16.msra.mxu0 %v11166_v3 }
 0x3c0   :  { %7960 = vmatpush3.bf16.msra.mxu1 %v11167_v14  ;;  %7922 = vmatprep.subr.bf16.mxu0 %v11168_v6 }
 0x3c1   :  { %7994 = vmatprep.subr.bf16.mxu1 %v9057_v19 }
 0x3c3   :  { %5017 = vmatmul.mubr.f32.vlgmr.msra.gmra.mrb[20].mxu1 %v10133_v41  ;;  %7924 = vmatpush3.bf16.msra.mxu0 %v11169_v57 }
 0x3c4   :  { %7996 = vmatpush3.bf16.msra.mxu1 %v10952_v18  ;;  %5259 = vmatprep.mubr.f32.mxu1 %v4776_v30  ;;  %v11202_v30 = vld [vmem:[#allocation136_spill] sm:$0xff] }
 0x3c5   :  { %7926 = vmatprep.subr.bf16.mxu0 %v11170_v13  ;;  %7998 = vmatprep.subr.bf16.mxu1 %v10954_v47 }
 0x3c7   :  { %7928 = vmatpush3.bf16.msra.mxu0 %v11171_v11 }
 0x3c8   :  { %8000 = vmatpush3.bf16.msra.mxu1 %v10957_v25  ;;  %7962 = vmatprep.subr.bf16.mxu0 %v11172_v61 }
 0x3c9   :  { %8002 = vmatprep.subr.bf16.mxu1 %v9143_v23 }
 0x3ca   :  { %4785 = vmatmul.mubr.f32.vlgmr.msra.gmra.mrb[20].mxu0 %v4784_v16 }
 0x3cb   :  { %7964 = vmatpush3.bf16.msra.mxu0 %v11173_v54  ;;  %5152 = vmatprep.mubr.f32.mxu0 %v10095_v1  ;;  %v11188_v1 = vld [vmem:[#allocation123_spill] sm:$0xff] }
 0x3cc   :  { %8004 = vmatpush3.bf16.msra.mxu1 %v9160_v9  ;;  %7966 = vmatprep.subr.bf16.mxu0 %v11174_v2 }
 0x3cd   :  { %8006 = vmatprep.subr.bf16.mxu1 %v10960_v44 }
 0x3cf   :  { %7968 = vmatpush3.bf16.msra.mxu0 %v11175_v4 }
 0x3d0   :  { %8008 = vmatpush3.bf16.msra.mxu1 %v9176_v56  ;;  %7970 = vmatprep.subr.bf16.mxu0 %v11176_v32 }
 0x3d1   :  { %8010 = vmatprep.subr.bf16.mxu1 %v10963_v58 }
 0x3d3   :  { %7972 = vmatpush3.bf16.msra.mxu0 %v11177_v38  ;;  %v10241_v38 = vpop.eup %8121 }
 0x3d4   :  { %8012 = vmatpush3.bf16.msra.mxu1 %v9262_v34  ;;  %7974 = vmatprep.subr.bf16.mxu0 %v11178_v42 }
 0x3d5   :  { %8014 = vmatprep.subr.bf16.mxu1 %v9287_v46 }
 0x3d7   :  { %7976 = vmatpush3.bf16.msra.mxu0 %v11179_v51  ;;  %v10244_v51 = vpop.eup %8123 }
 0x3d8   :  { %8016 = vmatpush3.bf16.msra.mxu1 %v11166_v3  ;;  %7978 = vmatprep.subr.bf16.mxu0 %v11180_v55 }
 0x3d9   :  { %8018 = vmatprep.subr.bf16.mxu1 %v11168_v6 }
 0x3db   :  { %7980 = vmatpush3.bf16.msra.mxu0 %v11181_v29 }
 0x3dc   :  { %8020 = vmatpush3.bf16.msra.mxu1 %v11169_v57  ;;  %7982 = vmatprep.subr.bf16.mxu0 %v11182_v12 }
 0x3dd   :  { %8022 = vmatprep.subr.bf16.mxu1 %v11170_v13 }
 0x3df   :  { %7984 = vmatpush3.bf16.msra.mxu0 %v11183_v24 }
 0x3e0   :  { %8024 = vmatpush3.bf16.msra.mxu1 %v11171_v11  ;;  %7986 = vmatprep.subr.bf16.mxu0 %v11184_v63  ;;  %v10255_v63 = vmul.f32 %v10241_v38, %v10241_v38 }
 0x3e1   :  { %8058 = vmatprep.subr.bf16.mxu1 %v9057_v19  ;;  %v11189_v19 = vld [vmem:[#allocation124_spill] sm:$0xff] }
 0x3e3   :  { %5263 = vmatmul.mubr.f32.vlgmr.msra.gmra.mrb[22].mxu1 %v4782_v27  ;;  %7988 = vmatpush3.bf16.msra.mxu0 %v11185_v59 }
 0x3e4   :  { %8060 = vmatpush3.bf16.msra.mxu1 %v10952_v18  ;;  %5533 = vmatprep.mubr.f32.mxu1 %v10088_v50  ;;  %v11190_v18 = vld [vmem:[#allocation125_spill] sm:$0xff] }
 0x3e5   :  { %7990 = vmatprep.subr.bf16.mxu0 %v11186_v20  ;;  %8062 = vmatprep.subr.bf16.mxu1 %v10954_v47  ;;  %v11191_v47 = vld [vmem:[#allocation126_spill] sm:$0xff] }
 0x3e7   :  { %7992 = vmatpush3.bf16.msra.mxu0 %v11187_v8  ;;  %v180_v8 = vmul.f32 2.0, %v168_v49 }
 0x3e8   :  { %8064 = vmatpush3.bf16.msra.mxu1 %v10957_v25  ;;  %8026 = vmatprep.subr.bf16.mxu0 %v11188_v1  ;;  %v11192_v25 = vld [vmem:[#allocation127_spill] sm:$0xff] }
 0x3e9   :  { %8066 = vmatprep.subr.bf16.mxu1 %v9143_v23  ;;  %v11193_v23 = vld [vmem:[#allocation12_spill] sm:$0xff] }
 0x3ea   :  { %5155 = vmatmul.mubr.f32.vlgmr.msra.gmra.mrb[22].mxu0 %v4781_v5  ;;  %v10227_v5 = vadd.f32 4.0, %v162_v52 }
 0x3eb   :  { %8028 = vmatpush3.bf16.msra.mxu0 %v11189_v19  ;;  %5429 = vmatprep.mubr.f32.mxu0 %v10088_v50  ;;  %v11201_v50 = vld [vmem:[#allocation135_spill] sm:$0xff]  ;;  %v10261_v19 = vmul.f32 %v10244_v51, %v10244_v51 }
 0x3ec   :  { %8068 = vmatpush3.bf16.msra.mxu1 %v9160_v9  ;;  %8030 = vmatprep.subr.bf16.mxu0 %v11190_v18  ;;  %v11195_v9 = vld [vmem:[#allocation129_spill] sm:$0xff]  ;;  %8125 = vrcp.f32 %v10227_v5  ;;  %v188_v18 = vmul.f32 2.0, %v160_v31  ;;  %v240_v31 = vmul.f32 0.008333334, %v10255_v63 }
 0x3ed   :  { %8070 = vmatprep.subr.bf16.mxu1 %v10960_v44  ;;  %v11196_v44 = vld [vmem:[#allocation130_spill] sm:$0xff]  ;;  %8127 = vlog2.f32 %v10222_v36 }
 0x3ee   :  { %8129 = vlog2.f32 %v10224_v40 }
 0x3ef   :  { %8032 = vmatpush3.bf16.msra.mxu0 %v11191_v47  ;;  %8131 = vlog2.f32 %v10227_v5  ;;  %v189_v47 = vmul.f32 2.0, %v161_v43 }
 0x3f0   :  { %8072 = vmatpush3.bf16.msra.mxu1 %v9176_v56  ;;  %8034 = vmatprep.subr.bf16.mxu0 %v11192_v25  ;;  %v11197_v56 = vld [vmem:[#allocation131_spill] sm:$0xff] }
 0x3f1   :  { %8074 = vmatprep.subr.bf16.mxu1 %v10963_v58  ;;  %v11198_v58 = vld [vmem:[#allocation132_spill] sm:$0xff] }
 0x3f3   :  { %8036 = vmatpush3.bf16.msra.mxu0 %v11193_v23 }
 0x3f4   :  { %8076 = vmatpush3.bf16.msra.mxu1 %v9262_v34  ;;  %8038 = vmatprep.subr.bf16.mxu0 %v11194_v37  ;;  %v11199_v34 = vld [vmem:[#allocation133_spill] sm:$0xff] }
 0x3f5   :  { %8078 = vmatprep.subr.bf16.mxu1 %v9287_v46  ;;  %v11200_v46 = vld [vmem:[#allocation134_spill] sm:$0xff] }
 0x3f6   :  { %v10257_v59 = vpop.eup %8125 }
 0x3f7   :  { %8040 = vmatpush3.bf16.msra.mxu0 %v11195_v9  ;;  %v8128_v25 = vpop.eup %8127  ;;  %v190_v9 = vmul.f32 2.0, %v162_v52 }
 0x3f8   :  { %8080 = vmatpush3.bf16.msra.mxu1 %v11166_v3  ;;  %8042 = vmatprep.subr.bf16.mxu0 %v11196_v44  ;;  %v169_v3 = vmul.f32 %v165_v10, %v161_v43  ;;  %v8130_v44 = vpop.eup %8129  ;;  %v232_v10 = vmul.f32 0.5, %v10241_v38 }
 0x3f9   :  { %8082 = vmatprep.subr.bf16.mxu1 %v11168_v6 }
 0x3fa   :  { %v173_v16 = vadd.f32 2.0, %v169_v3  ;;  %v181_v1 = vmul.f32 2.0, %v169_v3 }
 0x3fb   :  { %8044 = vmatpush3.bf16.msra.mxu0 %v11197_v56  ;;  %v10268_v56 = vmul.f32 %v10257_v59, %v10257_v59 }
 0x3fc   :  { %8084 = vmatpush3.bf16.msra.mxu1 %v11169_v57  ;;  %8046 = vmatprep.subr.bf16.mxu0 %v11198_v58  ;;  %v170_v57 = vmul.f32 %v166_v28, %v162_v52  ;;  %v10239_v32 = vmul.f32 %v173_v16, %v169_v3  ;;  %v10271_v58 = vmul.f32 0.0007936508, %v10255_v63  ;;  %v10280_v52 = vmul.f32 0.6931472, %v8130_v44 }
 0x3fd   :  { %8086 = vmatprep.subr.bf16.mxu1 %v11170_v13  ;;  %v172_v13 = vadd.f32 2.0, %v168_v49  ;;  %v5673_v28 = vadd.f32 -0.5, %v10222_v36  ;;  %v241_v3 = vmul.f32 0.008333334, %v10261_v19 }
 0x3fe   :  { %v174_v54 = vadd.f32 2.0, %v170_v57  ;;  %v182_v37 = vmul.f32 2.0, %v170_v57 }
 0x3ff   :  { %8048 = vmatpush3.bf16.msra.mxu0 %v11199_v34  ;;  %v10236_v2 = vmul.f32 %v172_v13, %v168_v49  ;;  %v8132_v34 = vpop.eup %8131 }
 0x400   :  { %8088 = vmatpush3.bf16.msra.mxu1 %v11171_v11  ;;  %8050 = vmatprep.subr.bf16.mxu0 %v11200_v46  ;;  %v10246_v29 = vmul.f32 %v174_v54, %v170_v57  ;;  %v184_v46 = vadd.f32 2.0, %v180_v8  ;;  %v10282_v0 = vmul.f32 0.6931472, %v8132_v34  ;;  %v5674_v8 = vadd.f32 -0.5, %v10224_v40 }
 0x403   :  { %5535 = vmatmul.mubr.f32.vlgmr.msra.gmra.mrb[24].mxu1 %v10133_v41  ;;  %8052 = vmatpush3.bf16.msra.mxu0 %v11201_v50  ;;  %v185_v50 = vadd.f32 2.0, %v181_v1  ;;  %v5675_v1 = vadd.f32 -0.5, %v10227_v5 }
 0x404   :  { %8054 = vmatprep.subr.bf16.mxu0 %v11202_v30  ;;  %v10275_v30 = vmul.f32 0.0007936508, %v10261_v19 }
 0x407   :  { %8056 = vmatpush3.bf16.msra.mxu0 %v11203_v7 }
 0x40a   :  { %5431 = vmatmul.mubr.f32.vlgmr.msra.gmra.mrb[24].mxu0 %v10133_v41  ;;  %v163_v41 = vadd.f32 1e-07, %v11148_v33 }
 0x40c   :  { %v167_v6 = vadd.f32 3.0, %v163_v41  ;;  %v10232_v61 = vadd.f32 4.0, %v163_v41 }
 0x40e   :  { %v171_v11 = vmul.f32 %v167_v6, %v163_v41  ;;  %8133 = vrcp.f32 %v10232_v61 }
 0x40f   :  { %8135 = vlog2.f32 %v10232_v61 }
 0x410   :  { %v175_v4 = vadd.f32 2.0, %v171_v11  ;;  %8137 = vrcp.f32 %v10236_v2  ;;  %v183_v7 = vmul.f32 2.0, %v171_v11 }
 0x411   :  { %8139 = vrcp.f32 %v10239_v32 }
 0x412   :  { %v10250_v24 = vmul.f32 %v175_v4, %v171_v11  ;;  %8141 = vrcp.f32 %v10246_v29  ;;  %v187_v57 = vadd.f32 2.0, %v183_v7  ;;  %v233_v4 = vmul.f32 0.5, %v10244_v51 }
 0x414   :  { %8143 = vrcp.f32 %v10250_v24 }
 0x415   :  { %8145 = vlog2.f32 %v10236_v2 }
 0x416   :  { %8147 = vlog2.f32 %v10239_v32 }
 0x417   :  { %8149 = vlog2.f32 %v10246_v29 }
 0x418   :  { %8151 = vlog2.f32 %v10250_v24 }
 0x435   :  { %v6584_v53 = vpop.f32.mrb[14].mxu1 }
 0x436   :  { %v6585_v48 = vpop.f32.mrb[15].mxu1 }
 0x437   :  { %v6586_v60 = vadd.f32 %v6585_v48, %v6584_v53  ;;  %v191_v53 = vmul.f32 2.0, %v163_v41  ;;  %v192_v48 = vadd.f32 3.0, %v188_v18 }
 0x439   :  { %v196_v13 = vmul.f32 %v192_v48, %v184_v46  ;;  %v5676_v46 = vadd.f32 -0.5, %v10232_v61 }
 0x43d   :  { %v6549_v21 = vpop.f32.mrb[14].mxu0 }
 0x43e   :  { %v6550_v39 = vpop.f32.mrb[15].mxu0 }
 0x43f   :  { %v6551_v17 = vadd.f32 %v6550_v39, %v6549_v21  ;;  %v10277_v21 = vpop.eup %8133  ;;  %v186_v39 = vadd.f32 2.0, %v182_v37 }
 0x440   :  { %v8136_v43 = vpop.eup %8135  ;;  %v231_v41 = vmul.f32 %v10277_v21, %v10277_v21 }
 0x441   :  { %v4157_v62 = vadd.f32 %v6586_v60, %v6551_v17  ;;  %v193_v60 = vadd.f32 3.0, %v189_v47  ;;  %v194_v17 = vadd.f32 3.0, %v190_v9  ;;  %v8138_v49 = vpop.eup %8137  ;;  %v219_v54 = vmul.f32 0.6931472, %v8136_v43 }
 0x442   :  { %v8140_v6 = vpop.eup %8139  ;;  %v245_v47 = vsub.f32 0.083333336, %v241_v3  ;;  %v10296_v44 = vmul.f32 %v8138_v49, %v196_v13  ;;  %v266_v43 = vmul.f32 %v5675_v1, %v10282_v0 }
 0x443   :  { %v197_v11 = vmul.f32 %v193_v60, %v185_v50  ;;  %v198_v16 = vmul.f32 %v194_v17, %v186_v39 }
 0x445   :  { %v10298_v34 = vmul.f32 %v8140_v6, %v197_v11  ;;  %v279_v6 = vmul.f32 0.0007936508, %v231_v41 }
 0x455   :  { %v6654_v27 = vpop.f32.mrb[16].mxu1 }
 0x456   :  { %v6655_v14 = vpop.f32.mrb[17].mxu1 }
 0x457   :  { %v6656_v26 = vadd.f32 %v6655_v14, %v6654_v27  ;;  %v242_v27 = vmul.f32 0.008333334, %v10268_v56  ;;  %v244_v14 = vsub.f32 0.083333336, %v240_v31  ;;  %v265_v31 = vmul.f32 %v5674_v8, %v10280_v52 }
 0x459   :  { %v248_v37 = vmul.f32 %v244_v14, %v10255_v63  ;;  %v267_v14 = vmul.f32 %v5676_v46, %v219_v54  ;;  %v5678_v46 = vadd.f32 -1.0, %v11204_v35 }
 0x45d   :  { %v6619_v42 = vpop.f32.mrb[16].mxu0 }
 0x45e   :  { %v6620_v55 = vpop.f32.mrb[17].mxu0 }
 0x45f   :  { %v6621_v12 = vadd.f32 %v6620_v55, %v6619_v42  ;;  %v243_v42 = vmul.f32 0.008333334, %v231_v41  ;;  %v8142_v55 = vpop.eup %8141 }
 0x460   :  { %v8144_v50 = vpop.eup %8143  ;;  %v10301_v7 = vmul.f32 %v8142_v55, %v198_v16  ;;  %v269_v16 = vsub.f32 %v265_v31, %v10224_v40 }
 0x461   :  { %v4295_v20 = vadd.f32 %v6621_v12, %v4157_v62  ;;  %v213_v62 = vmul.f32 0.6931472, %v8128_v25  ;;  %v234_v12 = vmul.f32 0.5, %v10257_v59  ;;  %v246_v25 = vsub.f32 0.083333336, %v242_v27 }
 0x462   :  { %v247_v48 = vsub.f32 0.083333336, %v243_v42  ;;  %v278_v27 = vmul.f32 0.0007936508, %v10268_v56  ;;  %v273_v29 = vadd.f32 0.9189385, %v269_v16 }
 0x463   :  { %v10264_v23 = vadd.f32 %v6656_v26, %v4295_v20  ;;  %v195_v26 = vadd.f32 3.0, %v191_v53  ;;  %v235_v20 = vmul.f32 0.5, %v10277_v21  ;;  %v236_v18 = vsub.f32 %v213_v62, %v232_v10 }
 0x464   :  { %v237_v53 = vsub.f32 %v10280_v52, %v233_v4  ;;  %v264_v60 = vmul.f32 %v5673_v28, %v213_v62  ;;  %v238_v39 = vsub.f32 %v10282_v0, %v234_v12  ;;  %v249_v10 = vmul.f32 %v245_v47, %v10261_v19 }
 0x465   :  { %v199_v9 = vmul.f32 %v195_v26, %v187_v57  ;;  %v239_v17 = vsub.f32 %v219_v54, %v235_v20  ;;  %v250_v49 = vmul.f32 %v246_v25, %v10268_v56  ;;  %v252_v3 = vsub.f32 %v236_v18, %v248_v37 }
 0x466   :  { %v280_v57 = vsub.f32 0.0027777778, %v10271_v58  ;;  %v281_v62 = vsub.f32 0.0027777778, %v10275_v30  ;;  %v251_v28 = vmul.f32 %v247_v48, %v231_v41  ;;  %v268_v26 = vsub.f32 %v264_v60, %v10222_v36 }
 0x467   :  { %v282_v13 = vsub.f32 0.0027777778, %v278_v27  ;;  %v283_v52 = vsub.f32 0.0027777778, %v279_v6  ;;  %v270_v54 = vsub.f32 %v266_v43, %v10227_v5  ;;  %v254_v55 = vsub.f32 %v238_v39, %v250_v49 }
 0x468   :  { %v284_v0 = vmul.f32 %v280_v57, %v10255_v63  ;;  %v285_v11 = vmul.f32 %v281_v62, %v10261_v19  ;;  %v253_v63 = vsub.f32 %v237_v53, %v249_v10  ;;  %v271_v19 = vsub.f32 %v267_v14, %v10232_v61 }
 0x469   :  { %v286_v58 = vmul.f32 %v282_v13, %v10268_v56  ;;  %v287_v36 = vmul.f32 %v283_v52, %v231_v41  ;;  %v272_v40 = vadd.f32 0.9189385, %v268_v26  ;;  %v207_v56 = vmul.f32 %v8144_v50, %v199_v9 }
 0x46a   :  { %v288_v4 = vsub.f32 0.083333336, %v284_v0  ;;  %v289_v42 = vsub.f32 0.083333336, %v285_v11  ;;  %v255_v8 = vsub.f32 %v239_v17, %v251_v28  ;;  %v256_v1 = vsub.f32 %v252_v3, %v10296_v44 }
 0x46b   :  { %v290_v32 = vsub.f32 0.083333336, %v286_v58  ;;  %v291_v20 = vsub.f32 0.083333336, %v287_v36  ;;  %v274_v18 = vadd.f32 0.9189385, %v270_v54  ;;  %v257_v61 = vsub.f32 %v253_v63, %v10298_v34 }
 0x46c   :  { %v292_v5 = vmul.f32 %v10241_v38, %v288_v4  ;;  %v293_v41 = vmul.f32 %v10244_v51, %v289_v42  ;;  %v5677_v47 = vadd.f32 -1.0, %v11132_v15  ;;  %v275_v25 = vadd.f32 0.9189385, %v271_v19  ;;  %v8146_v51 = vpop.eup %8145 }
 0x46d   :  { %v294_v24 = vmul.f32 %v10257_v59, %v290_v32  ;;  %v295_v37 = vmul.f32 %v10277_v21, %v291_v20  ;;  %v258_v38 = vsub.f32 %v254_v55, %v10301_v7  ;;  %v5679_v50 = vadd.f32 -1.0, %v11159_v45  ;;  %v8148_v60 = vpop.eup %8147 }
 0x46e   :  { %v296_v9 = vadd.f32 %v292_v5, %v272_v40  ;;  %v259_v44 = vsub.f32 %v255_v8, %v207_v56  ;;  %v297_v48 = vadd.f32 %v293_v41, %v273_v29  ;;  %v5680_v59 = vadd.f32 -1.0, %v11148_v33  ;;  %v8150_v31 = vpop.eup %8149 }
 0x46f   :  { %v298_v39 = vadd.f32 %v294_v24, %v274_v18  ;;  %v301_v34 = vmul.f32 0.6931472, %v8146_v51  ;;  %v316_v17 = vmul.f32 %v5677_v47, %v256_v1  ;;  %v299_v43 = vadd.f32 %v295_v37, %v275_v25  ;;  %v8152_v7 = vpop.eup %8151 }
 0x470   :  { %v303_v35 = vmul.f32 0.6931472, %v8148_v60  ;;  %v317_v10 = vmul.f32 %v5678_v46, %v257_v61  ;;  %v305_v49 = vmul.f32 0.6931472, %v8150_v31  ;;  %v318_v45 = vmul.f32 %v5679_v50, %v258_v38  ;;  %v11209_v60 = vld [vmem:[#allocation16_spill] sm:$0xff] }
 0x471   :  { %v308_v3 = vsub.f32 %v296_v9, %v301_v34  ;;  %v307_v14 = vmul.f32 0.6931472, %v8152_v7  ;;  %v319_v57 = vmul.f32 %v5680_v59, %v259_v44  ;;  %8153 = vlog2.f32 %v11209_v60 }
 0x472   :  { %v309_v6 = vsub.f32 %v297_v48, %v303_v35  ;;  %v310_v33 = vsub.f32 %v298_v39, %v305_v49 }
 0x473   :  { %v320_v62 = vsub.f32 %v316_v17, %v308_v3  ;;  %v311_v26 = vsub.f32 %v299_v43, %v307_v14 }
 0x474   :  { %v321_v13 = vsub.f32 %v317_v10, %v309_v6  ;;  %v322_v52 = vsub.f32 %v318_v45, %v310_v33 }
 0x475   :  { %v324_v11 = vsel %vm125_vm1, %v320_v62, 0.0  ;;  %v323_v16 = vsub.f32 %v319_v57, %v311_v26 }
 0x476   :  { %v6724_v30 = vpop.f32.mrb[18].mxu1  ;;  %v325_v58 = vsel %vm126_vm0, %v321_v13, 0.0  ;;  %v326_v36 = vsel %vm127_vm3, %v322_v52, 0.0 }
 0x477   :  { %v6725_v2 = vpop.f32.mrb[19].mxu1  ;;  %v330_v4 = vsel %vm328_vm9, %v325_v58, 0.0  ;;  %v332_v55 = vsel %vm328_vm9, %v326_v36, 0.0 }
 0x478   :  { %v6726_v12 = vadd.f32 %v6725_v2, %v6724_v30  ;;  %v329_v30 = vsel %vm328_vm9, %v324_v11, 0.0  ;;  %v327_v2 = vsel %vm128_vm2, %v323_v16, 0.0 }
 0x479   :  { %v331_v63 = vadd.f32 %v330_v4, %v329_v30  ;;  %v334_v19 = vsel %vm328_vm9, %v327_v2, 0.0 }
 0x47b   :  { %v333_v32 = vadd.f32 %v332_v55, %v331_v63  ;;  %v8154_v3 = vpop.eup %8153 }
 0x47c   :  { %v5541_v57 = vmul.f32 0.6931472, %v8154_v3 }
 0x47d   :  { %v6689_v53 = vpop.f32.mrb[18].mxu0 }
 0x47e   :  { %v6690_v15 = vpop.f32.mrb[19].mxu0 }
 0x47f   :  { %v6691_v21 = vadd.f32 %v6690_v15, %v6689_v53 }
 0x481   :  { %v4571_v27 = vadd.f32 %v6691_v21, %v10264_v23 }
 0x483   :  { %v4675_v28 = vadd.f32 %v6726_v12, %v4571_v27  ;;  %v335_v12 = vadd.f32 %v334_v19, %v333_v32 }
 0x485   :  { %336 = vadd.xlane.f32.xlu0 %v335_v12 }
 0x496   :  { %v6794_v40 = vpop.f32.mrb[20].mxu1 }
 0x497   :  { %v6795_v20 = vpop.f32.mrb[21].mxu1 }
 0x498   :  { %v6796_v5 = vadd.f32 %v6795_v20, %v6794_v40 }
 0x49d   :  { %v6759_v56 = vpop.f32.mrb[20].mxu0 }
 0x49e   :  { %v6760_v8 = vpop.f32.mrb[21].mxu0 }
 0x49f   :  { %v6761_v29 = vadd.f32 %v6760_v8, %v6759_v56 }
 0x4a1   :  { %v4787_v41 = vadd.f32 %v6761_v29, %v4675_v28  ;;  %v10370_v28 = vsel %vm131_vm4, 1.0, %v11147_v22 }
 0x4a3   :  { %v5019_v1 = vadd.f32 %v6796_v5, %v4787_v41 }
 0x4b6   :  { %v6864_v18 = vpop.f32.mrb[22].mxu1 }
 0x4b7   :  { %v6865_v24 = vpop.f32.mrb[23].mxu1 }
 0x4b8   :  { %v6866_v47 = vadd.f32 %v6865_v24, %v6864_v18 }
 0x4bd   :  { %v6829_v61 = vpop.f32.mrb[22].mxu0 }
 0x4be   :  { %v6830_v25 = vpop.f32.mrb[23].mxu0 }
 0x4bf   :  { %v6831_v37 = vadd.f32 %v6830_v25, %v6829_v61 }
 0x4c1   :  { %v5157_v46 = vadd.f32 %v6831_v37, %v5019_v1 }
 0x4c3   :  { %v5265_v38 = vadd.f32 %v6866_v47, %v5157_v46 }
 0x4d6   :  { %v6934_v9 = vpop.f32.mrb[24].mxu1 }
 0x4d7   :  { %v6935_v50 = vpop.f32.mrb[25].mxu1 }
 0x4d8   :  { %v6936_v51 = vadd.f32 %v6935_v50, %v6934_v9 }
 0x4dd   :  { %v6899_v53 = vpop.f32.mrb[24].mxu0 }
 0x4de   :  { %v6900_v44 = vpop.f32.mrb[25].mxu0 }
 0x4df   :  { %v6901_v48 = vadd.f32 %v6900_v44, %v6899_v53 }
 0x4e1   :  { %v5433_v59 = vadd.f32 %v6901_v48, %v5265_v38 }
 0x4e3   :  { %v10348_v15 = vadd.f32 %v6936_v51, %v5433_v59 }
 0x4e5   :  { %v5546_v39 = vsub.f32 %v11209_v60, %v10348_v15  ;;  %v5585_v34 = vadd.f32 1e-07, %v10348_v15  ;;  %8155 = vlog2.f32 %v10348_v15 }
 0x4e7   :  { %v10354_v17 = vadd.f32 1.0, %v5546_v39  ;;  %v5586_v31 = vadd.f32 3.0, %v5585_v34  ;;  %v10356_v21 = vadd.f32 4.0, %v5585_v34  ;;  %v5592_v26 = vmul.f32 2.0, %v5585_v34 }
 0x4e9   :  { %v5548_v43 = vadd.f32 3.0, %v10354_v17  ;;  %v10360_v35 = vadd.f32 4.0, %v10354_v17  ;;  %v5587_v10 = vmul.f32 %v5586_v31, %v5585_v34  ;;  %8157 = vlog2.f32 %v10356_v21 }
 0x4ea   :  { %v5554_v16 = vmul.f32 2.0, %v10354_v17  ;;  %v5593_v30 = vadd.f32 3.0, %v5592_v26  ;;  %v5686_v55 = vadd.f32 -0.5, %v10356_v21 }
 0x4eb   :  { %v5549_v7 = vmul.f32 %v5548_v43, %v10354_v17  ;;  %8159 = vlog2.f32 %v10360_v35  ;;  %v5588_v49 = vadd.f32 2.0, %v5587_v10  ;;  %v5590_v54 = vmul.f32 2.0, %v5587_v10 }
 0x4ec   :  { %8161 = vrcp.f32 %v10360_v35  ;;  %v5685_v63 = vadd.f32 -0.5, %v10360_v35  ;;  %v5555_v32 = vadd.f32 3.0, %v5554_v16 }
 0x4ed   :  { %v5550_v45 = vadd.f32 2.0, %v5549_v7  ;;  %8163 = vrcp.f32 %v10356_v21  ;;  %v5589_v6 = vmul.f32 %v5588_v49, %v5587_v10  ;;  %v5552_v11 = vmul.f32 2.0, %v5549_v7 }
 0x4ee   :  { %v5591_v12 = vadd.f32 2.0, %v5590_v54 }
 0x4ef   :  { %v8156_v27 = vpop.eup %8155  ;;  %v5551_v14 = vmul.f32 %v5550_v45, %v5549_v7  ;;  %v5553_v19 = vadd.f32 2.0, %v5552_v11 }
 0x4f0   :  { %v5543_v33 = vmul.f32 0.6931472, %v8156_v27  ;;  %v5594_v37 = vmul.f32 %v5593_v30, %v5591_v12 }
 0x4f1   :  { %8165 = vrcp.f32 %v5551_v14  ;;  %v5556_v25 = vmul.f32 %v5555_v32, %v5553_v19 }
 0x4f2   :  { %v5544_v13 = vsub.f32 %v5541_v57, %v5543_v33  ;;  %8167 = vrcp.f32 %v5589_v6 }
 0x4f3   :  { %v8158_v52 = vpop.eup %8157  ;;  %8169 = vlog2.f32 %v5551_v14 }
 0x4f4   :  { %v5545_v0 = vmul.f32 %v10370_v28, %v5544_v13  ;;  %v5599_v22 = vmul.f32 0.6931472, %v8158_v52  ;;  %8171 = vlog2.f32 %v5589_v6  ;;  %v5688_v13 = vadd.f32 -4.0, %v10354_v17 }
 0x4f5   :  { %v8160_v58 = vpop.eup %8159 }
 0x4f6   :  { %v8162_v23 = vpop.eup %8161  ;;  %v5631_v36 = vsel %vm328_vm9, %v5545_v0, 0.0  ;;  %v5561_v4 = vmul.f32 0.6931472, %v8160_v58  ;;  %v5611_v1 = vmul.f32 %v5686_v55, %v5599_v22  ;;  %v5687_v0 = vadd.f32 -1.0, %v10348_v15 }
 0x4f7   :  { %v8164_v42 = vpop.eup %8163  ;;  %5632 = vadd.xlane.f32.xlu0 %v5631_v36  ;;  %v5564_v2 = vmul.f32 %v8162_v23, %v8162_v23  ;;  %v5565_v20 = vmul.f32 0.5, %v8162_v23 }
 0x4f8   :  { %v5602_v40 = vmul.f32 %v8164_v42, %v8164_v42  ;;  %v5573_v56 = vmul.f32 %v5685_v63, %v5561_v4  ;;  %v5603_v29 = vmul.f32 0.5, %v8164_v42  ;;  %v5612_v60 = vsub.f32 %v5611_v1, %v10356_v21 }
 0x4f9   :  { %v5567_v5 = vmul.f32 0.008333334, %v5564_v2  ;;  %v5576_v8 = vmul.f32 0.0007936508, %v5564_v2  ;;  %v5566_v50 = vsub.f32 %v5561_v4, %v5565_v20 }
 0x4fa   :  { %v5605_v41 = vmul.f32 0.008333334, %v5602_v40  ;;  %v5614_v18 = vmul.f32 0.0007936508, %v5602_v40  ;;  %v5574_v53 = vsub.f32 %v5573_v56, %v10360_v35  ;;  %v5604_v48 = vsub.f32 %v5599_v22, %v5603_v29 }
 0x4fb   :  { %v5568_v24 = vsub.f32 0.083333336, %v5567_v5  ;;  %v5577_v47 = vsub.f32 0.0027777778, %v5576_v8  ;;  %v8166_v61 = vpop.eup %8165  ;;  %v5613_v33 = vadd.f32 0.9189385, %v5612_v60 }
 0x4fc   :  { %v5606_v46 = vsub.f32 0.083333336, %v5605_v41  ;;  %v5615_v38 = vsub.f32 0.0027777778, %v5614_v18  ;;  %v8168_v9 = vpop.eup %8167  ;;  %v5558_v34 = vmul.f32 %v8166_v61, %v5556_v25  ;;  %v5575_v14 = vadd.f32 0.9189385, %v5574_v53 }
 0x4fd   :  { %v5569_v51 = vmul.f32 %v5568_v24, %v5564_v2  ;;  %v5578_v44 = vmul.f32 %v5577_v47, %v5564_v2  ;;  %v8170_v10 = vpop.eup %8169  ;;  %v5596_v7 = vmul.f32 %v8168_v9, %v5594_v37 }
 0x4fe   :  { %v5607_v59 = vmul.f32 %v5606_v46, %v5602_v40  ;;  %v5616_v39 = vmul.f32 %v5615_v38, %v5602_v40  ;;  %v8172_v45 = vpop.eup %8171  ;;  %v5583_v26 = vmul.f32 0.6931472, %v8170_v10 }
 0x4ff   :  { %v5570_v31 = vsub.f32 %v5566_v50, %v5569_v51  ;;  %v5579_v43 = vsub.f32 0.083333336, %v5578_v44  ;;  %v5621_v52 = vmul.f32 0.6931472, %v8172_v45 }
 0x500   :  { %v5608_v49 = vsub.f32 %v5604_v48, %v5607_v59  ;;  %v5617_v3 = vsub.f32 0.083333336, %v5616_v39 }
 0x501   :  { %v5571_v27 = vsub.f32 %v5570_v31, %v5558_v34  ;;  %v5580_v6 = vmul.f32 %v8162_v23, %v5579_v43 }
 0x502   :  { %v5609_v57 = vsub.f32 %v5608_v49, %v5596_v7  ;;  %v5618_v35 = vmul.f32 %v8164_v42, %v5617_v3 }
 0x503   :  { %v5581_v62 = vadd.f32 %v5580_v6, %v5575_v14  ;;  %v5627_v16 = vmul.f32 %v5688_v13, %v5571_v27 }
 0x504   :  { %v5619_v21 = vadd.f32 %v5618_v35, %v5613_v33  ;;  %v5624_v58 = vmul.f32 %v5687_v0, %v5609_v57 }
 0x505   :  { %v5584_v11 = vsub.f32 %v5581_v62, %v5583_v26 }
 0x506   :  { %v5622_v54 = vsub.f32 %v5619_v21, %v5621_v52 }
 0x507   :  { %v5628_v30 = vsub.f32 %v5584_v11, %v5627_v16 }
 0x508   :  { %v5625_v36 = vsub.f32 %v5624_v58, %v5622_v54 }
 0x50a   :  { %v5629_v4 = vsub.f32 %v5628_v30, %v5625_v36 }
 0x50c   :  { %v5630_v23 = vmul.f32 %v10370_v28, %v5629_v4 }
 0x50e   :  { %v5641_v22 = vsel %vm328_vm9, %v5630_v23, 0.0 }
 0x50f   :  { %5642 = vadd.xlane.f32.xlu1 %v5641_v22 }
 0x512   :  { %v337_v42 = vpop.xlane.xlu0 %336 }
 0x513   :  { %v338_v2 = vrot.slane %v337_v42, 4 }
 0x515   :  { %v339_v63 = vadd.f32 %v338_v2, %v337_v42 }
 0x517   :  { %v340_v17 = vrot.slane %v339_v63, 2 }
 0x519   :  { %v341_v55 = vadd.f32 %v340_v17, %v339_v63 }
 0x51b   :  { %v342_v19 = vrot.slane %v341_v55, 1 }
 0x51d   :  { %v343_v32 = vadd.f32 %v342_v19, %v341_v55 }
 0x51f   :  { %8109 = vpush %v343_v32 }
 0x550   :  { %s8110_s3 = spop %8109 }
 0x584   :  { %v5633_v15 = vpop.xlane.xlu0 %5632 }
 0x585   :  { %v5634_v12 = vrot.slane %v5633_v15, 4 }
 0x587   :  { %v5635_v40 = vadd.f32 %v5634_v12, %v5633_v15 }
 0x589   :  { %v5636_v20 = vrot.slane %v5635_v40, 2 }
 0x58b   :  { %v5637_v5 = vadd.f32 %v5636_v20, %v5635_v40 }
 0x58d   :  { %v5638_v56 = vrot.slane %v5637_v5, 1 }
 0x58f   :  { %v5639_v8 = vadd.f32 %v5638_v56, %v5637_v5 }
 0x591   :  { %8111 = vpush %v5639_v8 }
 0x59c   :  { %v5643_v28 = vpop.xlane.xlu1 %5642 }
 0x59d   :  { %v5644_v29 = vrot.slane %v5643_v28, 4 }
 0x59f   :  { %v5645_v41 = vadd.f32 %v5644_v29, %v5643_v28 }
 0x5a1   :  { %v5646_v1 = vrot.slane %v5645_v41, 2 }
 0x5a3   :  { %v5647_v18 = vadd.f32 %v5646_v1, %v5645_v41 }
 0x5a5   :  { %v5648_v24 = vrot.slane %v5647_v18, 1 }
 0x5a7   :  { %v5649_v47 = vadd.f32 %v5648_v24, %v5647_v18 }
 0x5a9   :  { %8113 = vpush %v5649_v47 }
 0x5c2   :  { %s8112_s16 = spop %8111 }
 0x5c3   :  { %v5652_v61 = vstv %s8112_s16 }
 0x5da   :  { %s8114_s17 = spop %8113 }
 0x5db   :  { %s5651_s20 = sadd.f32 %s8114_s17, %s8110_s3 }
 0x5dd   :  { %v5653_v25 = vstv %s5651_s20 }
 0x5de   :  { %v5654_v37 = vsel %vm328_vm9, %v5652_v61, %v5653_v25 }
 0x5df   :  { %5655 = vst [vmem:[#allocation7] sm:$0x3] %v5654_v37 }
 0x5e0   :  { %8228 = shalt.err (!%p8225_p6)
}
 0x5e1   :  { %s8229_s24 = scalar_lea.hbm %s10400_s4, 32 }
 0x5e2   :  { %p8230_p7 = scmp.ne.s32.totalorder %s10400_s4, %s8229_s24  ;;  %p8233_p8 = scmp.lt.u32.totalorder %s8229_s24, %s10400_s4 }
 0x5e4   :  { %p8235_p9 = pnand %p8233_p8, %p8230_p7 }
 0x5e6   :  { %8238 = shalt.err (!%p8235_p9)
}
 0x5e7   :  { %5665 = dma.vmem_to_hbm [thread:$0]  %s5663_s19, 32, %s10400_s4, [#allocation4]  }
 0x5e8   :  { %8243 = dma.done.wait [#allocation4], 32  }
 0x5e9   :  { %8244 = vsyncadd [#allocation4], 4294967264 }
 0x5ea   :  { %5669 = vsyncpa [#allocation3], 1 }
 0x5eb   :  { %5670 = vsyncpa [#allocation6], 1 }
 0x5ec   :  { %5671 = vsyncpa [#allocation4], 1 }

</bundles_post_ra>
